<compile_context>
chip_gen: v7x
topology: tpu7x:2x2x1
jax: 0.10.0
libtpu: 0.0.40
codegen_flags: <defaults>
</compile_context>

<pallas_src>
import jax
import jax.numpy as jnp
from jax.experimental import pallas as pl
from jax.experimental.pallas import tpu as pltpu

LN_EPS = 1e-5


def _round_up(v, m):
    return (v + m - 1) // m * m


def _layernorm_bf16(x_ref, gbb_ref):
    """LayerNorm(x) * gamma + beta, cast to bf16 (MXU operand)."""
    x = x_ref[...].astype(jnp.float32)
    gbb = gbb_ref[...]                                    # (3, E): gamma, beta, b2
    mu = jnp.mean(x, axis=-1, keepdims=True)
    var = jnp.mean(jnp.square(x - mu), axis=-1, keepdims=True)
    xn = (x - mu) * jax.lax.rsqrt(var + LN_EPS)
    xn = xn * gbb[0:1, :] + gbb[1:2, :]
    return xn.astype(jnp.bfloat16)


def _ffn_partial(xn_sc, w1_ref, b1_ref, w2_ref):
    """relu(xn @ W1 + b1) @ W2 for one hidden tile; returns f32 partial."""
    h = jnp.dot(xn_sc[...], w1_ref[...], preferred_element_type=jnp.float32)
    # bias + ReLU in packed bf16 (operand feeds the second MXU pass as bf16).
    h = jnp.maximum(h.astype(jnp.bfloat16) + b1_ref[...], 0)
    return jnp.dot(h, w2_ref[...], preferred_element_type=jnp.float32)


def ffn_kernel_acc_out(x_ref, gbb_ref, w1_ref, b1_ref, w2_ref, o_ref, xn_sc):
    """f32 output path: accumulate linear2 partials directly into the resident
    output tile (its block index is constant over the hidden grid axis)."""
    k = pl.program_id(1)

    @pl.when(k == 0)
    def _():
        xn_sc[...] = _layernorm_bf16(x_ref, gbb_ref)
        # Initialize with pre-LN residual + bias2.
        o_ref[...] = x_ref[...] + gbb_ref[2:3, :]

    o_ref[...] += _ffn_partial(xn_sc, w1_ref, b1_ref, w2_ref)


def ffn_kernel_acc_scratch(x_ref, gbb_ref, w1_ref, b1_ref, w2_ref, o_ref,
                           xn_sc, acc_sc):
    """Low-precision output path: accumulate in f32 scratch, cast at the end."""
    k = pl.program_id(1)
    nk = pl.num_programs(1)

    @pl.when(k == 0)
    def _():
        xn_sc[...] = _layernorm_bf16(x_ref, gbb_ref)
        acc_sc[...] = jnp.zeros_like(acc_sc)

    acc_sc[...] += _ffn_partial(xn_sc, w1_ref, b1_ref, w2_ref)

    @pl.when(k == nk - 1)
    def _():
        y = acc_sc[...] + gbb_ref[2:3, :] + x_ref[...].astype(jnp.float32)
        o_ref[...] = y.astype(o_ref.dtype)


def ffn_pallas(x, gamma, beta, w1, b1, w2, b2, *, tm=None,
               weight_dtype=jnp.bfloat16):
    """x: [B, S, E].  w1: [E, H], w2: [H, E].  Returns [B, S, E]."""
    B, S, E = x.shape
    H = w1.shape[1]
    T = B * S
    xbytes = jnp.dtype(x.dtype).itemsize
    wbytes = jnp.dtype(weight_dtype).itemsize

    # --------------------------------------------------------------- VMEM cap
    # Generation-aware budget (v5e/v6e: 128 MiB, v7x: 64 MiB per TensorCore).
    try:
        info = pltpu.get_tpu_info()
        vmem_cap = int(getattr(info, "vmem_capacity_bytes", 64 * 1024 * 1024))
    except Exception:
        vmem_cap = 64 * 1024 * 1024        # conservative (v7x)
    vmem_budget = min(vmem_cap * 3 // 4, 96 * 1024 * 1024)

    # Pad hidden dim to a multiple of 256 (MXU-aligned); padded hidden units
    # are exact zeros through ReLU and contribute nothing to linear2.
    H_pad = _round_up(H, 256)

    # f32 outputs accumulate in-place into the resident output tile; other
    # dtypes (e.g. bf16 activation I/O on v6e) use an f32 scratch accumulator.
    acc_into_out = (x.dtype == jnp.float32)

    def act_bytes(tm_):
        b = 2 * tm_ * E * xbytes          # x tile, double-buffered
        b += 2 * tm_ * E * xbytes         # output tile, double-buffered
        b += tm_ * E * 2                  # bf16 LayerNorm cache
        if not acc_into_out:
            b += tm_ * E * 4              # f32 accumulator scratch
        return b

    # Resident-weight footprint: W1 + W2 + b1 single-buffered + packed params.
    resident_bytes = 2 * E * H_pad * wbytes + H_pad * 2 + 3 * E * 4
    weights_resident = resident_bytes + act_bytes(256) <= vmem_budget

    # ----------------------------------------------------------------- tiling
    if tm is None:
        # Resident weights -> MXU-bound at tm=256; streamed weights need bigger
        # token tiles (intensity ~ tm*H/(H+2*tm)) to clear the HBM roofline.
        tm = 256 if weights_resident else 512
    # Keep at least two token tiles so the "parallel" axis can shard across
    # both v7x TensorCores (near-free on v5e/v6e).
    if T > 8:
        tm = min(tm, _round_up(pl.cdiv(T, 2), 8))
    tm = max(tm, 8)

    if weights_resident:
        th = H_pad
    else:
        # Largest MXU-aligned divisor of H_pad whose triple-buffered streamed
        # tiles still fit the budget.
        m = H_pad // 256
        cands = sorted((256 * d for d in range(1, m + 1) if m % d == 0),
                       reverse=True)
        th = cands[-1]
        for c in cands:
            stream_bytes = 3 * (2 * E * c + c) * wbytes + act_bytes(tm) + 3 * E * 4
            if stream_bytes <= vmem_budget:
                th = c
                break

    # ------------------------------------------------------------------- data
    T_pad = pl.cdiv(T, tm) * tm
    x2 = x.reshape(T, E)
    if T_pad != T:   # zero rows: LN(0) -> beta; sliced off afterwards
        x2 = jnp.pad(x2, ((0, T_pad - T), (0, 0)))

    gbb = jnp.stack([gamma, beta, b2], axis=0).astype(jnp.float32)   # (3, E)
    w1c = w1.astype(weight_dtype)
    w2c = w2.astype(weight_dtype)
    b1c = b1.reshape(1, H).astype(jnp.bfloat16)
    if H_pad != H:
        w1c = jnp.pad(w1c, ((0, 0), (0, H_pad - H)))
        w2c = jnp.pad(w2c, ((0, H_pad - H), (0, 0)))
        b1c = jnp.pad(b1c, ((0, 0), (0, H_pad - H)))

    grid = (T_pad // tm, H_pad // th)

    # ------------------------------------------------------------- BlockSpecs
    def make_specs(use_pipeline_mode):
        def const(shape):
            kw = {"pipeline_mode": pl.Buffered(1)} if use_pipeline_mode else {}
            return pl.BlockSpec(shape, lambda i, k: (0, 0), **kw)

        if weights_resident:
            w1_spec = const((E, H_pad))
            b1_spec = const((1, H_pad))
            w2_spec = const((H_pad, E))
        else:
            kw = {"pipeline_mode": pl.Buffered(3)} if use_pipeline_mode else {}
            w1_spec = pl.BlockSpec((E, th), lambda i, k: (0, k), **kw)
            b1_spec = pl.BlockSpec((1, th), lambda i, k: (0, k), **kw)
            w2_spec = pl.BlockSpec((th, E), lambda i, k: (k, 0), **kw)

        in_specs = [
            pl.BlockSpec((tm, E), lambda i, k: (i, 0)),   # x tile (resident over k)
            const((3, E)),                                # gamma / beta / b2 packed
            w1_spec, b1_spec, w2_spec,
        ]
        out_spec = pl.BlockSpec((tm, E), lambda i, k: (i, 0))
        return in_specs, out_spec

    if acc_into_out:
        kernel = ffn_kernel_acc_out
        scratch = [pltpu.VMEM((tm, E), jnp.bfloat16)]
    else:
        kernel = ffn_kernel_acc_scratch
        scratch = [pltpu.VMEM((tm, E), jnp.bfloat16),
                   pltpu.VMEM((tm, E), jnp.float32)]

    weight_stream = 1 if weights_resident else grid[0]
    cost = pl.CostEstimate(
        flops=4 * T_pad * E * H_pad,                  # two matmuls
        transcendentals=T_pad,                        # rsqrt per token
        bytes_accessed=(2 * T_pad * E * xbytes        # x in + out
                        + weight_stream * 2 * E * H_pad * wbytes
                        + 3 * E * 4 + H_pad * 2),
    )

    def run(use_pipeline_mode):
        in_specs, out_spec = make_specs(use_pipeline_mode)
        res = pl.pallas_call(
            kernel,
            out_shape=jax.ShapeDtypeStruct((T_pad, E), x.dtype),
            grid_spec=pltpu.PrefetchScalarGridSpec(
                num_scalar_prefetch=0,
                grid=grid,
                in_specs=in_specs,
                out_specs=out_spec,
                scratch_shapes=scratch,
            ),
            compiler_params=pltpu.CompilerParams(
                dimension_semantics=("parallel", "arbitrary"),
                vmem_limit_bytes=int(vmem_budget),
            ),
            cost_estimate=cost,
        )(x2, gbb, w1c, b1c, w2c)
        return jax.block_until_ready(res)

    try:
        out = run(True)
    except Exception:
        # pipeline_mode / Buffered(1) unsupported on this jax build -> the
        # kernel is still correct (just default double-buffered).
        out = run(False)

    return out[:T].reshape(B, S, E)


def ffn_reference(x, gamma, beta, w1, b1, w2, b2):
    mu = jnp.mean(x, axis=-1, keepdims=True)
    var = jnp.mean(jnp.square(x - mu), axis=-1, keepdims=True)
    xn = (x - mu) / jnp.sqrt(var + LN_EPS) * gamma + beta
    h = jnp.maximum(xn @ w1 + b1, 0.0)
    return h @ w2 + b2 + x


if __name__ == "__main__":
    # Module-default widths (embed_dim=256, hidden_dim=1024), small batch/seq.
    B, S, E, H = 2, 128, 256, 1024

    key = jax.random.PRNGKey(0)
    kx, kw1, kb1, kw2, kb2, kg, kb = jax.random.split(key, 7)

    x = jax.random.normal(kx, (B, S, E), dtype=jnp.float32)

    gamma = 1.0 + 0.01 * jax.random.normal(kg, (E,), dtype=jnp.float32)
    beta = 0.01 * jax.random.normal(kb, (E,), dtype=jnp.float32)
    w1 = jax.random.normal(kw1, (E, H), dtype=jnp.float32) / jnp.sqrt(E)
    b1 = 0.01 * jax.random.normal(kb1, (H,), dtype=jnp.float32)
    w2 = jax.random.normal(kw2, (H, E), dtype=jnp.float32) / jnp.sqrt(H)
    b2 = 0.01 * jax.random.normal(kb2, (E,), dtype=jnp.float32)

    out = ffn_pallas(x, gamma, beta, w1, b1, w2, b2)
    out = jax.block_until_ready(out)

    ref = ffn_reference(x, gamma, beta, w1, b1, w2, b2)
    # bf16 matmul operands (weights + cached LN output) with f32 accumulation
    # -> loosened tolerance vs the f32 reference.
    assert jnp.allclose(out, ref, atol=5e-2, rtol=5e-2), "mismatch vs reference"

    print("KERNEL_OK")
</pallas_src>

<mosaic_0001>
module attributes {stable_mosaic.version = 11 : i64} {
  func.func @ffn_kernel_acc_out(%arg0: i32, %arg1: i32, %arg2: memref<128x256xf32, #tpu.memory_space<vmem>>, %arg3: memref<3x256xf32, #tpu.memory_space<vmem>>, %arg4: memref<256x1024xbf16, #tpu.memory_space<vmem>>, %arg5: memref<1x1024xbf16, #tpu.memory_space<vmem>>, %arg6: memref<1024x256xbf16, #tpu.memory_space<vmem>>, %arg7: memref<128x256xf32, #tpu.memory_space<vmem>>, %arg8: memref<128x256xbf16, #tpu.memory_space<vmem>>) attributes {dimension_semantics = [#tpu.dimension_semantics<parallel>, #tpu.dimension_semantics<arbitrary>], iteration_bounds = array<i64: 2, 1>, scalar_prefetch = 0 : i64, scratch_operands = 1 : i64, tpu.core_type = #tpu.core_type<tc>, window_params = [{transform_indices = @transform_0, window_bounds = array<i64: 128, 256>}, {pipeline_mode = #tpu.pipeline_mode<synchronous>, transform_indices = @transform_1, window_bounds = array<i64: 3, 256>}, {pipeline_mode = #tpu.pipeline_mode<synchronous>, transform_indices = @transform_2, window_bounds = array<i64: 256, 1024>}, {pipeline_mode = #tpu.pipeline_mode<synchronous>, transform_indices = @transform_3, window_bounds = array<i64: 1, 1024>}, {pipeline_mode = #tpu.pipeline_mode<synchronous>, transform_indices = @transform_4, window_bounds = array<i64: 1024, 256>}, {transform_indices = @transform_5, window_bounds = array<i64: 128, 256>}]} {
    %c0_i32 = arith.constant 0 : i32
    %0 = arith.cmpi eq, %arg1, %c0_i32 : i32
    %1 = arith.extui %0 : i1 to i32
    %c0_i32_0 = arith.constant 0 : i32
    %2 = arith.cmpi ne, %1, %c0_i32_0 : i32
    scf.if %2 {
      %c0_14 = arith.constant 0 : index
      %c0_15 = arith.constant 0 : index
      %17 = vector.load %arg2[%c0_14, %c0_15] : memref<128x256xf32, #tpu.memory_space<vmem>>, vector<128x256xf32>
      %c0_16 = arith.constant 0 : index
      %c0_17 = arith.constant 0 : index
      %18 = vector.load %arg3[%c0_16, %c0_17] : memref<3x256xf32, #tpu.memory_space<vmem>>, vector<3x256xf32>
      %cst_18 = arith.constant dense<0.000000e+00> : vector<128xf32>
      %19 = vector.multi_reduction <add>, %17, %cst_18 [1] : vector<128x256xf32> to vector<128xf32>
      %20 = vector.shape_cast %19 : vector<128xf32> to vector<128x1xf32>
      %cst_19 = arith.constant 2.560000e+02 : f32
      %21 = vector.broadcast %cst_19 : f32 to vector<128x1xf32>
      %22 = arith.divf %20, %21 : vector<128x1xf32>
      %23 = vector.broadcast %22 : vector<128x1xf32> to vector<128x256xf32>
      %24 = arith.subf %17, %23 : vector<128x256xf32>
      %25 = arith.mulf %24, %24 : vector<128x256xf32>
      %cst_20 = arith.constant dense<0.000000e+00> : vector<128xf32>
      %26 = vector.multi_reduction <add>, %25, %cst_20 [1] : vector<128x256xf32> to vector<128xf32>
      %27 = vector.shape_cast %26 : vector<128xf32> to vector<128x1xf32>
      %cst_21 = arith.constant 2.560000e+02 : f32
      %28 = vector.broadcast %cst_21 : f32 to vector<128x1xf32>
      %29 = arith.divf %27, %28 : vector<128x1xf32>
      %30 = vector.broadcast %22 : vector<128x1xf32> to vector<128x256xf32>
      %31 = arith.subf %17, %30 : vector<128x256xf32>
      %cst_22 = arith.constant 9.99999974E-6 : f32
      %32 = vector.broadcast %cst_22 : f32 to vector<128x1xf32>
      %33 = arith.addf %29, %32 : vector<128x1xf32>
      %34 = math.rsqrt %33 : vector<128x1xf32>
      %35 = vector.broadcast %34 : vector<128x1xf32> to vector<128x256xf32>
      %36 = arith.mulf %31, %35 : vector<128x256xf32>
      %37 = vector.extract_strided_slice %18 {offsets = [0, 0], sizes = [1, 256], strides = [1, 1]} : vector<3x256xf32> to vector<1x256xf32>
      %38 = vector.broadcast %37 : vector<1x256xf32> to vector<128x256xf32>
      %39 = arith.mulf %36, %38 : vector<128x256xf32>
      %40 = vector.extract_strided_slice %18 {offsets = [1, 0], sizes = [1, 256], strides = [1, 1]} : vector<3x256xf32> to vector<1x256xf32>
      %41 = vector.broadcast %40 : vector<1x256xf32> to vector<128x256xf32>
      %42 = arith.addf %39, %41 : vector<128x256xf32>
      %43 = arith.truncf %42 : vector<128x256xf32> to vector<128x256xbf16>
      %c0_23 = arith.constant 0 : index
      %c0_24 = arith.constant 0 : index
      %44 = vector.load %arg8[%c0_23, %c0_24] : memref<128x256xbf16, #tpu.memory_space<vmem>>, vector<128x256xbf16>
      tpu.vector_store %arg8[%c0_23, %c0_24], %43 {strides = array<i32>} : memref<128x256xbf16, #tpu.memory_space<vmem>>, vector<128x256xbf16>,
      %c0_25 = arith.constant 0 : index
      %c0_26 = arith.constant 0 : index
      %45 = vector.load %arg2[%c0_25, %c0_26] : memref<128x256xf32, #tpu.memory_space<vmem>>, vector<128x256xf32>
      %c2 = arith.constant 2 : index
      %c0_27 = arith.constant 0 : index
      %46 = vector.load %arg3[%c2, %c0_27] : memref<3x256xf32, #tpu.memory_space<vmem>>, vector<1x256xf32>
      %47 = vector.broadcast %46 : vector<1x256xf32> to vector<128x256xf32>
      %48 = arith.addf %45, %47 : vector<128x256xf32>
      %c0_28 = arith.constant 0 : index
      %c0_29 = arith.constant 0 : index
      %49 = vector.load %arg7[%c0_28, %c0_29] : memref<128x256xf32, #tpu.memory_space<vmem>>, vector<128x256xf32>
      tpu.vector_store %arg7[%c0_28, %c0_29], %48 {strides = array<i32>} : memref<128x256xf32, #tpu.memory_space<vmem>>, vector<128x256xf32>,
    } else {
    }
    %c0 = arith.constant 0 : index
    %c0_1 = arith.constant 0 : index
    %3 = vector.load %arg7[%c0, %c0_1] : memref<128x256xf32, #tpu.memory_space<vmem>>, vector<128x256xf32>
    %c0_2 = arith.constant 0 : index
    %c0_3 = arith.constant 0 : index
    %4 = vector.load %arg8[%c0_2, %c0_3] : memref<128x256xbf16, #tpu.memory_space<vmem>>, vector<128x256xbf16>
    %c0_4 = arith.constant 0 : index
    %c0_5 = arith.constant 0 : index
    %5 = vector.load %arg4[%c0_4, %c0_5] : memref<256x1024xbf16, #tpu.memory_space<vmem>>, vector<256x1024xbf16>
    %cst = arith.constant dense<0.000000e+00> : vector<128x1024xf32>
    %6 = tpu.matmul %4, %5, %cst {dimension_numbers = #tpu.dot_dimension_numbers<[1], [0], [0], [1], [0, 0, 1, 1], [], []>} : vector<128x256xbf16>, vector<256x1024xbf16>, vector<128x1024xf32> -> vector<128x1024xf32>
    %7 = arith.truncf %6 : vector<128x1024xf32> to vector<128x1024xbf16>
    %c0_6 = arith.constant 0 : index
    %c0_7 = arith.constant 0 : index
    %8 = vector.load %arg5[%c0_6, %c0_7] : memref<1x1024xbf16, #tpu.memory_space<vmem>>, vector<1x1024xbf16>
    %9 = vector.broadcast %8 : vector<1x1024xbf16> to vector<128x1024xbf16>
    %10 = arith.addf %7, %9 : vector<128x1024xbf16>
    %cst_8 = arith.constant 0.000000e+00 : bf16
    %11 = vector.broadcast %cst_8 : bf16 to vector<128x1024xbf16>
    %12 = arith.maximumf %10, %11 : vector<128x1024xbf16>
    %c0_9 = arith.constant 0 : index
    %c0_10 = arith.constant 0 : index
    %13 = vector.load %arg6[%c0_9, %c0_10] : memref<1024x256xbf16, #tpu.memory_space<vmem>>, vector<1024x256xbf16>
    %cst_11 = arith.constant dense<0.000000e+00> : vector<128x256xf32>
    %14 = tpu.matmul %12, %13, %cst_11 {dimension_numbers = #tpu.dot_dimension_numbers<[1], [0], [0], [1], [0, 0, 1, 1], [], []>} : vector<128x1024xbf16>, vector<1024x256xbf16>, vector<128x256xf32> -> vector<128x256xf32>
    %15 = arith.addf %3, %14 : vector<128x256xf32>
    %c0_12 = arith.constant 0 : index
    %c0_13 = arith.constant 0 : index
    %16 = vector.load %arg7[%c0_12, %c0_13] : memref<128x256xf32, #tpu.memory_space<vmem>>, vector<128x256xf32>
    tpu.vector_store %arg7[%c0_12, %c0_13], %15 {strides = array<i32>} : memref<128x256xf32, #tpu.memory_space<vmem>>, vector<128x256xf32>,
    return
  }
  func.func @transform_0(%arg0: i32, %arg1: i32) -> (i32, i32) {
    %c0_i32 = arith.constant 0 : i32
    %c0_i32_0 = arith.constant 0 : i32
    return %arg0, %c0_i32 : i32, i32
  }
  func.func @transform_1(%arg0: i32, %arg1: i32) -> (i32, i32) {
    %c0_i32 = arith.constant 0 : i32
    %c0_i32_0 = arith.constant 0 : i32
    %c0_i32_1 = arith.constant 0 : i32
    return %c0_i32, %c0_i32_0 : i32, i32
  }
  func.func @transform_2(%arg0: i32, %arg1: i32) -> (i32, i32) {
    %c0_i32 = arith.constant 0 : i32
    %c0_i32_0 = arith.constant 0 : i32
    %c0_i32_1 = arith.constant 0 : i32
    return %c0_i32, %c0_i32_0 : i32, i32
  }
  func.func @transform_3(%arg0: i32, %arg1: i32) -> (i32, i32) {
    %c0_i32 = arith.constant 0 : i32
    %c0_i32_0 = arith.constant 0 : i32
    %c0_i32_1 = arith.constant 0 : i32
    return %c0_i32, %c0_i32_0 : i32, i32
  }
  func.func @transform_4(%arg0: i32, %arg1: i32) -> (i32, i32) {
    %c0_i32 = arith.constant 0 : i32
    %c0_i32_0 = arith.constant 0 : i32
    %c0_i32_1 = arith.constant 0 : i32
    return %c0_i32, %c0_i32_0 : i32, i32
  }
  func.func @transform_5(%arg0: i32, %arg1: i32) -> (i32, i32) {
    %c0_i32 = arith.constant 0 : i32
    %c0_i32_0 = arith.constant 0 : i32
    return %arg0, %c0_i32 : i32, i32
  }
}

module attributes {stable_mosaic.version = 11 : i64} {
  func.func @ffn_kernel_acc_out(%arg0: i32, %arg1: i32, %arg2: memref<128x256xf32, #tpu.memory_space<vmem>>, %arg3: memref<3x256xf32, #tpu.memory_space<vmem>>, %arg4: memref<256x1024xbf16, #tpu.memory_space<vmem>>, %arg5: memref<1x1024xbf16, #tpu.memory_space<vmem>>, %arg6: memref<1024x256xbf16, #tpu.memory_space<vmem>>, %arg7: memref<128x256xf32, #tpu.memory_space<vmem>>, %arg8: memref<128x256xbf16, #tpu.memory_space<vmem>>) attributes {dimension_semantics = [#tpu.dimension_semantics<parallel>, #tpu.dimension_semantics<arbitrary>], iteration_bounds = array<i64: 2, 1>, scalar_prefetch = 0 : i64, scratch_operands = 1 : i64, tpu.core_type = #tpu.core_type<tc>, window_params = [{transform_indices = @transform_0, window_bounds = array<i64: 128, 256>}, {pipeline_mode = #tpu.pipeline_mode<synchronous>, transform_indices = @transform_1, window_bounds = array<i64: 3, 256>}, {pipeline_mode = #tpu.pipeline_mode<synchronous>, transform_indices = @transform_2, window_bounds = array<i64: 256, 1024>}, {pipeline_mode = #tpu.pipeline_mode<synchronous>, transform_indices = @transform_3, window_bounds = array<i64: 1, 1024>}, {pipeline_mode = #tpu.pipeline_mode<synchronous>, transform_indices = @transform_4, window_bounds = array<i64: 1024, 256>}, {transform_indices = @transform_5, window_bounds = array<i64: 128, 256>}]} {
    %c0_i32 = arith.constant 0 : i32
    %0 = arith.cmpi eq, %arg1, %c0_i32 : i32
    %1 = arith.extui %0 : i1 to i32
    %c0_i32_0 = arith.constant 0 : i32
    %2 = arith.cmpi ne, %1, %c0_i32_0 : i32
    scf.if %2 {
      %c0_14 = arith.constant 0 : index
      %c0_15 = arith.constant 0 : index
      %17 = vector.load %arg2[%c0_14, %c0_15] : memref<128x256xf32, #tpu.memory_space<vmem>>, vector<128x256xf32>
      %c0_16 = arith.constant 0 : index
      %c0_17 = arith.constant 0 : index
      %18 = vector.load %arg3[%c0_16, %c0_17] : memref<3x256xf32, #tpu.memory_space<vmem>>, vector<3x256xf32>
      %cst_18 = arith.constant dense<0.000000e+00> : vector<128xf32>
      %19 = vector.multi_reduction <add>, %17, %cst_18 [1] : vector<128x256xf32> to vector<128xf32>
      %20 = vector.shape_cast %19 : vector<128xf32> to vector<128x1xf32>
      %cst_19 = arith.constant 2.560000e+02 : f32
      %21 = vector.broadcast %cst_19 : f32 to vector<128x1xf32>
      %22 = arith.divf %20, %21 : vector<128x1xf32>
      %23 = vector.broadcast %22 : vector<128x1xf32> to vector<128x256xf32>
      %24 = arith.subf %17, %23 : vector<128x256xf32>
      %25 = arith.mulf %24, %24 : vector<128x256xf32>
      %cst_20 = arith.constant dense<0.000000e+00> : vector<128xf32>
      %26 = vector.multi_reduction <add>, %25, %cst_20 [1] : vector<128x256xf32> to vector<128xf32>
      %27 = vector.shape_cast %26 : vector<128xf32> to vector<128x1xf32>
      %cst_21 = arith.constant 2.560000e+02 : f32
      %28 = vector.broadcast %cst_21 : f32 to vector<128x1xf32>
      %29 = arith.divf %27, %28 : vector<128x1xf32>
      %30 = vector.broadcast %22 : vector<128x1xf32> to vector<128x256xf32>
      %31 = arith.subf %17, %30 : vector<128x256xf32>
      %cst_22 = arith.constant 9.99999974E-6 : f32
      %32 = vector.broadcast %cst_22 : f32 to vector<128x1xf32>
      %33 = arith.addf %29, %32 : vector<128x1xf32>
      %34 = math.rsqrt %33 : vector<128x1xf32>
      %35 = vector.broadcast %34 : vector<128x1xf32> to vector<128x256xf32>
      %36 = arith.mulf %31, %35 : vector<128x256xf32>
      %37 = vector.extract_strided_slice %18 {offsets = [0, 0], sizes = [1, 256], strides = [1, 1]} : vector<3x256xf32> to vector<1x256xf32>
      %38 = vector.broadcast %37 : vector<1x256xf32> to vector<128x256xf32>
      %39 = arith.mulf %36, %38 : vector<128x256xf32>
      %40 = vector.extract_strided_slice %18 {offsets = [1, 0], sizes = [1, 256], strides = [1, 1]} : vector<3x256xf32> to vector<1x256xf32>
      %41 = vector.broadcast %40 : vector<1x256xf32> to vector<128x256xf32>
      %42 = arith.addf %39, %41 : vector<128x256xf32>
      %43 = arith.truncf %42 : vector<128x256xf32> to vector<128x256xbf16>
      %c0_23 = arith.constant 0 : index
      %c0_24 = arith.constant 0 : index
      %44 = vector.load %arg8[%c0_23, %c0_24] : memref<128x256xbf16, #tpu.memory_space<vmem>>, vector<128x256xbf16>
      tpu.vector_store %arg8[%c0_23, %c0_24], %43 {strides = array<i32>} : memref<128x256xbf16, #tpu.memory_space<vmem>>, vector<128x256xbf16>,
      %c0_25 = arith.constant 0 : index
      %c0_26 = arith.constant 0 : index
      %45 = vector.load %arg2[%c0_25, %c0_26] : memref<128x256xf32, #tpu.memory_space<vmem>>, vector<128x256xf32>
      %c2 = arith.constant 2 : index
      %c0_27 = arith.constant 0 : index
      %46 = vector.load %arg3[%c2, %c0_27] : memref<3x256xf32, #tpu.memory_space<vmem>>, vector<1x256xf32>
      %47 = vector.broadcast %46 : vector<1x256xf32> to vector<128x256xf32>
      %48 = arith.addf %45, %47 : vector<128x256xf32>
      %c0_28 = arith.constant 0 : index
      %c0_29 = arith.constant 0 : index
      %49 = vector.load %arg7[%c0_28, %c0_29] : memref<128x256xf32, #tpu.memory_space<vmem>>, vector<128x256xf32>
      tpu.vector_store %arg7[%c0_28, %c0_29], %48 {strides = array<i32>} : memref<128x256xf32, #tpu.memory_space<vmem>>, vector<128x256xf32>,
    } else {
    }
    %c0 = arith.constant 0 : index
    %c0_1 = arith.constant 0 : index
    %3 = vector.load %arg7[%c0, %c0_1] : memref<128x256xf32, #tpu.memory_space<vmem>>, vector<128x256xf32>
    %c0_2 = arith.constant 0 : index
    %c0_3 = arith.constant 0 : index
    %4 = vector.load %arg8[%c0_2, %c0_3] : memref<128x256xbf16, #tpu.memory_space<vmem>>, vector<128x256xbf16>
    %c0_4 = arith.constant 0 : index
    %c0_5 = arith.constant 0 : index
    %5 = vector.load %arg4[%c0_4, %c0_5] : memref<256x1024xbf16, #tpu.memory_space<vmem>>, vector<256x1024xbf16>
    %cst = arith.constant dense<0.000000e+00> : vector<128x1024xf32>
    %6 = tpu.matmul %4, %5, %cst {dimension_numbers = #tpu.dot_dimension_numbers<[1], [0], [0], [1], [0, 0, 1, 1], [], []>} : vector<128x256xbf16>, vector<256x1024xbf16>, vector<128x1024xf32> -> vector<128x1024xf32>
    %7 = arith.truncf %6 : vector<128x1024xf32> to vector<128x1024xbf16>
    %c0_6 = arith.constant 0 : index
    %c0_7 = arith.constant 0 : index
    %8 = vector.load %arg5[%c0_6, %c0_7] : memref<1x1024xbf16, #tpu.memory_space<vmem>>, vector<1x1024xbf16>
    %9 = vector.broadcast %8 : vector<1x1024xbf16> to vector<128x1024xbf16>
    %10 = arith.addf %7, %9 : vector<128x1024xbf16>
    %cst_8 = arith.constant 0.000000e+00 : bf16
    %11 = vector.broadcast %cst_8 : bf16 to vector<128x1024xbf16>
    %12 = arith.maximumf %10, %11 : vector<128x1024xbf16>
    %c0_9 = arith.constant 0 : index
    %c0_10 = arith.constant 0 : index
    %13 = vector.load %arg6[%c0_9, %c0_10] : memref<1024x256xbf16, #tpu.memory_space<vmem>>, vector<1024x256xbf16>
    %cst_11 = arith.constant dense<0.000000e+00> : vector<128x256xf32>
    %14 = tpu.matmul %12, %13, %cst_11 {dimension_numbers = #tpu.dot_dimension_numbers<[1], [0], [0], [1], [0, 0, 1, 1], [], []>} : vector<128x1024xbf16>, vector<1024x256xbf16>, vector<128x256xf32> -> vector<128x256xf32>
    %15 = arith.addf %3, %14 : vector<128x256xf32>
    %c0_12 = arith.constant 0 : index
    %c0_13 = arith.constant 0 : index
    %16 = vector.load %arg7[%c0_12, %c0_13] : memref<128x256xf32, #tpu.memory_space<vmem>>, vector<128x256xf32>
    tpu.vector_store %arg7[%c0_12, %c0_13], %15 {strides = array<i32>} : memref<128x256xf32, #tpu.memory_space<vmem>>, vector<128x256xf32>,
    return
  }
  func.func @transform_0(%arg0: i32, %arg1: i32) -> (i32, i32) {
    %c0_i32 = arith.constant 0 : i32
    %c0_i32_0 = arith.constant 0 : i32
    return %arg0, %c0_i32 : i32, i32
  }
  func.func @transform_1(%arg0: i32, %arg1: i32) -> (i32, i32) {
    %c0_i32 = arith.constant 0 : i32
    %c0_i32_0 = arith.constant 0 : i32
    %c0_i32_1 = arith.constant 0 : i32
    return %c0_i32, %c0_i32_0 : i32, i32
  }
  func.func @transform_2(%arg0: i32, %arg1: i32) -> (i32, i32) {
    %c0_i32 = arith.constant 0 : i32
    %c0_i32_0 = arith.constant 0 : i32
    %c0_i32_1 = arith.constant 0 : i32
    return %c0_i32, %c0_i32_0 : i32, i32
  }
  func.func @transform_3(%arg0: i32, %arg1: i32) -> (i32, i32) {
    %c0_i32 = arith.constant 0 : i32
    %c0_i32_0 = arith.constant 0 : i32
    %c0_i32_1 = arith.constant 0 : i32
    return %c0_i32, %c0_i32_0 : i32, i32
  }
  func.func @transform_4(%arg0: i32, %arg1: i32) -> (i32, i32) {
    %c0_i32 = arith.constant 0 : i32
    %c0_i32_0 = arith.constant 0 : i32
    %c0_i32_1 = arith.constant 0 : i32
    return %c0_i32, %c0_i32_0 : i32, i32
  }
  func.func @transform_5(%arg0: i32, %arg1: i32) -> (i32, i32) {
    %c0_i32 = arith.constant 0 : i32
    %c0_i32_0 = arith.constant 0 : i32
    return %arg0, %c0_i32 : i32, i32
  }
}

</mosaic_0001>

<bundles_post_ra>
// kernel: tpu_custom_call.1
= control target key start
LH: loop header
LB: loop body
LE: loop exit
PB: predicated region body
PF: predicated region fallthrough
CT: control target
= control target key end

     0   :  { %s5871_s0 = inlined_call_operand.hbm [shape: f32[256,256], index: 0, kind: input, shape index: {}]   ;;  %s5872_s1 = inlined_call_operand.hbm [shape: f32[3,256], index: 1, kind: input, shape index: {}]   ;;  %s5873_s2 = inlined_call_operand.hbm [shape: bf16[256,1024], index: 2, kind: input, shape index: {}]   ;;  %s5874_s3 = inlined_call_operand.vmem [shape: bf16[1,1024], index: 3, kind: input, shape index: {}]   ;;  %s5875_s4 = inlined_call_operand.hbm [shape: bf16[1024,256], index: 4, kind: input, shape index: {}]   ;;  %s5876_s5 = inlined_call_operand.hbm [shape: f32[256,256], index: 5, kind: output, shape index: {}]  }
   0x1   :  { %5881 = sst [smem:[#allocation16_spill]] %s5872_s1 }
   0x2   :  { %10 = vsyncpa [#allocation4], 0 }
   0x3   :  { %12 = vsyncpa [#allocation4 + $0x1], 0 }
   0x4   :  { %13 = vsyncpa [#allocation7], 0 }
   0x5   :  { %14 = vsyncpa [#allocation10], 0 }
   0x6   :  { %15 = vsyncpa [#allocation5], 0 }
   0x7   :  { %17 = vsyncpa [#allocation5 + $0x1], 0  ;;  %s4771_s18 = smov 0   ;;  %s4773_s19 = smov 0  }
   0x8   :  { %s4775_s20 = smov 0   ;;  %s4777_s21 = smov 0  }
   0x9   :  { %s4779_s22 = smov 0   ;;  %s4781_s23 = smov 0  }
   0xa LB: > { %s3813_s24 = sadd.s32 4294967295, %s4724_s23   ;;  %s3814_s25 = sadd.s32 4294967294, %s4724_s23   ;;  %s4724_s23 = sphi %s4781_s23, %s23_s23   ;;  %s4720_s22 = sphi %s4779_s22, %s5902_s22   ;;  %s4716_s21 = sphi %s4777_s21, %s5901_s21   ;;  %s4712_s20 = sphi %s4775_s20, %s5900_s20   ;;  %s4708_s19 = sphi %s4773_s19, %s5899_s19   ;;  %s4704_s18 = sphi %s4771_s18, %s5898_s18  }
   0xb   : > { %p55_p0 = scmp.ne.s32.totalorder %s4708_s19, %s4704_s18  ;;  %p4805_p1 = scmp.eq.s32.totalorder %s3813_s24, 0 }
   0xc   : > { %p4809_p2 = scmp.eq.s32.totalorder %s3813_s24, 1  ;;  %p169_p3 = scmp.eq.s32.totalorder %s3814_s25, 1 }
   0xd   : > { %s5882_s26 = scalar_select %p4805_p1, 1, 0 }
   0xe   : > { %s5883_s27 = scalar_select %p4809_p2, 1, 0 }
   0xf   : > { %p4815_p4 = por %p4805_p1, %p55_p0  ;;  %p3815_p5 = scmp.ge.s32.totalorder %s4724_s23, 1 }
  0x10   : > { %p4820_p6 = por %p169_p3, %p55_p0  ;;  %p176_p7 = scmp.lt.s32.totalorder %s4724_s23, 3 }
  0x11   : > { %s5884_s28 = scalar_select %p4815_p4, 1, 0 }
  0x12   : > { %s5885_s29 = scalar_select %p4820_p6, 1, 0 }
  0x13   : > { %p4825_p8 = pnand %p3815_p5, %p176_p7  ;;  %s4726_s6 = smov [#allocation6]  }
  0x14   : > { %s189_s7 = sshll.u32 %s4726_s6, 4  ;;  %s4727_s8 = smov [#allocation8]   ;;  %s190_s7 = int_to_ptr.vmem [resolvable:$true] %s189_s7 }
  0x15   : > { %s5886_s30 = scalar_select %p4825_p8, 1, 0 }
  0x16   : > { %p4208_p10 = pneg %p4825_p8  ;;  %s199_s9 = sshll.u32 %s4727_s8, 4  ;;  %s4838_s9 = int_to_ptr.vmem [resolvable:$true] %s199_s9 }
  0x17   : > { %s4728_s11 = smov [#allocation9]   ;;  %s5888_s1 = sld [smem:[#allocation16_spill]] }
  0x18   : > { %p4834_p11 = pnand %p4208_p10, %p4805_p1  ;;  %s4840_s12 = sshll.u32 %s4728_s11, 4  ;;  %s216_s12 = int_to_ptr.vmem [resolvable:$true] %s4840_s12 }
  0x1a   : > { %p4850_p13 = pneg %p4834_p11 }
  0x1d   : > { %s4520_s15 = scalar_lea.hbm %s5888_s1, 128 }
  0x1e   : > { %p4521_p12 = scmp.ne.s32.totalorder %s5888_s1, %s4520_s15  ;;  %p4527_p5 = scmp.lt.u32.totalorder %s4520_s15, %s5888_s1 }
  0x20   : > { %p4523_p0 = pnand %p4850_p13, %p4521_p12 }
  0x22   : > { %p4524_p3 = pneg %p4523_p0 }
  0x24   : > { %p4529_p7 = pnand %p4527_p5, %p4524_p3 }
  0x26   : > { %4532 = shalt.err (!%p4529_p7)
}
  0x27   : > { %s4533_s8 = scalar_lea.vmem %s190_s7, 128  ;;  %p4541_p1 = scmp.lt.s32.totalorder %s190_s7, %s190_s7 }
  0x28   : > { %p4534_p10 = scmp.ne.s32.totalorder %s190_s7, %s4533_s8  ;;  %p4542_p4 = scmp.lt.s32.totalorder %s4533_s8, %s4533_s8 }
  0x2a   : > { %p4536_p9 = pnand %p4534_p10, %p4850_p13  ;;  %p4543_p8 = por %p4542_p4, %p4541_p1 }
  0x2c   : > { %p4537_p6 = pneg %p4536_p9 }
  0x2e   : > { %p4544_p2 = pnand %p4543_p8, %p4537_p6 }
  0x30   : > { %4547 = shalt.err (!%p4544_p2)
}
  0x31   : > { %4211 = dma.hbm_to_vmem [thread:$0]  (!%p4834_p11), %s5888_s1, 128, %s190_s7, [#allocation7]  }
  0x32   : > { %s4548_s16 = scalar_lea.hbm %s5873_s2, 16384 }
  0x33   : > { %p4549_p9 = scmp.ne.s32.totalorder %s5873_s2, %s4548_s16  ;;  %p4555_p2 = scmp.lt.u32.totalorder %s4548_s16, %s5873_s2 }
  0x35   : > { %p4551_p12 = pnand %p4549_p9, %p4850_p13 }
  0x37   : > { %p4552_p1 = pneg %p4551_p12 }
  0x39   : > { %p4557_p4 = pnand %p4555_p2, %p4552_p1 }
  0x3b   : > { %4560 = shalt.err (!%p4557_p4)
}
  0x3c   : > { %s4561_s7 = scalar_lea.vmem %s4838_s9, 16384  ;;  %p4569_p3 = scmp.lt.s32.totalorder %s4838_s9, %s4838_s9 }
  0x3d   : > { %p4562_p6 = scmp.ne.s32.totalorder %s4838_s9, %s4561_s7  ;;  %p4570_p5 = scmp.lt.s32.totalorder %s4561_s7, %s4561_s7 }
  0x3f   : > { %p4564_p8 = pnand %p4562_p6, %p4850_p13  ;;  %p4571_p7 = por %p4570_p5, %p4569_p3 }
  0x41   : > { %p4565_p0 = pneg %p4564_p8 }
  0x43   : > { %p4572_p10 = pnand %p4571_p7, %p4565_p0 }
  0x45   : > { %4575 = shalt.err (!%p4572_p10)
}
  0x46   : > { %s4729_s11 = smov 512   ;;  %s4730_s13 = smov 32  }
  0x47   : > { %4214 = dma.hbm_to_vmem [thread:$0]  (!%p4834_p11), %s5873_s2, 16384, %s4838_s9, [#allocation7], %s4729_s11, %s4729_s11, %s4730_s13  }
  0x48   : > { %s4576_s25 = scalar_lea.hbm %s5875_s4, 16384 }
  0x49   : > { %p4577_p9 = scmp.ne.s32.totalorder %s5875_s4, %s4576_s25  ;;  %p4583_p2 = scmp.lt.u32.totalorder %s4576_s25, %s5875_s4 }
  0x4b   : > { %p4579_p12 = pnand %p4577_p9, %p4850_p13 }
  0x4d   : > { %p4580_p1 = pneg %p4579_p12 }
  0x4f   : > { %p4585_p4 = pnand %p4583_p2, %p4580_p1 }
  0x51   : > { %4588 = shalt.err (!%p4585_p4)
}
  0x52   : > { %s4589_s14 = scalar_lea.vmem %s216_s12, 16384  ;;  %p4597_p3 = scmp.lt.s32.totalorder %s216_s12, %s216_s12 }
  0x53   : > { %p4590_p6 = scmp.ne.s32.totalorder %s216_s12, %s4589_s14  ;;  %p4598_p5 = scmp.lt.s32.totalorder %s4589_s14, %s4589_s14 }
  0x55   : > { %p4592_p8 = pnand %p4590_p6, %p4850_p13  ;;  %p4599_p7 = por %p4598_p5, %p4597_p3 }
  0x57   : > { %p4593_p0 = pneg %p4592_p8 }
  0x59   : > { %p4600_p10 = pnand %p4599_p7, %p4593_p0 }
  0x5b   : > { %4603 = shalt.err (!%p4600_p10)
}
  0x5c   : > { %s4731_s9 = smov 128   ;;  %s4732_s1 = smov 8  }
  0x5d   : > { %4217 = dma.hbm_to_vmem [thread:$0]  (!%p4834_p11), %s5875_s4, 16384, %s216_s12, [#allocation10], %s4731_s9, %s4731_s9, %s4732_s1  }
  0x5e   : > { %s42_s13 = sadd.s32 1, %s4712_s20  ;;  %s35_s15 = sadd.s32 1, %s4720_s22 }
  0x5f   : > { %p49_p13 = scmp.ne.s32.totalorder %s4712_s20, %s4708_s19  ;;  %p37_p9 = scmp.ge.s32.totalorder %s35_s15, 2 }
  0x60   : > { %p50_p12 = scmp.eq.s32.totalorder %s4724_s23, 0  ;;  %p5890_p1 = scmp.ne.s32.totalorder %s5883_s27, 0 }
  0x61   : > { %p4229_p4 = scmp.lt.s32.totalorder %s4724_s23, 2  ;;  %s5904_s15 = smov (%p37_p9, %s35_s15), 0 }
  0x62   : > { %p4915_p2 = por %p5890_p1, %p49_p13  ;;  %p51_p6 = por %p50_p12, %p49_p13 }
  0x63   : > { %s229_s10 = sand.u32 1, %s4712_s20   ;;  %s39_s17 = ssub.s32 %s4720_s22, %s5904_s15 }
  0x64   : > { %p40_p8 = scmp.eq.s32.totalorder %s39_s17, 0  ;;  %s3820_s12 = sshll.u32 %s229_s10, 8 }
  0x65   : > { %s4093_s25 = sshll.u32 %s4720_s22, 12  ;;  %s233_s14 = scalar_lea.vmem [#allocation3], %s3820_s12 }
  0x66   : > { %s4927_s6 = scalar_select %p40_p8, %s4712_s20, %s42_s13  }
  0x67   : > { %s4932_s27 = scalar_lea.hbm %s5871_s0, %s4093_s25  ;;  %s241_s9 = sshll.u32 %s233_s14, 4  ;;  %s4934_s9 = int_to_ptr.vmem [resolvable:$true] %s241_s9 }
  0x68   : > { %p4938_p11 = pnand %p4229_p4, %p51_p6  ;;  %s4942_s24 = scalar_lea.sflag [#allocation4], %s229_s10 }
  0x69   : > { %s4604_s11 = scalar_lea.hbm %s4932_s27, 4096  ;;  %s4609_s12 = scalar_lea.hbm %s5871_s0, 8192 }
  0x6a   : > { %p4605_p0 = scmp.ne.s32.totalorder %s4932_s27, %s4604_s11  ;;  %p4606_p3 = pneg %p4938_p11 }
  0x6b   : > { %p4610_p10 = scmp.lt.u32.totalorder %s4932_s27, %s5871_s0  ;;  %p4611_p13 = scmp.lt.u32.totalorder %s4609_s12, %s4604_s11 }
  0x6c   : > { %p4607_p5 = pnand %p4606_p3, %p4605_p0  ;;  %p4613_p12 = scmp.lt.u32.totalorder %s4604_s11, %s4932_s27 }
  0x6d   : > { %p4612_p9 = por %p4611_p13, %p4610_p10 }
  0x6e   : > { %p4608_p7 = pneg %p4607_p5 }
  0x6f   : > { %p4614_p1 = por %p4613_p12, %p4612_p9 }
  0x71   : > { %p4615_p4 = pnand %p4614_p1, %p4608_p7 }
  0x73   : > { %4618 = shalt.err (!%p4615_p4)
}
  0x74   : > { %s4619_s10 = scalar_lea.vmem %s4934_s9, 4096  ;;  %s4733_s7 = smov [#allocation3]  }
  0x75   : > { %p4620_p6 = scmp.ne.s32.totalorder %s4934_s9, %s4619_s10  ;;  %s4624_s14 = sshll.u32 %s4733_s7, 4  ;;  %s4625_s14 = int_to_ptr.vmem [resolvable:$false] %s4624_s14 }
  0x76   : > { %s4626_s13 = scalar_lea.vmem %s4625_s14, 8192  ;;  %p4627_p5 = scmp.lt.s32.totalorder %s4934_s9, %s4625_s14 }
  0x77   : > { %p4622_p8 = pnand %p4620_p6, %p4606_p3  ;;  %p4628_p10 = scmp.lt.s32.totalorder %s4626_s13, %s4619_s10 }
  0x79   : > { %p4623_p0 = pneg %p4622_p8  ;;  %p4629_p13 = por %p4628_p10, %p4627_p5 }
  0x7b   : > { %p4630_p9 = pnand %p4629_p13, %p4623_p0 }
  0x7d   : > { %4633 = shalt.err (!%p4630_p9)
}
  0x7e   : > { %s4734_s11 = smov 256   ;;  %s4735_s17 = smov 16  }
  0x7f   : > { %4221 = dma.hbm_to_vmem [thread:$0]  (!%p4938_p11), %s4932_s27, 4096, %s4934_s9, %s4942_s24, %s4734_s11, %s4734_s11, %s4735_s17  }
  0x80   : > { %p5893_p3 = scmp.ne.s32.totalorder %s5886_s30, 0 }
  0x81   : > { %s4973_s12 = sand.u32 (!%p5893_p3), 1, %s4708_s19   ;;  %p5894_p7 = scmp.ne.s32.totalorder (!%p5893_p3), %s5884_s28, 0 }
  0x82   : > { %253 = sbr.rel (%p5893_p3) target bundleno = 1168 (0x490), region = 40  ;;  %s3825_s25 = sshll.u32 (!%p5893_p3), %s4973_s12, 8 }
  0x83   : > { %s256_s8 = scalar_lea.sflag (!%p5893_p3), [#allocation4], %s4973_s12  ;;  %s4979_s10 = scalar_lea.vmem (!%p5893_p3), [#allocation3], %s3825_s25 }
  0x89   : > { %4687 = dma.done.wait (%p5894_p7), %s256_s8, 4096  }
  0x8a   : > { %4689 = vsyncadd (%p5894_p7), %s256_s8, 4294963200  ;;  %p5895_p11 = scmp.ne.s32.totalorder %s5882_s26, 0 }
  0x8c   : > { %4691 = dma.done.wait (%p5895_p11), [#allocation7], 16512  }
  0x8d   : > { %4693 = vsyncadd (%p5895_p11), [#allocation7], 4294950784 }
  0x8e   : > { %4695 = dma.done.wait (%p5895_p11), [#allocation10], 16384  }
  0x8f   : > { %4697 = vsyncadd (%p5895_p11), [#allocation10], 4294950912  ;;  %v4994_v0 = vld [vmem:[%s4979_s10] sm:$0xff]  ;;  %v4997_v1 = vld [vmem:[%s4979_s10 + $0x8] sm:$0xff]  ;;  %s5726_s30 = scalar_lea.vmem [#allocation11], %s3825_s25  ;;  %s4095_s27 = sshll.u32 %s4716_s21, 12 }
  0x90   : > { %v5000_v2 = vld [vmem:[%s4979_s10 + $0x20] sm:$0xff]  ;;  %v338_v3 = vadd.f32 %v4997_v1, %v4994_v0  ;;  %v5005_v4 = vld [vmem:[%s4979_s10 + $0x28] sm:$0xff]  ;;  %v5008_v5 = vld [vmem:[%s4979_s10 + $0x10] sm:$0xff]  ;;  %s3703_s9 = sshll.u32 %s5726_s30, 4  ;;  %s5817_s7 = scalar_lea.hbm %s5876_s5, %s4095_s27  ;;  %s5819_s9 = int_to_ptr.vmem [resolvable:$true] %s3703_s9 }
  0x91   : > { %v5011_v6 = vld [vmem:[%s4979_s10 + $0x18] sm:$0xff]  ;;  %v344_v7 = vadd.f32 %v5005_v4, %v5000_v2  ;;  %v5016_v8 = vld [vmem:[%s4979_s10 + $0x30] sm:$0xff]  ;;  %v5026_v12 = vld [vmem:[%s4979_s10 + $0x40] sm:$0xff]  ;;  %s3689_s21 = scalar_lea.sflag [#allocation5], %s4973_s12  ;;  %s4634_s14 = scalar_lea.vmem %s5819_s9, 4096 }
  0x92   : > { %v5019_v9 = vld [vmem:[%s4979_s10 + $0x38] sm:$0xff]  ;;  %339 = vadd.xlane.f32.xlu0 %v338_v3  ;;  %v341_v10 = vadd.f32 %v5011_v6, %v5008_v5  ;;  %v5029_v13 = vld [vmem:[%s4979_s10 + $0x48] sm:$0xff]  ;;  %v5032_v14 = vld [vmem:[%s4979_s10 + $0x50] sm:$0xff]  ;;  %p4635_p12 = scmp.ne.s32.totalorder %s5819_s9, %s4634_s14  ;;  %s4738_s13 = smov [#allocation11]  }
  0x93   : > { %345 = vadd.xlane.f32.xlu1 %v344_v7  ;;  %v347_v11 = vadd.f32 %v5019_v9, %v5016_v8  ;;  %v5035_v15 = vld [vmem:[%s4979_s10 + $0x58] sm:$0xff]  ;;  %v350_v16 = vadd.f32 %v5029_v13, %v5026_v12  ;;  %v5042_v18 = vld [vmem:[%s4979_s10 + $0x60] sm:$0xff]  ;;  %v5045_v19 = vld [vmem:[%s4979_s10 + $0x68] sm:$0xff]  ;;  %s4638_s11 = sshll.u32 %s4738_s13, 4  ;;  %s4639_s11 = int_to_ptr.vmem [resolvable:$false] %s4638_s11 }
  0x94   : > { %v353_v17 = vadd.f32 %v5035_v15, %v5032_v14  ;;  %v5048_v20 = vld [vmem:[%s4979_s10 + $0x70] sm:$0xff]  ;;  %v5051_v21 = vld [vmem:[%s4979_s10 + $0x78] sm:$0xff]  ;;  %v5054_v22 = vld [vmem:[%s4979_s10 + $0x80] sm:$0xff]  ;;  %v356_v24 = vadd.f32 %v5045_v19, %v5042_v18  ;;  %p4636_p1 = pnand %p4635_p12, %p4915_p2  ;;  %s4640_s17 = scalar_lea.vmem %s4639_s11, 8192 }
  0x95   : > { %v5057_v23 = vld [vmem:[%s4979_s10 + $0x88] sm:$0xff]  ;;  %v5062_v25 = vld [vmem:[%s4979_s10 + $0x90] sm:$0xff]  ;;  %v5065_v26 = vld [vmem:[%s4979_s10 + $0x98] sm:$0xff]  ;;  %v359_v27 = vadd.f32 %v5051_v21, %v5048_v20  ;;  %p4641_p6 = scmp.lt.s32.totalorder %s5819_s9, %s4639_s11  ;;  %p4642_p8 = scmp.lt.s32.totalorder %s4640_s17, %s4634_s14 }
  0x96   : > { %342 = vadd.xlane.f32.xlu0 %v341_v10  ;;  %v5070_v28 = vld [vmem:[%s4979_s10 + $0xa0] sm:$0xff]  ;;  %v5073_v29 = vld [vmem:[%s4979_s10 + $0xa8] sm:$0xff]  ;;  %v362_v30 = vadd.f32 %v5057_v23, %v5054_v22  ;;  %v5078_v31 = vld [vmem:[%s4979_s10 + $0xb0] sm:$0xff]  ;;  %v365_v33 = vadd.f32 %v5065_v26, %v5062_v25  ;;  %p4637_p4 = pneg %p4636_p1 }
  0x97   : > { %348 = vadd.xlane.f32.xlu1 %v347_v11  ;;  %v5081_v32 = vld [vmem:[%s4979_s10 + $0xb8] sm:$0xff]  ;;  %v5086_v34 = vld [vmem:[%s4979_s10 + $0xc0] sm:$0xff]  ;;  %v5089_v35 = vld [vmem:[%s4979_s10 + $0xc8] sm:$0xff]  ;;  %v368_v36 = vadd.f32 %v5073_v29, %v5070_v28  ;;  %p4643_p0 = por %p4642_p8, %p4641_p6 }
  0x98   : > { %v5094_v37 = vld [vmem:[%s4979_s10 + $0xd0] sm:$0xff]  ;;  %v5097_v38 = vld [vmem:[%s4979_s10 + $0xd8] sm:$0xff]  ;;  %v371_v39 = vadd.f32 %v5081_v32, %v5078_v31  ;;  %v5102_v40 = vld [vmem:[%s4979_s10 + $0xe0] sm:$0xff]  ;;  %v374_v42 = vadd.f32 %v5089_v35, %v5086_v34 }
  0x99   : > { %v5105_v41 = vld [vmem:[%s4979_s10 + $0xe8] sm:$0xff]  ;;  %v5110_v43 = vld [vmem:[%s4979_s10 + $0xf0] sm:$0xff]  ;;  %v5113_v44 = vld [vmem:[%s4979_s10 + $0xf8] sm:$0xff]  ;;  %v377_v45 = vadd.f32 %v5097_v38, %v5094_v37  ;;  %p4644_p5 = pnand %p4643_p0, %p4637_p4 }
  0x9a   : > { %351 = vadd.xlane.f32.xlu0 %v350_v16  ;;  %v380_v46 = vadd.f32 %v5105_v41, %v5102_v40  ;;  %v383_v47 = vadd.f32 %v5113_v44, %v5110_v43  ;;  %v885_v48 = vld [vmem:[#allocation8] sm:$0xff] }
  0x9b   : > { %354 = vadd.xlane.f32.xlu1 %v353_v17  ;;  %v889_v49 = vld [vmem:[#allocation8 + $0x20] sm:$0xff] }
  0x9c   : > { %v893_v50 = vld [vmem:[#allocation8 + $0x40] sm:$0xff]  ;;  %v3831_v51 = vcombine.high %v885_v48, %v889_v49  ;;  %v3830_v52 = vcombine.low %v885_v48, %v889_v49 }
  0x9d   : > { %v897_v53 = vld [vmem:[#allocation8 + $0x60] sm:$0xff] }
  0x9e   : > { %357 = vadd.xlane.f32.xlu0 %v356_v24  ;;  %v3839_v54 = vcombine.high %v893_v50, %v897_v53  ;;  %v901_v55 = vld [vmem:[#allocation8 + $0x80] sm:$0xff]  ;;  %1653 = vmatprep.subr.bf16.mxu1 %v3831_v51  ;;  %v3838_v57 = vcombine.low %v893_v50, %v897_v53 }
  0x9f   : > { %360 = vadd.xlane.f32.xlu1 %v359_v27  ;;  %v905_v56 = vld [vmem:[#allocation8 + $0xa0] sm:$0xff]  ;;  %1654 = vmatpush1.bf16.msra.mxu1 %v3830_v52 }
  0xa0   : > { %1655 = vmatprep.subr.bf16.mxu1 %v3839_v54  ;;  %v3847_v58 = vcombine.high %v901_v55, %v905_v56  ;;  %v909_v59 = vld [vmem:[#allocation8 + $0xc0] sm:$0xff]  ;;  %v3846_v61 = vcombine.low %v901_v55, %v905_v56 }
  0xa1   : > { %v913_v60 = vld [vmem:[#allocation8 + $0xe0] sm:$0xff] }
  0xa2   : > { %363 = vadd.xlane.f32.xlu0 %v362_v30  ;;  %v3855_v62 = vcombine.high %v909_v59, %v913_v60  ;;  %v917_v63 = vld [vmem:[#allocation8 + $0x100] sm:$0xff]  ;;  %v3854_v7 = vcombine.low %v909_v59, %v913_v60 }
  0xa3   : > { %366 = vadd.xlane.f32.xlu1 %v365_v33  ;;  %1656 = vmatpush1.bf16.msra.mxu1 %v3838_v57  ;;  %v921_v3 = vld [vmem:[#allocation8 + $0x120] sm:$0xff] }
  0xa4   : > { %1657 = vmatprep.subr.bf16.mxu1 %v3847_v58  ;;  %v3863_v10 = vcombine.high %v917_v63, %v921_v3  ;;  %v925_v11 = vld [vmem:[#allocation8 + $0x140] sm:$0xff]  ;;  %v3862_v17 = vcombine.low %v917_v63, %v921_v3 }
  0xa5   : > { %v929_v16 = vld [vmem:[#allocation8 + $0x160] sm:$0xff] }
  0xa6   : > { %369 = vadd.xlane.f32.xlu0 %v368_v36  ;;  %v3871_v24 = vcombine.high %v925_v11, %v929_v16  ;;  %v933_v27 = vld [vmem:[#allocation8 + $0x180] sm:$0xff]  ;;  %v3870_v33 = vcombine.low %v925_v11, %v929_v16 }
  0xa7   : > { %372 = vadd.xlane.f32.xlu1 %v371_v39  ;;  %1658 = vmatpush1.bf16.msra.mxu1 %v3846_v61  ;;  %v937_v30 = vld [vmem:[#allocation8 + $0x1a0] sm:$0xff] }
  0xa8   : > { %1659 = vmatprep.subr.bf16.mxu1 %v3855_v62  ;;  %v3879_v36 = vcombine.high %v933_v27, %v937_v30  ;;  %v941_v39 = vld [vmem:[#allocation8 + $0x1c0] sm:$0xff] }
  0xa9   : > { %v953_v48 = vld [vmem:[#allocation8 + $0x220] sm:$0xff] }
  0xaa   : > { %375 = vadd.xlane.f32.xlu0 %v374_v42  ;;  %v945_v42 = vld [vmem:[#allocation8 + $0x1e0] sm:$0xff] }
  0xab   : > { %378 = vadd.xlane.f32.xlu1 %v377_v45  ;;  %1660 = vmatpush1.bf16.msra.mxu1 %v3854_v7  ;;  %v3878_v45 = vcombine.low %v933_v27, %v937_v30  ;;  %v3886_v49 = vcombine.low %v941_v39, %v945_v42  ;;  %v5121_v51 = vld [vmem:[#allocation8 + $0x240] sm:$0xff] }
  0xac   : > { %1661 = vmatprep.subr.bf16.mxu1 %v3863_v10  ;;  %v5123_v52 = vld [vmem:[#allocation8 + $0x260] sm:$0xff] }
  0xad   : > { %v3903_v54 = vcombine.high %v5121_v51, %v5123_v52 }
  0xae   : > { %381 = vadd.xlane.f32.xlu0 %v380_v46  ;;  %v3887_v46 = vcombine.high %v941_v39, %v945_v42 }
  0xaf   : > { %384 = vadd.xlane.f32.xlu1 %v383_v47  ;;  %1662 = vmatpush1.bf16.msra.mxu1 %v3862_v17  ;;  %v949_v47 = vld [vmem:[#allocation8 + $0x200] sm:$0xff] }
  0xb0   : > { %1663 = vmatprep.subr.bf16.mxu1 %v3871_v24  ;;  %v3895_v50 = vcombine.high %v949_v47, %v953_v48  ;;  %v3894_v53 = vcombine.low %v949_v47, %v953_v48 }
  0xb3   : > { %1664 = vmatpush1.bf16.msra.mxu1 %v3870_v33 }
  0xb4   : > { %1665 = vmatprep.subr.bf16.mxu1 %v3879_v36 }
  0xb7   : > { %1666 = vmatpush1.bf16.msra.mxu1 %v3878_v45 }
  0xb8   : > { %1667 = vmatprep.subr.bf16.mxu1 %v3887_v46 }
  0xbb   : > { %1668 = vmatpush1.bf16.msra.mxu1 %v3886_v49 }
  0xbc   : > { %1669 = vmatprep.subr.bf16.mxu1 %v3895_v50 }
  0xbf   : > { %1670 = vmatpush1.bf16.msra.mxu1 %v3894_v53 }
  0xc0   : > { %1671 = vmatprep.subr.bf16.mxu1 %v3903_v54 }
 0x11f   : > { %v340_v55 = vpop.xlane.xlu0 %339 }
 0x120   : > { %v387_v56 = vmul.f32 0.00390625, %v340_v55  ;;  %v346_v57 = vpop.xlane.xlu1 %345 }
 0x121   : > { %v389_v58 = vmul.f32 0.00390625, %v346_v57 }
 0x122   : > { %v5128_v59 = vsub.f32 %v4994_v0, %v387_v56  ;;  %v5131_v60 = vsub.f32 %v4997_v1, %v387_v56 }
 0x123   : > { %v5134_v61 = vsub.f32 %v5000_v2, %v389_v58  ;;  %v5137_v62 = vsub.f32 %v5005_v4, %v389_v58  ;;  %v343_v63 = vpop.xlane.xlu0 %342 }
 0x124   : > { %v388_v3 = vmul.f32 0.00390625, %v343_v63  ;;  %v349_v7 = vpop.xlane.xlu1 %348  ;;  %v435_v10 = vmul.f32 %v5128_v59, %v5128_v59  ;;  %v436_v11 = vmul.f32 %v5131_v60, %v5131_v60 }
 0x125   : > { %v390_v0 = vmul.f32 0.00390625, %v349_v7  ;;  %v439_v1 = vmul.f32 %v5134_v61, %v5134_v61  ;;  %v440_v2 = vmul.f32 %v5137_v62, %v5137_v62 }
 0x126   : > { %v5148_v16 = vsub.f32 %v5008_v5, %v388_v3  ;;  %v5151_v4 = vsub.f32 %v5011_v6, %v388_v3  ;;  %v467_v17 = vadd.f32 %v436_v11, %v435_v10 }
 0x127   : > { %v5154_v24 = vsub.f32 %v5016_v8, %v390_v0  ;;  %v5157_v27 = vsub.f32 %v5019_v9, %v390_v0  ;;  %v352_v30 = vpop.xlane.xlu0 %351  ;;  %v473_v39 = vadd.f32 %v440_v2, %v439_v1 }
 0x128   : > { %v391_v33 = vmul.f32 0.00390625, %v352_v30  ;;  %468 = vadd.xlane.f32.xlu0 %v467_v17  ;;  %v355_v36 = vpop.xlane.xlu1 %354  ;;  %v437_v42 = vmul.f32 %v5148_v16, %v5148_v16  ;;  %v438_v5 = vmul.f32 %v5151_v4, %v5151_v4 }
 0x129   : > { %v392_v6 = vmul.f32 0.00390625, %v355_v36  ;;  %v441_v45 = vmul.f32 %v5154_v24, %v5154_v24  ;;  %v442_v8 = vmul.f32 %v5157_v27, %v5157_v27 }
 0x12a   : > { %v5168_v9 = vsub.f32 %v5026_v12, %v391_v33  ;;  %v5171_v46 = vsub.f32 %v5029_v13, %v391_v33  ;;  %v470_v47 = vadd.f32 %v438_v5, %v437_v42 }
 0x12b   : > { %v5174_v48 = vsub.f32 %v5032_v14, %v392_v6  ;;  %v5177_v49 = vsub.f32 %v5035_v15, %v392_v6  ;;  %v358_v50 = vpop.xlane.xlu0 %357  ;;  %v476_v55 = vadd.f32 %v442_v8, %v441_v45 }
 0x12c   : > { %v393_v53 = vmul.f32 0.00390625, %v358_v50  ;;  %474 = vadd.xlane.f32.xlu0 %v473_v39  ;;  %471 = vadd.xlane.f32.xlu1 %v470_v47  ;;  %v361_v54 = vpop.xlane.xlu1 %360  ;;  %v443_v12 = vmul.f32 %v5168_v9, %v5168_v9  ;;  %v444_v13 = vmul.f32 %v5171_v46, %v5171_v46  ;;  %v3902_v47 = vcombine.low %v5121_v51, %v5123_v52 }
 0x12d   : > { %v394_v56 = vmul.f32 0.00390625, %v361_v54  ;;  %v445_v14 = vmul.f32 %v5174_v48, %v5174_v48  ;;  %v446_v15 = vmul.f32 %v5177_v49, %v5177_v49 }
 0x12e   : > { %v5188_v57 = vsub.f32 %v5042_v18, %v393_v53  ;;  %v5191_v58 = vsub.f32 %v5045_v19, %v393_v53  ;;  %v479_v63 = vadd.f32 %v444_v13, %v443_v12  ;;  %1672 = vmatpush1.bf16.msra.mxu1 %v3902_v47 }
 0x12f   : > { %v5194_v3 = vsub.f32 %v5048_v20, %v394_v56  ;;  %v5197_v7 = vsub.f32 %v5051_v21, %v394_v56  ;;  %v364_v10 = vpop.xlane.xlu0 %363  ;;  %v482_v1 = vadd.f32 %v446_v15, %v445_v14  ;;  %v965_v14 = vld [vmem:[#allocation8 + $0x280] sm:$0xff] }
 0x130   : > { %v395_v11 = vmul.f32 0.00390625, %v364_v10  ;;  %477 = vadd.xlane.f32.xlu1 %v476_v55  ;;  %480 = vadd.xlane.f32.xlu0 %v479_v63  ;;  %v367_v0 = vpop.xlane.xlu1 %366  ;;  %v447_v18 = vmul.f32 %v5188_v57, %v5188_v57  ;;  %v448_v19 = vmul.f32 %v5191_v58, %v5191_v58  ;;  %v969_v15 = vld [vmem:[#allocation8 + $0x2a0] sm:$0xff] }
 0x131   : > { %v396_v2 = vmul.f32 0.00390625, %v367_v0  ;;  %v449_v20 = vmul.f32 %v5194_v3, %v5194_v3  ;;  %v450_v21 = vmul.f32 %v5197_v7, %v5197_v7 }
 0x132   : > { %v5208_v17 = vsub.f32 %v5054_v22, %v395_v11  ;;  %v5211_v30 = vsub.f32 %v5057_v23, %v395_v11  ;;  %v485_v33 = vadd.f32 %v448_v19, %v447_v18  ;;  %v3910_v18 = vcombine.low %v965_v14, %v969_v15 }
 0x133   : > { %v5214_v36 = vsub.f32 %v5062_v25, %v396_v2  ;;  %v5217_v39 = vsub.f32 %v5065_v26, %v396_v2  ;;  %v370_v42 = vpop.xlane.xlu0 %369  ;;  %v488_v45 = vadd.f32 %v450_v21, %v449_v20 }
 0x134   : > { %v397_v5 = vmul.f32 0.00390625, %v370_v42  ;;  %483 = vadd.xlane.f32.xlu1 %v482_v1  ;;  %486 = vadd.xlane.f32.xlu0 %v485_v33  ;;  %v373_v6 = vpop.xlane.xlu1 %372  ;;  %v451_v22 = vmul.f32 %v5208_v17, %v5208_v17  ;;  %v452_v23 = vmul.f32 %v5211_v30, %v5211_v30 }
 0x135   : > { %v398_v8 = vmul.f32 0.00390625, %v373_v6  ;;  %v453_v25 = vmul.f32 %v5214_v36, %v5214_v36  ;;  %v454_v26 = vmul.f32 %v5217_v39, %v5217_v39  ;;  %v977_v6 = vld [vmem:[#allocation8 + $0x2e0] sm:$0xff] }
 0x136   : > { %v5230_v50 = vsub.f32 %v5070_v28, %v397_v5  ;;  %v5233_v53 = vsub.f32 %v5073_v29, %v397_v5  ;;  %v491_v54 = vadd.f32 %v452_v23, %v451_v22  ;;  %v973_v5 = vld [vmem:[#allocation8 + $0x2c0] sm:$0xff] }
 0x137   : > { %v5236_v55 = vsub.f32 %v5078_v31, %v398_v8  ;;  %v5239_v12 = vsub.f32 %v5081_v32, %v398_v8  ;;  %v376_v13 = vpop.xlane.xlu0 %375  ;;  %v494_v56 = vadd.f32 %v454_v26, %v453_v25  ;;  %v3911_v31 = vcombine.high %v965_v14, %v969_v15  ;;  %v985_v14 = vld [vmem:[#allocation8 + $0x320] sm:$0xff] }
 0x138   : > { %v399_v63 = vmul.f32 0.00390625, %v376_v13  ;;  %489 = vadd.xlane.f32.xlu1 %v488_v45  ;;  %492 = vadd.xlane.f32.xlu0 %v491_v54  ;;  %v379_v28 = vpop.xlane.xlu1 %378  ;;  %v455_v29 = vmul.f32 %v5230_v50, %v5230_v50  ;;  %v456_v51 = vmul.f32 %v5233_v53, %v5233_v53  ;;  %v3919_v22 = vcombine.high %v973_v5, %v977_v6 }
 0x139   : > { %v400_v52 = vmul.f32 0.00390625, %v379_v28  ;;  %v457_v32 = vmul.f32 %v5236_v55, %v5236_v55  ;;  %v458_v10 = vmul.f32 %v5239_v12, %v5239_v12  ;;  %1673 = vmatprep.subr.bf16.mxu1 %v3911_v31  ;;  %v3918_v26 = vcombine.low %v973_v5, %v977_v6  ;;  %v993_v31 = vld [vmem:[#allocation8 + $0x360] sm:$0xff]  ;;  %v5291_v5 = vld [vmem:[#allocation8 + $0x28] sm:$0xff] }
 0x13a   : > { %v5250_v11 = vsub.f32 %v5086_v34, %v399_v63  ;;  %v5253_v0 = vsub.f32 %v5089_v35, %v399_v63  ;;  %v497_v1 = vadd.f32 %v456_v51, %v455_v29  ;;  %1674 = vmatpush1.bf16.msra.mxu1 %v3910_v18  ;;  %v989_v51 = vld [vmem:[#allocation8 + $0x340] sm:$0xff] }
 0x13b   : > { %v5256_v19 = vsub.f32 %v5094_v37, %v400_v52  ;;  %v5259_v2 = vsub.f32 %v5097_v38, %v400_v52  ;;  %v382_v20 = vpop.xlane.xlu0 %381  ;;  %v500_v42 = vadd.f32 %v458_v10, %v457_v32  ;;  %1675 = vmatprep.subr.bf16.mxu1 %v3919_v22  ;;  %v3935_v52 = vcombine.high %v989_v51, %v993_v31  ;;  %v997_v10 = vld [vmem:[#allocation8 + $0x380] sm:$0xff] }
 0x13c   : > { %v401_v21 = vmul.f32 0.00390625, %v382_v20  ;;  %495 = vadd.xlane.f32.xlu1 %v494_v56  ;;  %498 = vadd.xlane.f32.xlu0 %v497_v1  ;;  %v385_v33 = vpop.xlane.xlu1 %384  ;;  %v459_v34 = vmul.f32 %v5250_v11, %v5250_v11  ;;  %v460_v35 = vmul.f32 %v5253_v0, %v5253_v0  ;;  %v3934_v32 = vcombine.low %v989_v51, %v993_v31  ;;  %v1001_v1 = vld [vmem:[#allocation8 + $0x3a0] sm:$0xff]  ;;  %v337_v51 = vld [vmem:[#allocation6] sm:$0x77] }
 0x13d   : > { %v402_v45 = vmul.f32 0.00390625, %v385_v33  ;;  %v461_v37 = vmul.f32 %v5256_v19, %v5256_v19  ;;  %v462_v38 = vmul.f32 %v5259_v2, %v5259_v2  ;;  %v3943_v18 = vcombine.high %v997_v10, %v1001_v1  ;;  %v1009_v33 = vld [vmem:[#allocation8 + $0x3e0] sm:$0xff] }
 0x13e   : > { %v5270_v23 = vsub.f32 %v5102_v40, %v401_v21  ;;  %v5273_v8 = vsub.f32 %v5105_v41, %v401_v21  ;;  %v503_v25 = vadd.f32 %v460_v35, %v459_v34  ;;  %v981_v41 = vld [vmem:[#allocation8 + $0x300] sm:$0xff]  ;;  %1676 = vmatpush1.bf16.msra.mxu1 %v3918_v26  ;;  %v3942_v20 = vcombine.low %v997_v10, %v1001_v1  ;;  %v5289_v35 = vld [vmem:[#allocation8 + $0x8] sm:$0xff] }
 0x13f   : > { %v5276_v47 = vsub.f32 %v5110_v43, %v402_v45  ;;  %v5279_v54 = vsub.f32 %v5113_v44, %v402_v45  ;;  %v506_v13 = vadd.f32 %v462_v38, %v461_v37  ;;  %v3927_v44 = vcombine.high %v981_v41, %v985_v14  ;;  %v1005_v21 = vld [vmem:[#allocation8 + $0x3c0] sm:$0xff] }
 0x140   : > { %501 = vadd.xlane.f32.xlu1 %v500_v42  ;;  %504 = vadd.xlane.f32.xlu0 %v503_v25  ;;  %v463_v56 = vmul.f32 %v5270_v23, %v5270_v23  ;;  %v464_v40 = vmul.f32 %v5273_v8, %v5273_v8  ;;  %v3926_v28 = vcombine.low %v981_v41, %v985_v14  ;;  %v596_v38 = vlaneseq }
 0x141   : > { %v465_v15 = vmul.f32 %v5276_v47, %v5276_v47  ;;  %v466_v43 = vmul.f32 %v5279_v54, %v5279_v54  ;;  %1677 = vmatprep.subr.bf16.mxu1 %v3927_v44  ;;  %v3951_v42 = vcombine.high %v1005_v21, %v1009_v33  ;;  %v3950_v34 = vcombine.low %v1005_v21, %v1009_v33 }
 0x142   : > { %v509_v63 = vadd.f32 %v464_v40, %v463_v56  ;;  %1678 = vmatpush1.bf16.msra.mxu1 %v3926_v28  ;;  %v3833_v6 = vcombine.high %v5289_v35, %v5291_v5  ;;  %v3832_v45 = vcombine.low %v5289_v35, %v5291_v5  ;;  %v5297_v56 = vshrl.u32 %v596_v38, 7 }
 0x143   : > { %v512_v29 = vadd.f32 %v466_v43, %v465_v15  ;;  %1679 = vmatprep.subr.bf16.mxu1 %v3935_v52 }
 0x144   : > { %507 = vadd.xlane.f32.xlu1 %v506_v13  ;;  %510 = vadd.xlane.f32.xlu0 %v509_v63  ;;  %v602_v63 = vsub.s32 4, %v5297_v56  ;;  %v5301_v31 = vsub.s32 0, %v5297_v56  ;;  %v652_v10 = vsub.s32 5, %v5297_v56  ;;  %v5305_v21 = vsub.s32 1, %v5297_v56 }
 0x146   : > { %1680 = vmatpush1.bf16.msra.mxu1 %v3934_v32  ;;  %v653_v38 = vrot.slane %v337_v51, %v652_v10 }
 0x147   : > { %1681 = vmatprep.subr.bf16.mxu1 %v3943_v18 }
 0x148   : > { %513 = vadd.xlane.f32.xlu1 %v512_v29 }
 0x14a   : > { %1682 = vmatpush1.bf16.msra.mxu1 %v3942_v20  ;;  %v603_v20 = vrot.slane %v337_v51, %v602_v63 }
 0x14b   : > { %1683 = vmatprep.subr.bf16.mxu1 %v3951_v42  ;;  %v599_v42 = vrot.slane %v337_v51, %v5301_v31 }
 0x14e   : > { %1684 = vmatpush1.bf16.msra.mxu1 %v3950_v34 }
 0x14f   : > { %1766 = vmatprep.subr.bf16.mxu1 %v3833_v6 }
 0x1b5   : > { %v469_v37 = vpop.xlane.xlu0 %468 }
 0x1b6   : > { %v515_v22 = vmul.f32 0.00390625, %v469_v37 }
 0x1b8   : > { %v531_v25 = vadd.f32 1e-05, %v515_v22 }
 0x1b9   : > { %v472_v26 = vpop.xlane.xlu1 %471  ;;  %v475_v13 = vpop.xlane.xlu0 %474 }
 0x1ba   : > { %4488 = vrsqrt.f32 %v531_v25  ;;  %v516_v40 = vmul.f32 0.00390625, %v472_v26  ;;  %v517_v41 = vmul.f32 0.00390625, %v475_v13  ;;  %v5310_v26 = vrot.slane %v603_v20, %v5301_v31 }
 0x1bb   : > { %v649_v13 = vrot.slane %v337_v51, %v5305_v21 }
 0x1bc   : > { %v532_v14 = vadd.f32 1e-05, %v516_v40  ;;  %v533_v15 = vadd.f32 1e-05, %v517_v41 }
 0x1bd   : > { %v478_v43 = vpop.xlane.xlu1 %477  ;;  %v481_v44 = vpop.xlane.xlu0 %480 }
 0x1be   : > { %4490 = vrsqrt.f32 %v532_v14  ;;  %v518_v28 = vmul.f32 0.00390625, %v478_v43  ;;  %v519_v29 = vmul.f32 0.00390625, %v481_v44  ;;  %v5315_v14 = vrot.slane %v599_v42, %v5301_v31 }
 0x1bf   : > { %4492 = vrsqrt.f32 %v533_v15 }
 0x1c0   : > { %v534_v52 = vadd.f32 1e-05, %v518_v28  ;;  %v535_v32 = vadd.f32 1e-05, %v519_v29  ;;  %v5318_v28 = vrot.slane %v653_v38, %v5305_v21 }
 0x1c1   : > { %v484_v1 = vpop.xlane.xlu1 %483  ;;  %v487_v18 = vpop.xlane.xlu0 %486 }
 0x1c2   : > { %4494 = vrsqrt.f32 %v534_v52  ;;  %v520_v33 = vmul.f32 0.00390625, %v484_v1  ;;  %v521_v34 = vmul.f32 0.00390625, %v487_v18 }
 0x1c3   : > { %4496 = vrsqrt.f32 %v535_v32  ;;  %v5324_v32 = vrot.slane %v649_v13, %v5305_v21  ;;  %v898_v13 = vld [vmem:[#allocation8 + $0x68] sm:$0xff] }
 0x1c4   : > { %v4489_v6 = vpop.eup %4488  ;;  %v536_v37 = vadd.f32 1e-05, %v520_v33  ;;  %v537_v15 = vadd.f32 1e-05, %v521_v34 }
 0x1c5   : > { %v564_v22 = vmul.f32 %v4489_v6, %v5131_v60  ;;  %v490_v25 = vpop.xlane.xlu1 %489  ;;  %v563_v40 = vmul.f32 %v4489_v6, %v5128_v59  ;;  %v493_v43 = vpop.xlane.xlu0 %492 }
 0x1c6   : > { %4498 = vrsqrt.f32 %v536_v37  ;;  %v522_v41 = vmul.f32 0.00390625, %v490_v25  ;;  %v523_v10 = vmul.f32 0.00390625, %v493_v43  ;;  %v894_v25 = vld [vmem:[#allocation8 + $0x48] sm:$0xff] }
 0x1c7   : > { %v615_v59 = vmul.f32 %v5310_v26, %v564_v22  ;;  %v614_v18 = vmul.f32 %v5315_v14, %v563_v40 }
 0x1c8   : > { %v4491_v44 = vpop.eup %4490  ;;  %v538_v63 = vadd.f32 1e-05, %v522_v41  ;;  %v539_v40 = vadd.f32 1e-05, %v523_v10 }
 0x1c9   : > { %v4493_v60 = vpop.eup %4492  ;;  %v565_v29 = vmul.f32 %v4491_v44, %v5148_v16  ;;  %v566_v52 = vmul.f32 %v4491_v44, %v5151_v4  ;;  %v496_v51 = vpop.xlane.xlu1 %495  ;;  %v665_v38 = vadd.f32 %v5318_v28, %v615_v59  ;;  %v664_v41 = vadd.f32 %v5324_v32, %v614_v18 }
 0x1ca   : > { %4500 = vrsqrt.f32 %v538_v63  ;;  %v524_v1 = vmul.f32 0.00390625, %v496_v51  ;;  %v568_v20 = vmul.f32 %v4493_v60, %v5137_v62  ;;  %v3841_v51 = vcombine.high %v894_v25, %v898_v13 }
 0x1cb   : > { %4502 = vrsqrt.f32 %v537_v15  ;;  %v617_v33 = vmul.f32 %v5310_v26, %v566_v52  ;;  %v616_v16 = vmul.f32 %v5315_v14, %v565_v29  ;;  %v567_v15 = vmul.f32 %v4493_v60, %v5134_v61  ;;  %v499_v29 = vpop.xlane.xlu0 %498  ;;  %v902_v60 = vld [vmem:[#allocation8 + $0x88] sm:$0xff] }
 0x1cc   : > { %v4495_v42 = vpop.eup %4494  ;;  %v540_v4 = vadd.f32 1e-05, %v524_v1  ;;  %v906_v1 = vld [vmem:[#allocation8 + $0xa8] sm:$0xff] }
 0x1cd   : > { %v4497_v34 = vpop.eup %4496  ;;  %v569_v6 = vmul.f32 %v4495_v42, %v5154_v24  ;;  %v570_v37 = vmul.f32 %v4495_v42, %v5157_v27  ;;  %v667_v22 = vadd.f32 %v5318_v28, %v617_v33  ;;  %v502_v62 = vpop.xlane.xlu1 %501  ;;  %v666_v44 = vadd.f32 %v5324_v32, %v616_v16 }
 0x1ce   : > { %v619_v24 = vmul.f32 %v5310_v26, %v568_v20  ;;  %v572_v27 = vmul.f32 %v4497_v34, %v5171_v46  ;;  %4504 = vrsqrt.f32 %v540_v4  ;;  %v526_v10 = vmul.f32 0.00390625, %v502_v62 }
 0x1cf   : > { %v5336_v43 = vpack.c.bf16 %v667_v22, %v665_v38  ;;  %v621_v52 = vmul.f32 %v5310_v26, %v570_v37  ;;  %v5344_v61 = vpack.c.bf16 %v666_v44, %v664_v41  ;;  %v620_v18 = vmul.f32 %v5315_v14, %v569_v6  ;;  %v914_v44 = vld [vmem:[#allocation8 + $0xe8] sm:$0xff] }
 0x1d0   : > { %v4499_v63 = vpop.eup %4498  ;;  %4506 = vrsqrt.f32 %v539_v40  ;;  %v525_v20 = vmul.f32 0.00390625, %v499_v29  ;;  %v669_v46 = vadd.f32 %v5318_v28, %v619_v24  ;;  %v618_v16 = vmul.f32 %v5315_v14, %v567_v15  ;;  %v910_v15 = vld [vmem:[#allocation8 + $0xc8] sm:$0xff] }
 0x1d1   : > { %v574_v59 = vmul.f32 %v4499_v63, %v5177_v49  ;;  %1685 = vmatprep.mubr.bf16.mxu1 %v5336_v43  ;;  %v671_v33 = vadd.f32 %v5318_v28, %v621_v52  ;;  %v3840_v42 = vcombine.low %v894_v25, %v898_v13  ;;  %v3849_v4 = vcombine.high %v902_v60, %v906_v1  ;;  %v508_v5 = vpop.xlane.xlu1 %507 }
 0x1d2   : > { %1686 = vmatmul.mubr.bf16.vlgmr.msra.gmra.mrb[0].mxu1 %v5344_v61  ;;  %v623_v37 = vmul.f32 %v5310_v26, %v572_v27  ;;  %v573_v22 = vmul.f32 %v4499_v63, %v5174_v48  ;;  %v542_v40 = vadd.f32 1e-05, %v526_v10  ;;  %v670_v41 = vadd.f32 %v5324_v32, %v620_v18  ;;  %v505_v63 = vpop.xlane.xlu0 %504  ;;  %v918_v10 = vld [vmem:[#allocation8 + $0x108] sm:$0xff] }
 0x1d3   : > { %1767 = vmatpush1.bf16.msra.mxu1 %v3832_v45  ;;  %v625_v6 = vmul.f32 %v5310_v26, %v574_v59  ;;  %v5357_v62 = vpack.c.bf16 %v671_v33, %v669_v46  ;;  %v571_v45 = vmul.f32 %v4497_v34, %v5168_v9  ;;  %v541_v25 = vadd.f32 1e-05, %v525_v20  ;;  %v922_v18 = vld [vmem:[#allocation8 + $0x128] sm:$0xff] }
 0x1d4   : > { %v4501_v49 = vpop.eup %4500  ;;  %1768 = vmatprep.subr.bf16.mxu1 %v3841_v51  ;;  %v668_v13 = vadd.f32 %v5324_v32, %v618_v16  ;;  %v3848_v27 = vcombine.low %v902_v60, %v906_v1  ;;  %v673_v29 = vadd.f32 %v5318_v28, %v623_v37  ;;  %v3857_v52 = vcombine.high %v910_v15, %v914_v44 }
 0x1d5   : > { %v4503_v38 = vpop.eup %4502  ;;  %v578_v35 = vmul.f32 %v4501_v49, %v5197_v7  ;;  %1695 = vmatprep.mubr.bf16.mxu1 %v5357_v62  ;;  %v675_v48 = vadd.f32 %v5318_v28, %v625_v6  ;;  %4508 = vrsqrt.f32 %v542_v40  ;;  %v528_v7 = vmul.f32 0.00390625, %v508_v5  ;;  %v926_v6 = vld [vmem:[#allocation8 + $0x148] sm:$0xff] }
 0x1d6   : > { %v576_v24 = vmul.f32 %v4503_v38, %v5191_v58  ;;  %v5367_v51 = vpack.c.bf16 %v670_v41, %v668_v13  ;;  %v624_v9 = vmul.f32 %v5315_v14, %v573_v22  ;;  %4510 = vrsqrt.f32 %v541_v25  ;;  %v930_v22 = vld [vmem:[#allocation8 + $0x168] sm:$0xff]  ;;  %v514_v41 = vpop.xlane.xlu1 %513 }
 0x1d7   : > { %1769 = vmatpush1.bf16.msra.mxu1 %v3840_v42  ;;  %v5370_v59 = vpack.c.bf16 %v675_v48, %v673_v29  ;;  %v629_v58 = vmul.f32 %v5310_v26, %v578_v35  ;;  %v527_v20 = vmul.f32 0.00390625, %v505_v63  ;;  %v622_v60 = vmul.f32 %v5315_v14, %v571_v45 }
 0x1d8   : > { %1770 = vmatprep.subr.bf16.mxu1 %v3849_v4  ;;  %v4505_v34 = vpop.eup %4504  ;;  %v3856_v46 = vcombine.low %v910_v15, %v914_v44  ;;  %v627_v33 = vmul.f32 %v5310_v26, %v576_v24  ;;  %v577_v16 = vmul.f32 %v4501_v49, %v5194_v3  ;;  %v544_v42 = vadd.f32 1e-05, %v528_v7  ;;  %v511_v3 = vpop.xlane.xlu0 %510 }
 0x1d9   : > { %v3865_v4 = vcombine.high %v918_v10, %v922_v18  ;;  %v674_v37 = vadd.f32 %v5324_v32, %v624_v9  ;;  %v582_v40 = vmul.f32 %v4505_v34, %v5217_v39  ;;  %v679_v35 = vadd.f32 %v5318_v28, %v629_v58 }
 0x1da   : > { %1696 = vmatmul.mubr.bf16.gmra.mrb[4].mxu1 %v5367_v51  ;;  %v4507_v1 = vpop.eup %4506  ;;  %v575_v5 = vmul.f32 %v4503_v38, %v5188_v57  ;;  %v543_v45 = vadd.f32 1e-05, %v527_v20  ;;  %v672_v15 = vadd.f32 %v5324_v32, %v622_v60  ;;  %v3864_v49 = vcombine.low %v918_v10, %v922_v18  ;;  %v934_v57 = vld [vmem:[#allocation8 + $0x188] sm:$0xff] }
 0x1db   : > { %1771 = vmatpush1.bf16.msra.mxu1 %v3848_v27  ;;  %1705 = vmatprep.mubr.bf16.mxu1 %v5370_v59  ;;  %v580_v44 = vmul.f32 %v4507_v1, %v5211_v30  ;;  %v677_v25 = vadd.f32 %v5318_v28, %v627_v33  ;;  %v3873_v13 = vcombine.high %v926_v6, %v930_v22  ;;  %4512 = vrsqrt.f32 %v544_v42  ;;  %v938_v38 = vld [vmem:[#allocation8 + $0x1a8] sm:$0xff] }
 0x1dc   : > { %1772 = vmatprep.subr.bf16.mxu1 %v3857_v52  ;;  %v530_v48 = vmul.f32 0.00390625, %v514_v41  ;;  %v5385_v39 = vpack.c.bf16 %v674_v37, %v672_v15  ;;  %v628_v24 = vmul.f32 %v5315_v14, %v577_v16  ;;  %v633_v27 = vmul.f32 %v5310_v26, %v582_v40  ;;  %v942_v16 = vld [vmem:[#allocation8 + $0x1c8] sm:$0xff] }
 0x1dd   : > { %v5388_v63 = vpack.c.bf16 %v679_v35, %v677_v25  ;;  %4514 = vrsqrt.f32 %v543_v45  ;;  %v529_v29 = vmul.f32 0.00390625, %v511_v3  ;;  %v626_v52 = vmul.f32 %v5315_v14, %v575_v5  ;;  %v946_v42 = vld [vmem:[#allocation8 + $0x1e8] sm:$0xff] }
 0x1de   : > { %v3872_v7 = vcombine.low %v926_v6, %v930_v22  ;;  %v631_v9 = vmul.f32 %v5310_v26, %v580_v44  ;;  %v581_v18 = vmul.f32 %v4505_v34, %v5214_v36  ;;  %v546_v58 = vadd.f32 1e-05, %v530_v48  ;;  %v950_v5 = vld [vmem:[#allocation8 + $0x208] sm:$0xff] }
 0x1df   : > { %1773 = vmatpush1.bf16.msra.mxu1 %v3856_v46  ;;  %v4509_v30 = vpop.eup %4508  ;;  %v3881_v20 = vcombine.high %v934_v57, %v938_v38  ;;  %v678_v60 = vadd.f32 %v5324_v32, %v628_v24  ;;  %v683_v33 = vadd.f32 %v5318_v28, %v633_v27  ;;  %v545_v37 = vadd.f32 1e-05, %v529_v29 }
 0x1e0   : > { %1774 = vmatprep.subr.bf16.mxu1 %v3865_v4  ;;  %v4511_v10 = vpop.eup %4510  ;;  %v586_v46 = vmul.f32 %v4509_v30, %v5239_v12  ;;  %v579_v4 = vmul.f32 %v4507_v1, %v5208_v17  ;;  %v676_v6 = vadd.f32 %v5324_v32, %v626_v52  ;;  %v3880_v36 = vcombine.low %v934_v57, %v938_v38  ;;  %v954_v17 = vld [vmem:[#allocation8 + $0x228] sm:$0xff] }
 0x1e1   : > { %v584_v22 = vmul.f32 %v4511_v10, %v5233_v53  ;;  %v681_v34 = vadd.f32 %v5318_v28, %v631_v9  ;;  %4516 = vrsqrt.f32 %v546_v58  ;;  %v3889_v12 = vcombine.high %v942_v16, %v946_v42  ;;  %v958_v57 = vld [vmem:[#allocation8 + $0x248] sm:$0xff] }
 0x1e2   : > { %1706 = vmatmul.mubr.bf16.gmra.mrb[8].mxu1 %v5385_v39  ;;  %v5403_v40 = vpack.c.bf16 %v678_v60, %v676_v6  ;;  %v632_v41 = vmul.f32 %v5315_v14, %v581_v18  ;;  %v637_v1 = vmul.f32 %v5310_v26, %v586_v46  ;;  %4518 = vrsqrt.f32 %v545_v37  ;;  %v962_v38 = vld [vmem:[#allocation8 + $0x268] sm:$0xff] }
 0x1e3   : > { %1775 = vmatpush1.bf16.msra.mxu1 %v3864_v49  ;;  %1715 = vmatprep.mubr.bf16.mxu1 %v5388_v63  ;;  %v5406_v35 = vpack.c.bf16 %v683_v33, %v681_v34  ;;  %v630_v53 = vmul.f32 %v5315_v14, %v579_v4  ;;  %v3888_v15 = vcombine.low %v942_v16, %v946_v42  ;;  %v4297_v9 = vld [vmem:[#allocation9] ss:$8 sps:$4 sm:$0xff]   ;;  %v4298_v42 = vld [vmem:[#allocation9 + $0x14] ss:$8 sps:$4 sm:$0xff]   ;;  %v4300_v4 = vld [vmem:[#allocation9 + $0x10] ss:$8 sps:$4 sm:$0xff]  }
 0x1e4   : > { %1776 = vmatprep.subr.bf16.mxu1 %v3873_v13  ;;  %v635_v44 = vmul.f32 %v5310_v26, %v584_v22  ;;  %v585_v49 = vmul.f32 %v4509_v30, %v5236_v55  ;;  %v3897_v25 = vcombine.high %v950_v5, %v954_v17  ;;  %v682_v13 = vadd.f32 %v5324_v32, %v632_v41  ;;  %v4295_v30 = vld [vmem:[#allocation9 + $0x4] ss:$8 sps:$4 sm:$0xff]  }
 0x1e5   : > { %v4513_v45 = vpop.eup %4512  ;;  %v687_v24 = vadd.f32 %v5318_v28, %v637_v1  ;;  %v583_v27 = vmul.f32 %v4511_v10, %v5230_v50  ;;  %v680_v29 = vadd.f32 %v5324_v32, %v630_v53  ;;  %v966_v60 = vld [vmem:[#allocation8 + $0x288] sm:$0xff]  ;;  %3172 = vmatprep.subr.bf16.mxu0 %v4295_v30  ;;  %v3904_v33 = vcombine.low %v958_v57, %v962_v38 }
 0x1e6   : > { %v590_v48 = vmul.f32 %v4513_v45, %v5259_v2  ;;  %v685_v55 = vadd.f32 %v5318_v28, %v635_v44  ;;  %v3905_v2 = vcombine.high %v958_v57, %v962_v38  ;;  %v636_v58 = vmul.f32 %v5315_v14, %v585_v49  ;;  %v970_v50 = vld [vmem:[#allocation8 + $0x2a8] sm:$0xff]  ;;  %3173 = vmatpush1.bf16.msra.mxu0 %v4297_v9  ;;  %v4304_v38 = vld [vmem:[#allocation9 + $0x34] ss:$8 sps:$4 sm:$0xff]  }
 0x1e7   : > { %1777 = vmatpush1.bf16.msra.mxu1 %v3872_v7  ;;  %v4515_v3 = vpop.eup %4514  ;;  %v3896_v7 = vcombine.low %v950_v5, %v954_v17  ;;  %v5421_v18 = vpack.c.bf16 %v682_v13, %v680_v29  ;;  %v634_v46 = vmul.f32 %v5315_v14, %v583_v27  ;;  %v589_v6 = vmul.f32 %v4513_v45, %v5256_v19  ;;  %v974_v41 = vld [vmem:[#allocation8 + $0x2c8] sm:$0xff]  ;;  %v4306_v27 = vld [vmem:[#allocation9 + $0x30] ss:$8 sps:$4 sm:$0xff]  }
 0x1e8   : > { %1778 = vmatprep.subr.bf16.mxu1 %v3881_v20  ;;  %v588_v52 = vmul.f32 %v4515_v3, %v5253_v0  ;;  %v5424_v20 = vpack.c.bf16 %v687_v24, %v685_v55  ;;  %v641_v10 = vmul.f32 %v5310_v26, %v590_v48  ;;  %v3913_v22 = vcombine.high %v966_v60, %v970_v50  ;;  %v978_v5 = vld [vmem:[#allocation8 + $0x2e8] sm:$0xff] }
 0x1e9   : > { %3174 = vmatprep.subr.bf16.mxu0 %v4298_v42  ;;  %v587_v17 = vmul.f32 %v4515_v3, %v5250_v11  ;;  %v684_v1 = vadd.f32 %v5324_v32, %v634_v46  ;;  %v3912_v19 = vcombine.low %v966_v60, %v970_v50  ;;  %v4303_v44 = vld [vmem:[#allocation9 + $0x20] ss:$8 sps:$4 sm:$0xff]   ;;  %v3921_v49 = vcombine.high %v974_v41, %v978_v5  ;;  %v4307_v50 = vld [vmem:[#allocation9 + $0x44] ss:$8 sps:$4 sm:$0xff]  }
 0x1ea   : > { %1716 = vmatmul.mubr.bf16.gmra.mrb[12].mxu1 %v5403_v40  ;;  %v639_v16 = vmul.f32 %v5310_v26, %v588_v52  ;;  %3175 = vmatpush1.bf16.msra.mxu0 %v4300_v4  ;;  %v982_v11 = vld [vmem:[#allocation8 + $0x308] sm:$0xff]  ;;  %v3920_v24 = vcombine.low %v974_v41, %v978_v5  ;;  %v4310_v4 = vld [vmem:[#allocation9 + $0x54] ss:$8 sps:$4 sm:$0xff]  }
 0x1eb   : > { %1779 = vmatpush1.bf16.msra.mxu1 %v3880_v36  ;;  %1725 = vmatprep.mubr.bf16.mxu1 %v5406_v35  ;;  %v4517_v0 = vpop.eup %4516  ;;  %v686_v36 = vadd.f32 %v5324_v32, %v636_v58  ;;  %v986_v3 = vld [vmem:[#allocation8 + $0x328] sm:$0xff] }
 0x1ec   : > { %1780 = vmatprep.subr.bf16.mxu1 %v3889_v12  ;;  %v4519_v37 = vpop.eup %4518  ;;  %v594_v34 = vmul.f32 %v4517_v0, %v5279_v54  ;;  %v691_v12 = vadd.f32 %v5318_v28, %v641_v10  ;;  %v689_v45 = vadd.f32 %v5318_v28, %v639_v16  ;;  %v593_v29 = vmul.f32 %v4517_v0, %v5276_v47  ;;  %v990_v30 = vld [vmem:[#allocation8 + $0x348] sm:$0xff] }
 0x1ed   : > { %v592_v53 = vmul.f32 %v4519_v37, %v5273_v8  ;;  %v5439_v54 = vpack.c.bf16 %v686_v36, %v684_v1  ;;  %v638_v8 = vmul.f32 %v5315_v14, %v587_v17  ;;  %v3929_v52 = vcombine.high %v982_v11, %v986_v3  ;;  %v994_v9 = vld [vmem:[#allocation8 + $0x368] sm:$0xff] }
 0x1ee   : > { %v5442_v13 = vpack.c.bf16 %v691_v12, %v689_v45  ;;  %v645_v48 = vmul.f32 %v5310_v26, %v594_v34  ;;  %v4309_v47 = vld [vmem:[#allocation9 + $0x40] ss:$8 sps:$4 sm:$0xff]   ;;  %v3937_v0 = vcombine.high %v990_v30, %v994_v9  ;;  %v644_v46 = vmul.f32 %v5315_v14, %v593_v29  ;;  %v4324_v29 = vld [vmem:[#allocation9 + $0x90] ss:$8 sps:$4 sm:$0xff]  }
 0x1ef   : > { %1781 = vmatpush1.bf16.msra.mxu1 %v3888_v15  ;;  %v4301_v15 = vld [vmem:[#allocation9 + $0x24] ss:$8 sps:$4 sm:$0xff]   ;;  %v643_v57 = vmul.f32 %v5310_v26, %v592_v53  ;;  %v688_v58 = vadd.f32 %v5324_v32, %v638_v8  ;;  %v3928_v26 = vcombine.low %v982_v11, %v986_v3  ;;  %v4315_v5 = vld [vmem:[#allocation9 + $0x60] ss:$8 sps:$4 sm:$0xff]   ;;  %v887_v53 = vld [vmem:[#allocation8 + $0x10] sm:$0xff] }
 0x1f0   : > { %1782 = vmatprep.subr.bf16.mxu1 %v3897_v25  ;;  %v640_v25 = vmul.f32 %v5315_v14, %v589_v6  ;;  %3176 = vmatprep.subr.bf16.mxu0 %v4301_v15  ;;  %v695_v55 = vadd.f32 %v5318_v28, %v645_v48  ;;  %v998_v16 = vld [vmem:[#allocation8 + $0x388] sm:$0xff]  ;;  %v4318_v15 = vld [vmem:[#allocation9 + $0x70] ss:$8 sps:$4 sm:$0xff]  }
 0x1f1   : > { %3177 = vmatpush1.bf16.msra.mxu0 %v4303_v44  ;;  %v693_v60 = vadd.f32 %v5318_v28, %v643_v57  ;;  %v1002_v42 = vld [vmem:[#allocation8 + $0x3a8] sm:$0xff]  ;;  %v3936_v28 = vcombine.low %v990_v30, %v994_v9  ;;  %v907_v57 = vld [vmem:[#allocation8 + $0xb0] sm:$0xff] }
 0x1f2   : > { %1726 = vmatmul.mubr.bf16.gmra.mrb[16].mxu1 %v5421_v18  ;;  %3178 = vmatprep.subr.bf16.mxu0 %v4304_v38  ;;  %v3945_v6 = vcombine.high %v998_v16, %v1002_v42  ;;  %v1006_v36 = vld [vmem:[#allocation8 + $0x3c8] sm:$0xff]  ;;  %v3944_v41 = vcombine.low %v998_v16, %v1002_v42  ;;  %v915_v30 = vld [vmem:[#allocation8 + $0xf0] sm:$0xff] }
 0x1f3   : > { %1783 = vmatpush1.bf16.msra.mxu1 %v3896_v7  ;;  %1735 = vmatprep.mubr.bf16.mxu1 %v5424_v20  ;;  %v690_v7 = vadd.f32 %v5324_v32, %v640_v25  ;;  %v1010_v34 = vld [vmem:[#allocation8 + $0x3e8] sm:$0xff]  ;;  %v899_v25 = vld [vmem:[#allocation8 + $0x70] sm:$0xff] }
 0x1f4   : > { %1784 = vmatprep.subr.bf16.mxu1 %v3905_v2  ;;  %v591_v2 = vmul.f32 %v4519_v37, %v5270_v23  ;;  %v4312_v37 = vld [vmem:[#allocation9 + $0x50] ss:$8 sps:$4 sm:$0xff]   ;;  %v3953_v1 = vcombine.high %v1006_v36, %v1010_v34  ;;  %v3952_v45 = vcombine.low %v1006_v36, %v1010_v34  ;;  %v4319_v3 = vld [vmem:[#allocation9 + $0x84] ss:$8 sps:$4 sm:$0xff]   ;;  %v4321_v48 = vld [vmem:[#allocation9 + $0x80] ss:$8 sps:$4 sm:$0xff]  }
 0x1f5   : > { %3179 = vmatpush1.bf16.msra.mxu0 %v4306_v27  ;;  %v5455_v10 = vpack.c.bf16 %v690_v7, %v688_v58  ;;  %v4322_v27 = vld [vmem:[#allocation9 + $0x94] ss:$8 sps:$4 sm:$0xff]   ;;  %v4327_v9 = vld [vmem:[#allocation9 + $0xa0] ss:$8 sps:$4 sm:$0xff]  }
 0x1f6   : > { %3180 = vmatprep.subr.bf16.mxu0 %v4307_v50  ;;  %v642_v23 = vmul.f32 %v5315_v14, %v591_v2  ;;  %v4313_v14 = vld [vmem:[#allocation9 + $0x64] ss:$8 sps:$4 sm:$0xff]   ;;  %v927_v42 = vld [vmem:[#allocation8 + $0x150] sm:$0xff] }
 0x1f7   : > { %1785 = vmatpush1.bf16.msra.mxu1 %v3904_v33  ;;  %v5458_v33 = vpack.c.bf16 %v695_v55, %v693_v60  ;;  %v911_v55 = vld [vmem:[#allocation8 + $0xd0] sm:$0xff] }
 0x1f8   : > { %1786 = vmatprep.subr.bf16.mxu1 %v3913_v22  ;;  %v694_v22 = vadd.f32 %v5324_v32, %v644_v46  ;;  %v692_v12 = vadd.f32 %v5324_v32, %v642_v23  ;;  %v4316_v32 = vld [vmem:[#allocation9 + $0x74] ss:$8 sps:$4 sm:$0xff]   ;;  %v3859_v58 = vcombine.high %v911_v55, %v915_v30  ;;  %v3858_v50 = vcombine.low %v911_v55, %v915_v30  ;;  %v4331_v46 = vld [vmem:[#allocation9 + $0xc4] ss:$8 sps:$4 sm:$0xff]  }
 0x1f9   : > { %3181 = vmatpush1.bf16.msra.mxu0 %v4309_v47  ;;  %v923_v60 = vld [vmem:[#allocation8 + $0x130] sm:$0xff] }
 0x1fa   : > { %1736 = vmatmul.mubr.bf16.gmra.mrb[20].mxu1 %v5439_v54  ;;  %3182 = vmatprep.subr.bf16.mxu0 %v4310_v4  ;;  %v5465_v17 = vpack.c.bf16 %v694_v22, %v692_v12  ;;  %v4328_v47 = vld [vmem:[#allocation9 + $0xb4] ss:$8 sps:$4 sm:$0xff]   ;;  %v4336_v12 = vld [vmem:[#allocation9 + $0xd0] ss:$8 sps:$4 sm:$0xff]  }
 0x1fb   : > { %1787 = vmatpush1.bf16.msra.mxu1 %v3912_v19  ;;  %1745 = vmatprep.mubr.bf16.mxu1 %v5442_v13  ;;  %v891_v19 = vld [vmem:[#allocation8 + $0x30] sm:$0xff] }
 0x1fc   : > { %1788 = vmatprep.subr.bf16.mxu1 %v3921_v49  ;;  %v3835_v44 = vcombine.high %v887_v53, %v891_v19  ;;  %v895_v49 = vld [vmem:[#allocation8 + $0x50] sm:$0xff]  ;;  %v3834_v11 = vcombine.low %v887_v53, %v891_v19 }
 0x1fd   : > { %3183 = vmatpush1.bf16.msra.mxu0 %v4312_v37  ;;  %v3843_v8 = vcombine.high %v895_v49, %v899_v25  ;;  %v3842_v38 = vcombine.low %v895_v49, %v899_v25  ;;  %v931_v23 = vld [vmem:[#allocation8 + $0x170] sm:$0xff] }
 0x1fe   : > { %3184 = vmatprep.subr.bf16.mxu0 %v4313_v14  ;;  %v3875_v37 = vcombine.high %v927_v42, %v931_v23  ;;  %v939_v22 = vld [vmem:[#allocation8 + $0x1b0] sm:$0xff]  ;;  %v3874_v36 = vcombine.low %v927_v42, %v931_v23 }
 0x1ff   : > { %1789 = vmatpush1.bf16.msra.mxu1 %v3920_v24  ;;  %v903_v24 = vld [vmem:[#allocation8 + $0x90] sm:$0xff] }
 0x200   : > { %1790 = vmatprep.subr.bf16.mxu1 %v3929_v52  ;;  %v4325_v52 = vld [vmem:[#allocation9 + $0xa4] ss:$8 sps:$4 sm:$0xff]   ;;  %v3851_v7 = vcombine.high %v903_v24, %v907_v57  ;;  %v3850_v2 = vcombine.low %v903_v24, %v907_v57  ;;  %v4334_v34 = vld [vmem:[#allocation9 + $0xd4] ss:$8 sps:$4 sm:$0xff]  }
 0x201   : > { %3185 = vmatpush1.bf16.msra.mxu0 %v4315_v5  ;;  %v943_v14 = vld [vmem:[#allocation8 + $0x1d0] sm:$0xff] }
 0x202   : > { %1746 = vmatmul.mubr.bf16.gmra.mrb[24].mxu1 %v5455_v10  ;;  %3186 = vmatprep.subr.bf16.mxu0 %v4316_v32  ;;  %v947_v5 = vld [vmem:[#allocation8 + $0x1f0] sm:$0xff]  ;;  %v4337_v32 = vld [vmem:[#allocation9 + $0xe4] ss:$8 sps:$4 sm:$0xff]  }
 0x203   : > { %1791 = vmatpush1.bf16.msra.mxu1 %v3928_v26  ;;  %1755 = vmatprep.mubr.bf16.mxu1 %v5458_v33  ;;  %v919_v26 = vld [vmem:[#allocation8 + $0x110] sm:$0xff]  ;;  %v3891_v53 = vcombine.high %v943_v14, %v947_v5 }
 0x204   : > { %1792 = vmatprep.subr.bf16.mxu1 %v3937_v0  ;;  %v4330_v0 = vld [vmem:[#allocation9 + $0xb0] ss:$8 sps:$4 sm:$0xff]   ;;  %v3867_v16 = vcombine.high %v919_v26, %v923_v60  ;;  %v3866_v4 = vcombine.low %v919_v26, %v923_v60  ;;  %v4340_v49 = vld [vmem:[#allocation9 + $0xf4] ss:$8 sps:$4 sm:$0xff]  }
 0x205   : > { %3187 = vmatpush1.bf16.msra.mxu0 %v4318_v15  ;;  %v951_v19 = vld [vmem:[#allocation8 + $0x210] sm:$0xff]  ;;  %v4339_v15 = vld [vmem:[#allocation9 + $0xe0] ss:$8 sps:$4 sm:$0xff]  }
 0x206   : > { %3188 = vmatprep.subr.bf16.mxu0 %v4319_v3  ;;  %v963_v3 = vld [vmem:[#allocation8 + $0x270] sm:$0xff] }
 0x207   : > { %1793 = vmatpush1.bf16.msra.mxu1 %v3936_v28  ;;  %v4333_v28 = vld [vmem:[#allocation9 + $0xc0] ss:$8 sps:$4 sm:$0xff]   ;;  %v967_v57 = vld [vmem:[#allocation8 + $0x290] sm:$0xff] }
 0x208   : > { %1794 = vmatprep.subr.bf16.mxu1 %v3945_v6  ;;  %v935_v6 = vld [vmem:[#allocation8 + $0x190] sm:$0xff] }
 0x209   : > { %3189 = vmatpush1.bf16.msra.mxu0 %v4321_v48  ;;  %v4342_v48 = vld [vmem:[#allocation9 + $0xf0] ss:$8 sps:$4 sm:$0xff]  }
 0x20a   : > { %1756 = vmatmul.mubr.bf16.gmra.mrb[28].mxu1 %v5465_v17  ;;  %3190 = vmatprep.subr.bf16.mxu0 %v4322_v27  ;;  %v4345_v27 = vld [vmem:[#allocation9 + $0x104] ss:$8 sps:$4 sm:$0xff]   ;;  %v979_v55 = vld [vmem:[#allocation8 + $0x2f0] sm:$0xff] }
 0x20b   : > { %1795 = vmatpush1.bf16.msra.mxu1 %v3944_v41  ;;  %1798 = vmatprep.mubr.bf16.mxu1 %v5336_v43  ;;  %v3883_v41 = vcombine.high %v935_v6, %v939_v22  ;;  %v1003_v42 = vld [vmem:[#allocation8 + $0x3b0] sm:$0xff] }
 0x20c   : > { %1796 = vmatprep.subr.bf16.mxu1 %v3953_v1  ;;  %v3882_v1 = vcombine.low %v935_v6, %v939_v22 }
 0x20d   : > { %3191 = vmatpush1.bf16.msra.mxu0 %v4324_v29 }
 0x20e   : > { %3192 = vmatprep.subr.bf16.mxu0 %v4325_v52 }
 0x20f   : > { %1797 = vmatpush1.bf16.msra.mxu1 %v3952_v45  ;;  %v955_v45 = vld [vmem:[#allocation8 + $0x230] sm:$0xff] }
 0x210   : > { %1879 = vmatprep.subr.bf16.mxu1 %v3835_v44  ;;  %v3890_v44 = vcombine.low %v943_v14, %v947_v5  ;;  %v3899_v25 = vcombine.high %v951_v19, %v955_v45  ;;  %v896_v14 = vld [vmem:[#allocation8 + $0x58] sm:$0xff] }
 0x211   : > { %3193 = vmatpush1.bf16.msra.mxu0 %v4327_v9  ;;  %v900_v5 = vld [vmem:[#allocation8 + $0x78] sm:$0xff] }
 0x212   : > { %1799 = vmatmul.mubr.bf16.vlgmr.msra.gmra.mrb[32].mxu1 %v5344_v61  ;;  %3194 = vmatprep.subr.bf16.mxu0 %v4328_v47  ;;  %v995_v47 = vld [vmem:[#allocation8 + $0x370] sm:$0xff] }
 0x213   : > { %1880 = vmatpush1.bf16.msra.mxu1 %v3834_v11  ;;  %1808 = vmatprep.mubr.bf16.mxu1 %v5357_v62  ;;  %v959_v11 = vld [vmem:[#allocation8 + $0x250] sm:$0xff] }
 0x214   : > { %1881 = vmatprep.subr.bf16.mxu1 %v3843_v8  ;;  %v3898_v8 = vcombine.low %v951_v19, %v955_v45  ;;  %v3907_v24 = vcombine.high %v959_v11, %v963_v3  ;;  %v3906_v29 = vcombine.low %v959_v11, %v963_v3  ;;  %v904_v19 = vld [vmem:[#allocation8 + $0x98] sm:$0xff] }
 0x215   : > { %3195 = vmatpush1.bf16.msra.mxu0 %v4330_v0  ;;  %v908_v45 = vld [vmem:[#allocation8 + $0xb8] sm:$0xff] }
 0x216   : > { %3196 = vmatprep.subr.bf16.mxu0 %v4331_v46  ;;  %v920_v3 = vld [vmem:[#allocation8 + $0x118] sm:$0xff] }
 0x217   : > { %1882 = vmatpush1.bf16.msra.mxu1 %v3842_v38  ;;  %v971_v38 = vld [vmem:[#allocation8 + $0x2b0] sm:$0xff] }
 0x218   : > { %1883 = vmatprep.subr.bf16.mxu1 %v3851_v7  ;;  %v3915_v52 = vcombine.high %v967_v57, %v971_v38  ;;  %v975_v7 = vld [vmem:[#allocation8 + $0x2d0] sm:$0xff]  ;;  %v3914_v30 = vcombine.low %v967_v57, %v971_v38  ;;  %v928_v57 = vld [vmem:[#allocation8 + $0x158] sm:$0xff] }
 0x219   : > { %3197 = vmatpush1.bf16.msra.mxu0 %v4333_v28  ;;  %v3923_v9 = vcombine.high %v975_v7, %v979_v55  ;;  %v3922_v26 = vcombine.low %v975_v7, %v979_v55  ;;  %v932_v38 = vld [vmem:[#allocation8 + $0x178] sm:$0xff] }
 0x21a   : > { %1809 = vmatmul.mubr.bf16.gmra.mrb[36].mxu1 %v5367_v51  ;;  %3198 = vmatprep.subr.bf16.mxu0 %v4334_v34  ;;  %v892_v34 = vld [vmem:[#allocation8 + $0x38] sm:$0xff]  ;;  %v3876_v55 = vcombine.low %v928_v57, %v932_v38 }
 0x21b   : > { %1884 = vmatpush1.bf16.msra.mxu1 %v3850_v2  ;;  %1818 = vmatprep.mubr.bf16.mxu1 %v5370_v59  ;;  %v983_v2 = vld [vmem:[#allocation8 + $0x310] sm:$0xff]  ;;  %v940_v7 = vld [vmem:[#allocation8 + $0x1b8] sm:$0xff] }
 0x21c   : > { %1885 = vmatprep.subr.bf16.mxu1 %v3859_v58  ;;  %v987_v58 = vld [vmem:[#allocation8 + $0x330] sm:$0xff] }
 0x21d   : > { %3199 = vmatpush1.bf16.msra.mxu0 %v4336_v12  ;;  %v3931_v60 = vcombine.high %v983_v2, %v987_v58  ;;  %v3930_v0 = vcombine.low %v983_v2, %v987_v58  ;;  %v948_v2 = vld [vmem:[#allocation8 + $0x1f8] sm:$0xff] }
 0x21e   : > { %3200 = vmatprep.subr.bf16.mxu0 %v4337_v32  ;;  %v3844_v32 = vcombine.low %v896_v14, %v900_v5 }
 0x21f   : > { %1886 = vmatpush1.bf16.msra.mxu1 %v3858_v50  ;;  %v991_v50 = vld [vmem:[#allocation8 + $0x350] sm:$0xff] }
 0x220   : > { %1887 = vmatprep.subr.bf16.mxu1 %v3867_v16  ;;  %v3939_v46 = vcombine.high %v991_v50, %v995_v47  ;;  %v999_v16 = vld [vmem:[#allocation8 + $0x390] sm:$0xff]  ;;  %v3938_v23 = vcombine.low %v991_v50, %v995_v47  ;;  %v956_v50 = vld [vmem:[#allocation8 + $0x238] sm:$0xff] }
 0x221   : > { %3201 = vmatpush1.bf16.msra.mxu0 %v4339_v15  ;;  %v3947_v28 = vcombine.high %v999_v16, %v1003_v42  ;;  %v3946_v6 = vcombine.low %v999_v16, %v1003_v42  ;;  %v3853_v15 = vcombine.high %v904_v19, %v908_v45  ;;  %v964_v16 = vld [vmem:[#allocation8 + $0x278] sm:$0xff] }
 0x222   : > { %1819 = vmatmul.mubr.bf16.gmra.mrb[40].mxu1 %v5385_v39  ;;  %3202 = vmatprep.subr.bf16.mxu0 %v4340_v49  ;;  %v916_v49 = vld [vmem:[#allocation8 + $0xf8] sm:$0xff] }
 0x223   : > { %1888 = vmatpush1.bf16.msra.mxu1 %v3866_v4  ;;  %1828 = vmatprep.mubr.bf16.mxu1 %v5388_v63  ;;  %v1007_v4 = vld [vmem:[#allocation8 + $0x3d0] sm:$0xff] }
 0x224   : > { %1889 = vmatprep.subr.bf16.mxu1 %v3875_v37  ;;  %v1011_v37 = vld [vmem:[#allocation8 + $0x3f0] sm:$0xff] }
 0x225   : > { %3203 = vmatpush1.bf16.msra.mxu0 %v4342_v48  ;;  %v3955_v22 = vcombine.high %v1007_v4, %v1011_v37  ;;  %v3954_v12 = vcombine.low %v1007_v4, %v1011_v37  ;;  %v924_v48 = vld [vmem:[#allocation8 + $0x138] sm:$0xff] }
 0x226   : > { %3285 = vmatprep.subr.bf16.mxu0 %v4345_v27  ;;  %v3868_v27 = vcombine.low %v920_v3, %v924_v48  ;;  %v972_v4 = vld [vmem:[#allocation8 + $0x2b8] sm:$0xff] }
 0x227   : > { %1890 = vmatpush1.bf16.msra.mxu1 %v3874_v36  ;;  %v888_v36 = vld [vmem:[#allocation8 + $0x18] sm:$0xff] }
 0x228   : > { %1891 = vmatprep.subr.bf16.mxu1 %v3883_v41  ;;  %v3837_v41 = vcombine.high %v888_v36, %v892_v34 }
 0x22a   : > { %1829 = vmatmul.mubr.bf16.gmra.mrb[44].mxu1 %v5403_v40 }
 0x22b   : > { %1892 = vmatpush1.bf16.msra.mxu1 %v3882_v1  ;;  %1838 = vmatprep.mubr.bf16.mxu1 %v5406_v35  ;;  %v3836_v1 = vcombine.low %v888_v36, %v892_v34  ;;  %v980_v36 = vld [vmem:[#allocation8 + $0x2f8] sm:$0xff] }
 0x22c   : > { %1893 = vmatprep.subr.bf16.mxu1 %v3891_v53  ;;  %v3845_v53 = vcombine.high %v896_v14, %v900_v5  ;;  %v988_v14 = vld [vmem:[#allocation8 + $0x338] sm:$0xff] }
 0x22f   : > { %1894 = vmatpush1.bf16.msra.mxu1 %v3890_v44  ;;  %v912_v44 = vld [vmem:[#allocation8 + $0xd8] sm:$0xff] }
 0x230   : > { %1895 = vmatprep.subr.bf16.mxu1 %v3899_v25  ;;  %v3852_v25 = vcombine.low %v904_v19, %v908_v45  ;;  %v3861_v11 = vcombine.high %v912_v44, %v916_v49  ;;  %v996_v19 = vld [vmem:[#allocation8 + $0x378] sm:$0xff] }
 0x232   : > { %1839 = vmatmul.mubr.bf16.gmra.mrb[48].mxu1 %v5421_v18 }
 0x233   : > { %1896 = vmatpush1.bf16.msra.mxu1 %v3898_v8  ;;  %1848 = vmatprep.mubr.bf16.mxu1 %v5424_v20  ;;  %v3860_v8 = vcombine.low %v912_v44, %v916_v49  ;;  %v1004_v44 = vld [vmem:[#allocation8 + $0x3b8] sm:$0xff] }
 0x234   : > { %1897 = vmatprep.subr.bf16.mxu1 %v3907_v24  ;;  %v3869_v24 = vcombine.high %v920_v3, %v924_v48  ;;  %v1012_v3 = vld [vmem:[#allocation8 + $0x3f8] sm:$0xff] }
 0x237   : > { %1898 = vmatpush1.bf16.msra.mxu1 %v3906_v29  ;;  %v3877_v29 = vcombine.high %v928_v57, %v932_v38  ;;  %v4736_v57 = vmov 1966171168  }
 0x238   : > { %1899 = vmatprep.subr.bf16.mxu1 %v3915_v52  ;;  %v936_v52 = vld [vmem:[#allocation8 + $0x198] sm:$0xff]  ;;  %v2173_v38 = vunpack.c.l.s4 %v4736_v57 }
 0x239   : > { %v3884_v58 = vcombine.low %v936_v52, %v940_v7 }
 0x23a   : > { %1849 = vmatmul.mubr.bf16.gmra.mrb[52].mxu1 %v5439_v54 }
 0x23b   : > { %1900 = vmatpush1.bf16.msra.mxu1 %v3914_v30  ;;  %1858 = vmatprep.mubr.bf16.mxu1 %v5442_v13  ;;  %v3885_v30 = vcombine.high %v936_v52, %v940_v7  ;;  %v5509_v52 = vld [vmem:[%s5874_s3] sm:$0xff] }
 0x23c   : > { %1901 = vmatprep.subr.bf16.mxu1 %v3923_v9  ;;  %v944_v9 = vld [vmem:[#allocation8 + $0x1d8] sm:$0xff] }
 0x23d   : > { %v3892_v47 = vcombine.low %v944_v9, %v948_v2 }
 0x23f   : > { %1902 = vmatpush1.bf16.msra.mxu1 %v3922_v26  ;;  %v3893_v26 = vcombine.high %v944_v9, %v948_v2 }
 0x240   : > { %1903 = vmatprep.subr.bf16.mxu1 %v3931_v60  ;;  %v952_v60 = vld [vmem:[#allocation8 + $0x218] sm:$0xff] }
 0x241   : > { %v3900_v42 = vcombine.low %v952_v60, %v956_v50 }
 0x242   : > { %1859 = vmatmul.mubr.bf16.gmra.mrb[56].mxu1 %v5455_v10 }
 0x243   : > { %1904 = vmatpush1.bf16.msra.mxu1 %v3930_v0  ;;  %1868 = vmatprep.mubr.bf16.mxu1 %v5458_v33  ;;  %v3901_v0 = vcombine.high %v952_v60, %v956_v50 }
 0x244   : > { %1905 = vmatprep.subr.bf16.mxu1 %v3939_v46  ;;  %v960_v46 = vld [vmem:[#allocation8 + $0x258] sm:$0xff] }
 0x245   : > { %v3908_v37 = vcombine.low %v960_v46, %v964_v16 }
 0x247   : > { %1906 = vmatpush1.bf16.msra.mxu1 %v3938_v23  ;;  %v3909_v23 = vcombine.high %v960_v46, %v964_v16  ;;  %v4343_v46 = vld [vmem:[#allocation9 + $0x100] ss:$8 sps:$4 sm:$0xff]  }
 0x248   : > { %1907 = vmatprep.subr.bf16.mxu1 %v3947_v28  ;;  %v968_v28 = vld [vmem:[#allocation8 + $0x298] sm:$0xff] }
 0x249   : > { %v3916_v34 = vcombine.low %v968_v28, %v972_v4 }
 0x24a   : > { %1869 = vmatmul.mubr.bf16.gmra.mrb[60].mxu1 %v5465_v17 }
 0x24b   : > { %1908 = vmatpush1.bf16.msra.mxu1 %v3946_v6  ;;  %1911 = vmatprep.mubr.bf16.mxu1 %v5336_v43  ;;  %v3917_v6 = vcombine.high %v968_v28, %v972_v4 }
 0x24c   : > { %1909 = vmatprep.subr.bf16.mxu1 %v3955_v22  ;;  %v976_v22 = vld [vmem:[#allocation8 + $0x2d8] sm:$0xff] }
 0x24d   : > { %v3924_v5 = vcombine.low %v976_v22, %v980_v36 }
 0x24f   : > { %1910 = vmatpush1.bf16.msra.mxu1 %v3954_v12  ;;  %v3925_v12 = vcombine.high %v976_v22, %v980_v36  ;;  %v4351_v22 = vld [vmem:[#allocation9 + $0x124] ss:$8 sps:$4 sm:$0xff]  }
 0x250   : > { %1992 = vmatprep.subr.bf16.mxu1 %v3837_v41  ;;  %v984_v41 = vld [vmem:[#allocation8 + $0x318] sm:$0xff] }
 0x251   : > { %v3932_v45 = vcombine.low %v984_v41, %v988_v14 }
 0x252   : > { %1912 = vmatmul.mubr.bf16.vlgmr.msra.gmra.mrb[64].mxu1 %v5344_v61 }
 0x253   : > { %1993 = vmatpush1.bf16.msra.mxu1 %v3836_v1  ;;  %1921 = vmatprep.mubr.bf16.mxu1 %v5357_v62  ;;  %v3933_v1 = vcombine.high %v984_v41, %v988_v14  ;;  %v4349_v41 = vld [vmem:[#allocation9 + $0x120] ss:$8 sps:$4 sm:$0xff]  }
 0x254   : > { %1994 = vmatprep.subr.bf16.mxu1 %v3845_v53  ;;  %v992_v53 = vld [vmem:[#allocation8 + $0x358] sm:$0xff] }
 0x255   : > { %v3940_v49 = vcombine.low %v992_v53, %v996_v19 }
 0x257   : > { %1995 = vmatpush1.bf16.msra.mxu1 %v3844_v32  ;;  %v3941_v32 = vcombine.high %v992_v53, %v996_v19 }
 0x258   : > { %1996 = vmatprep.subr.bf16.mxu1 %v3853_v15  ;;  %v1000_v15 = vld [vmem:[#allocation8 + $0x398] sm:$0xff] }
 0x259   : > { %v3948_v48 = vcombine.low %v1000_v15, %v1004_v44 }
 0x25a   : > { %1922 = vmatmul.mubr.bf16.gmra.mrb[68].mxu1 %v5367_v51 }
 0x25b   : > { %1997 = vmatpush1.bf16.msra.mxu1 %v3852_v25  ;;  %1931 = vmatprep.mubr.bf16.mxu1 %v5370_v59  ;;  %v3949_v25 = vcombine.high %v1000_v15, %v1004_v44  ;;  %v4357_v15 = vld [vmem:[#allocation9 + $0x144] ss:$8 sps:$4 sm:$0xff]  }
 0x25c   : > { %1998 = vmatprep.subr.bf16.mxu1 %v3861_v11  ;;  %v1008_v11 = vld [vmem:[#allocation8 + $0x3d8] sm:$0xff] }
 0x25f   : > { %1999 = vmatpush1.bf16.msra.mxu1 %v3860_v8  ;;  %v3957_v8 = vcombine.high %v1008_v11, %v1012_v3 }
 0x260   : > { %2000 = vmatprep.subr.bf16.mxu1 %v3869_v24  ;;  %v3956_v24 = vcombine.low %v1008_v11, %v1012_v3  ;;  %v4355_v11 = vld [vmem:[#allocation9 + $0x140] ss:$8 sps:$4 sm:$0xff]  }
 0x262   : > { %1932 = vmatmul.mubr.bf16.gmra.mrb[72].mxu1 %v5385_v39 }
 0x263   : > { %2001 = vmatpush1.bf16.msra.mxu1 %v3868_v27  ;;  %1941 = vmatprep.mubr.bf16.mxu1 %v5388_v63  ;;  %v2174_v27 = vunpack.c.0.s8 %v2173_v38 }
 0x264   : > { %2002 = vmatprep.subr.bf16.mxu1 %v3877_v29 }
 0x265   : > { %v5504_v29 = vsub.s32 %v2174_v27, %v5297_v56  ;;  %v4358_v27 = vld [vmem:[#allocation9 + $0x150] ss:$8 sps:$4 sm:$0xff]  }
 0x267   : > { %2003 = vmatpush1.bf16.msra.mxu1 %v3876_v55 }
 0x268   : > { %2004 = vmatprep.subr.bf16.mxu1 %v3885_v30 }
 0x26a   : > { %1942 = vmatmul.mubr.bf16.gmra.mrb[76].mxu1 %v5403_v40 }
 0x26b   : > { %2005 = vmatpush1.bf16.msra.mxu1 %v3884_v58  ;;  %1951 = vmatprep.mubr.bf16.mxu1 %v5406_v35 }
 0x26c   : > { %2006 = vmatprep.subr.bf16.mxu1 %v3893_v26 }
 0x26f   : > { %2007 = vmatpush1.bf16.msra.mxu1 %v3892_v47  ;;  %v4737_v47 = vmov 0  }
 0x270   : > { %2008 = vmatprep.subr.bf16.mxu1 %v3901_v0 }
 0x272   : > { %1952 = vmatmul.mubr.bf16.gmra.mrb[80].mxu1 %v5421_v18 }
 0x273   : > { %2009 = vmatpush1.bf16.msra.mxu1 %v3900_v42  ;;  %1961 = vmatprep.mubr.bf16.mxu1 %v5424_v20 }
 0x274   : > { %2010 = vmatprep.subr.bf16.mxu1 %v3909_v23  ;;  %v4348_v23 = vld [vmem:[#allocation9 + $0x114] ss:$8 sps:$4 sm:$0xff]  }
 0x277   : > { %2011 = vmatpush1.bf16.msra.mxu1 %v3908_v37 }
 0x278   : > { %2012 = vmatprep.subr.bf16.mxu1 %v3917_v6 }
 0x27a   : > { %1962 = vmatmul.mubr.bf16.gmra.mrb[84].mxu1 %v5439_v54 }
 0x27b   : > { %2013 = vmatpush1.bf16.msra.mxu1 %v3916_v34  ;;  %1971 = vmatprep.mubr.bf16.mxu1 %v5442_v13 }
 0x27c   : > { %2014 = vmatprep.subr.bf16.mxu1 %v3925_v12 }
 0x27f   : > { %2015 = vmatpush1.bf16.msra.mxu1 %v3924_v5 }
 0x280   : > { %2016 = vmatprep.subr.bf16.mxu1 %v3933_v1  ;;  %v4354_v1 = vld [vmem:[#allocation9 + $0x134] ss:$8 sps:$4 sm:$0xff]  }
 0x282   : > { %1972 = vmatmul.mubr.bf16.gmra.mrb[88].mxu1 %v5455_v10 }
 0x283   : > { %2017 = vmatpush1.bf16.msra.mxu1 %v3932_v45  ;;  %1981 = vmatprep.mubr.bf16.mxu1 %v5458_v33 }
 0x284   : > { %2018 = vmatprep.subr.bf16.mxu1 %v3941_v32  ;;  %v4352_v32 = vld [vmem:[#allocation9 + $0x130] ss:$8 sps:$4 sm:$0xff]  }
 0x287   : > { %2019 = vmatpush1.bf16.msra.mxu1 %v3940_v49 }
 0x288   : > { %2020 = vmatprep.subr.bf16.mxu1 %v3949_v25 }
 0x28a   : > { %1982 = vmatmul.mubr.bf16.gmra.mrb[92].mxu1 %v5465_v17 }
 0x28b   : > { %2021 = vmatpush1.bf16.msra.mxu1 %v3948_v48  ;;  %2024 = vmatprep.mubr.bf16.mxu1 %v5336_v43  ;;  %v2178_v43 = vrot.slane %v5509_v52, %v5504_v29 }
 0x28c   : > { %2022 = vmatprep.subr.bf16.mxu1 %v3957_v8  ;;  %v4360_v8 = vld [vmem:[#allocation9 + $0x154] ss:$8 sps:$4 sm:$0xff]  }
 0x28d   : > { %v2186_v7 = vcombine.high %v2178_v43, %v2178_v43 }
 0x28f   : > { %2023 = vmatpush1.bf16.msra.mxu1 %v3956_v24 }
 0x292   : > { %2025 = vmatmul.mubr.bf16.vlgmr.msra.gmra.mrb[96].mxu1 %v5344_v61  ;;  %v5516_v61 = vrot.slane %v2178_v43, %v5504_v29  ;;  %v4363_v43 = vld [vmem:[#allocation9 + $0x164] ss:$8 sps:$4 sm:$0xff]  }
 0x293   : > { %2034 = vmatprep.mubr.bf16.mxu1 %v5357_v62  ;;  %v5519_v62 = vrot.slane %v2186_v7, %v5504_v29 }
 0x294   : > { %v2221_v56 = vpack.i.b16 %v5516_v61, %v5516_v61 }
 0x295   : > { %v2228_v55 = vpack.i.b16 %v5519_v62, %v5519_v62 }
 0x297   : > { %v5531_v2 = vrot.slane %v2228_v55, %v5301_v31 }
 0x29a   : > { %2035 = vmatmul.mubr.bf16.gmra.mrb[100].mxu1 %v5367_v51 }
 0x29b   : > { %2044 = vmatprep.mubr.bf16.mxu1 %v5370_v59  ;;  %v5528_v59 = vrot.slane %v2221_v56, %v5301_v31 }
 0x2a2   : > { %2045 = vmatmul.mubr.bf16.gmra.mrb[104].mxu1 %v5385_v39 }
 0x2a3   : > { %2054 = vmatprep.mubr.bf16.mxu1 %v5388_v63 }
 0x2a5   : > { %v1687_v51 = vpop.f32.mrb[0].mxu1 }
 0x2a6   : > { %v1689_v30 = vpop.f32.mrb[1].mxu1 }
 0x2a7   : > { %v1691_v9 = vpop.f32.mrb[2].mxu1 }
 0x2a8   : > { %v2105_v58 = vpack.c.bf16 %v1691_v9, %v1687_v51  ;;  %v1693_v26 = vpop.f32.mrb[3].mxu1  ;;  %v4361_v51 = vld [vmem:[#allocation9 + $0x160] ss:$8 sps:$4 sm:$0xff]  }
 0x2a9   : > { %v2106_v39 = vpack.c.bf16 %v1693_v26, %v1689_v30 }
 0x2aa   : > { %v2276_v60 = vadd.bf16 %v5528_v59, %v2105_v58  ;;  %2055 = vmatmul.mubr.bf16.gmra.mrb[108].mxu1 %v5403_v40  ;;  %v4346_v40 = vld [vmem:[#allocation9 + $0x110] ss:$8 sps:$4 sm:$0xff]   ;;  %v4366_v58 = vld [vmem:[#allocation9 + $0x174] ss:$8 sps:$4 sm:$0xff]  }
 0x2ab   : > { %2064 = vmatprep.mubr.bf16.mxu1 %v5406_v35  ;;  %v2277_v63 = vadd.bf16 %v5531_v2, %v2106_v39 }
 0x2ac   : > { %v2340_v42 = vmax.bf16 %v4737_v47, %v2276_v60 }
 0x2ad   : > { %v1697_v50 = vpop.f32.mrb[4].mxu1  ;;  %v2341_v0 = vmax.bf16 %v4737_v47, %v2277_v63  ;;  %v4364_v63 = vld [vmem:[#allocation9 + $0x170] ss:$8 sps:$4 sm:$0xff]  }
 0x2ae   : > { %v1699_v16 = vpop.f32.mrb[5].mxu1 }
 0x2af   : > { %v1701_v28 = vpop.f32.mrb[6].mxu1  ;;  %3204 = vmatprep.mubr.bf16.mxu0 %v2341_v0 }
 0x2b0   : > { %v2113_v4 = vpack.c.bf16 %v1701_v28, %v1697_v50  ;;  %v1703_v37 = vpop.f32.mrb[7].mxu1  ;;  %3205 = vmatmul.mubr.bf16.vlgmr.msra.gmra.mrb[0].mxu0 %v2340_v42  ;;  %v4369_v50 = vld [vmem:[#allocation9 + $0x184] ss:$8 sps:$4 sm:$0xff]   ;;  %v4367_v42 = vld [vmem:[#allocation9 + $0x180] ss:$8 sps:$4 sm:$0xff]  }
 0x2b1   : > { %v2114_v6 = vpack.c.bf16 %v1703_v37, %v1699_v16  ;;  %3286 = vmatpush1.bf16.msra.mxu0 %v4343_v46 }
 0x2b2   : > { %v2284_v35 = vadd.bf16 %v5528_v59, %v2113_v4  ;;  %2065 = vmatmul.mubr.bf16.gmra.mrb[112].mxu1 %v5421_v18  ;;  %3287 = vmatprep.subr.bf16.mxu0 %v4348_v23  ;;  %v4372_v4 = vld [vmem:[#allocation9 + $0x194] ss:$8 sps:$4 sm:$0xff]  }
 0x2b3   : > { %v2285_v36 = vadd.bf16 %v5531_v2, %v2114_v6  ;;  %2074 = vmatprep.mubr.bf16.mxu1 %v5424_v20 }
 0x2b4   : > { %v2348_v5 = vmax.bf16 %v4737_v47, %v2284_v35  ;;  %v4370_v35 = vld [vmem:[#allocation9 + $0x190] ss:$8 sps:$4 sm:$0xff]  }
 0x2b5   : > { %3288 = vmatpush1.bf16.msra.mxu0 %v4346_v40  ;;  %v1707_v34 = vpop.f32.mrb[8].mxu1  ;;  %v2349_v12 = vmax.bf16 %v4737_v47, %v2285_v36  ;;  %v4375_v36 = vld [vmem:[#allocation9 + $0x1a4] ss:$8 sps:$4 sm:$0xff]  }
 0x2b6   : > { %v1709_v14 = vpop.f32.mrb[9].mxu1  ;;  %3289 = vmatprep.subr.bf16.mxu0 %v4351_v22 }
 0x2b7   : > { %v1711_v53 = vpop.f32.mrb[10].mxu1  ;;  %3214 = vmatprep.mubr.bf16.mxu0 %v2349_v12 }
 0x2b8   : > { %v2121_v19 = vpack.c.bf16 %v1711_v53, %v1707_v34  ;;  %v1713_v18 = vpop.f32.mrb[11].mxu1  ;;  %3215 = vmatmul.mubr.bf16.gmra.mrb[4].mxu0 %v2348_v5  ;;  %v4378_v53 = vld [vmem:[#allocation9 + $0x1b4] ss:$8 sps:$4 sm:$0xff]  }
 0x2b9   : > { %v2122_v45 = vpack.c.bf16 %v1713_v18, %v1709_v14  ;;  %3290 = vmatpush1.bf16.msra.mxu0 %v4349_v41  ;;  %v4373_v14 = vld [vmem:[#allocation9 + $0x1a0] ss:$8 sps:$4 sm:$0xff]  }
 0x2ba   : > { %v2292_v20 = vadd.bf16 %v5528_v59, %v2121_v19  ;;  %2075 = vmatmul.mubr.bf16.gmra.mrb[116].mxu1 %v5439_v54  ;;  %3291 = vmatprep.subr.bf16.mxu0 %v4354_v1 }
 0x2bb   : > { %v2293_v44 = vadd.bf16 %v5531_v2, %v2122_v45  ;;  %2084 = vmatprep.mubr.bf16.mxu1 %v5442_v13 }
 0x2bc   : > { %v2356_v48 = vmax.bf16 %v4737_v47, %v2292_v20  ;;  %v4376_v20 = vld [vmem:[#allocation9 + $0x1b0] ss:$8 sps:$4 sm:$0xff]  }
 0x2bd   : > { %3292 = vmatpush1.bf16.msra.mxu0 %v4352_v32  ;;  %v1717_v49 = vpop.f32.mrb[12].mxu1  ;;  %v2357_v25 = vmax.bf16 %v4737_v47, %v2293_v44  ;;  %v4381_v44 = vld [vmem:[#allocation9 + $0x1c4] ss:$8 sps:$4 sm:$0xff]  }
 0x2be   : > { %v1719_v3 = vpop.f32.mrb[13].mxu1  ;;  %3293 = vmatprep.subr.bf16.mxu0 %v4357_v15 }
 0x2bf   : > { %v1721_v24 = vpop.f32.mrb[14].mxu1  ;;  %3224 = vmatprep.mubr.bf16.mxu0 %v2357_v25 }
 0x2c0   : > { %v2129_v57 = vpack.c.bf16 %v1721_v24, %v1717_v49  ;;  %v1723_v54 = vpop.f32.mrb[15].mxu1  ;;  %3225 = vmatmul.mubr.bf16.gmra.mrb[8].mxu0 %v2356_v48  ;;  %v4384_v24 = vld [vmem:[#allocation9 + $0x1d4] ss:$8 sps:$4 sm:$0xff]  }
 0x2c1   : > { %v2130_v38 = vpack.c.bf16 %v1723_v54, %v1719_v3  ;;  %3294 = vmatpush1.bf16.msra.mxu0 %v4355_v11  ;;  %v4379_v3 = vld [vmem:[#allocation9 + $0x1c0] ss:$8 sps:$4 sm:$0xff]  }
 0x2c2   : > { %v2300_v13 = vadd.bf16 %v5528_v59, %v2129_v57  ;;  %2085 = vmatmul.mubr.bf16.gmra.mrb[120].mxu1 %v5455_v10  ;;  %3295 = vmatprep.subr.bf16.mxu0 %v4360_v8  ;;  %v2216_v57 = vcombine.high %v5516_v61, %v5516_v61 }
 0x2c3   : > { %v2301_v7 = vadd.bf16 %v5531_v2, %v2130_v38  ;;  %2094 = vmatprep.mubr.bf16.mxu1 %v5458_v33  ;;  %v2218_v38 = vcombine.high %v5519_v62, %v5519_v62 }
 0x2c4   : > { %v2364_v9 = vmax.bf16 %v4737_v47, %v2300_v13 }
 0x2c5   : > { %3296 = vmatpush1.bf16.msra.mxu0 %v4358_v27  ;;  %v1727_v56 = vpop.f32.mrb[16].mxu1  ;;  %v2365_v55 = vmax.bf16 %v4737_v47, %v2301_v7  ;;  %v4382_v7 = vld [vmem:[#allocation9 + $0x1d0] ss:$8 sps:$4 sm:$0xff]  }
 0x2c6   : > { %v1729_v30 = vpop.f32.mrb[17].mxu1  ;;  %3297 = vmatprep.subr.bf16.mxu0 %v4363_v43 }
 0x2c7   : > { %v1731_v26 = vpop.f32.mrb[18].mxu1  ;;  %3234 = vmatprep.mubr.bf16.mxu0 %v2365_v55  ;;  %v2235_v55 = vpack.i.b16 %v2216_v57, %v2216_v57 }
 0x2c8   : > { %v2137_v39 = vpack.c.bf16 %v1731_v26, %v1727_v56  ;;  %v1733_v10 = vpop.f32.mrb[19].mxu1  ;;  %3235 = vmatmul.mubr.bf16.gmra.mrb[12].mxu0 %v2364_v9  ;;  %v2242_v9 = vpack.i.b16 %v2218_v38, %v2218_v38  ;;  %v4385_v26 = vld [vmem:[#allocation9 + $0x1e0] ss:$8 sps:$4 sm:$0xff]   ;;  %v4408_v38 = vld [vmem:[#allocation9 + $0x254] ss:$8 sps:$4 sm:$0xff]  }
 0x2c9   : > { %v2138_v60 = vpack.c.bf16 %v1733_v10, %v1729_v30  ;;  %3298 = vmatpush1.bf16.msra.mxu0 %v4361_v51  ;;  %v4387_v51 = vld [vmem:[#allocation9 + $0x1e4] ss:$8 sps:$4 sm:$0xff]  }
 0x2ca   : > { %v2308_v33 = vadd.bf16 %v5528_v59, %v2137_v39  ;;  %2095 = vmatmul.mubr.bf16.gmra.mrb[124].mxu1 %v5465_v17  ;;  %3299 = vmatprep.subr.bf16.mxu0 %v4366_v58  ;;  %v5578_v39 = vrot.slane %v2235_v55, %v5301_v31 }
 0x2cb   : > { %v2309_v0 = vadd.bf16 %v5531_v2, %v2138_v60  ;;  %v4390_v60 = vld [vmem:[#allocation9 + $0x1f4] ss:$8 sps:$4 sm:$0xff]  }
 0x2cc   : > { %v2372_v28 = vmax.bf16 %v4737_v47, %v2308_v33 }
 0x2cd   : > { %3300 = vmatpush1.bf16.msra.mxu0 %v4364_v63  ;;  %v1737_v46 = vpop.f32.mrb[20].mxu1  ;;  %v2373_v16 = vmax.bf16 %v4737_v47, %v2309_v0  ;;  %v5582_v63 = vrot.slane %v2242_v9, %v5301_v31  ;;  %v4388_v0 = vld [vmem:[#allocation9 + $0x1f0] ss:$8 sps:$4 sm:$0xff]  }
 0x2ce   : > { %v1739_v23 = vpop.f32.mrb[21].mxu1  ;;  %3301 = vmatprep.subr.bf16.mxu0 %v4369_v50 }
 0x2cf   : > { %v1741_v37 = vpop.f32.mrb[22].mxu1  ;;  %3244 = vmatprep.mubr.bf16.mxu0 %v2373_v16  ;;  %v4393_v16 = vld [vmem:[#allocation9 + $0x204] ss:$8 sps:$4 sm:$0xff]  }
 0x2d0   : > { %v2145_v6 = vpack.c.bf16 %v1741_v37, %v1737_v46  ;;  %v1743_v40 = vpop.f32.mrb[23].mxu1  ;;  %3245 = vmatmul.mubr.bf16.gmra.mrb[16].mxu0 %v2372_v28 }
 0x2d1   : > { %v2146_v17 = vpack.c.bf16 %v1743_v40, %v1739_v23  ;;  %3302 = vmatpush1.bf16.msra.mxu0 %v4367_v42  ;;  %v4396_v40 = vld [vmem:[#allocation9 + $0x214] ss:$8 sps:$4 sm:$0xff]  }
 0x2d2   : > { %v2316_v22 = vadd.bf16 %v5528_v59, %v2145_v6  ;;  %3303 = vmatprep.subr.bf16.mxu0 %v4372_v4  ;;  %v4391_v4 = vld [vmem:[#allocation9 + $0x200] ss:$8 sps:$4 sm:$0xff]  }
 0x2d3   : > { %v2317_v34 = vadd.bf16 %v5531_v2, %v2146_v17 }
 0x2d4   : > { %v2380_v1 = vmax.bf16 %v4737_v47, %v2316_v22 }
 0x2d5   : > { %3304 = vmatpush1.bf16.msra.mxu0 %v4370_v35  ;;  %v1747_v12 = vpop.f32.mrb[24].mxu1  ;;  %v2381_v41 = vmax.bf16 %v4737_v47, %v2317_v34  ;;  %v4394_v34 = vld [vmem:[#allocation9 + $0x210] ss:$8 sps:$4 sm:$0xff]  }
 0x2d6   : > { %v1749_v5 = vpop.f32.mrb[25].mxu1  ;;  %3305 = vmatprep.subr.bf16.mxu0 %v4375_v36 }
 0x2d7   : > { %v1751_v19 = vpop.f32.mrb[26].mxu1  ;;  %3254 = vmatprep.mubr.bf16.mxu0 %v2381_v41  ;;  %v4399_v41 = vld [vmem:[#allocation9 + $0x224] ss:$8 sps:$4 sm:$0xff]  }
 0x2d8   : > { %v2153_v18 = vpack.c.bf16 %v1751_v19, %v1747_v12  ;;  %v1753_v45 = vpop.f32.mrb[27].mxu1  ;;  %3255 = vmatmul.mubr.bf16.gmra.mrb[20].mxu0 %v2380_v1 }
 0x2d9   : > { %v2154_v32 = vpack.c.bf16 %v1753_v45, %v1749_v5  ;;  %3306 = vmatpush1.bf16.msra.mxu0 %v4373_v14  ;;  %v4402_v45 = vld [vmem:[#allocation9 + $0x234] ss:$8 sps:$4 sm:$0xff]  }
 0x2da   : > { %v2324_v15 = vadd.bf16 %v5528_v59, %v2153_v18  ;;  %3307 = vmatprep.subr.bf16.mxu0 %v4378_v53  ;;  %v4397_v53 = vld [vmem:[#allocation9 + $0x220] ss:$8 sps:$4 sm:$0xff]  }
 0x2db   : > { %v2325_v49 = vadd.bf16 %v5531_v2, %v2154_v32 }
 0x2dc   : > { %v2388_v8 = vmax.bf16 %v4737_v47, %v2324_v15 }
 0x2dd   : > { %3308 = vmatpush1.bf16.msra.mxu0 %v4376_v20  ;;  %v1757_v25 = vpop.f32.mrb[28].mxu1  ;;  %v2389_v11 = vmax.bf16 %v4737_v47, %v2325_v49  ;;  %v4400_v49 = vld [vmem:[#allocation9 + $0x230] ss:$8 sps:$4 sm:$0xff]  }
 0x2de   : > { %v1759_v48 = vpop.f32.mrb[29].mxu1  ;;  %3309 = vmatprep.subr.bf16.mxu0 %v4381_v44 }
 0x2df   : > { %v1761_v54 = vpop.f32.mrb[30].mxu1  ;;  %3264 = vmatprep.mubr.bf16.mxu0 %v2389_v11  ;;  %v4405_v11 = vld [vmem:[#allocation9 + $0x244] ss:$8 sps:$4 sm:$0xff]  }
 0x2e0   : > { %v2161_v27 = vpack.c.bf16 %v1761_v54, %v1757_v25  ;;  %v1763_v13 = vpop.f32.mrb[31].mxu1  ;;  %3265 = vmatmul.mubr.bf16.gmra.mrb[24].mxu0 %v2388_v8 }
 0x2e1   : > { %v2162_v43 = vpack.c.bf16 %v1763_v13, %v1759_v48  ;;  %3310 = vmatpush1.bf16.msra.mxu0 %v4379_v3 }
 0x2e2   : > { %v2332_v56 = vadd.bf16 %v5528_v59, %v2161_v27  ;;  %3311 = vmatprep.subr.bf16.mxu0 %v4384_v24  ;;  %v4403_v24 = vld [vmem:[#allocation9 + $0x240] ss:$8 sps:$4 sm:$0xff]  }
 0x2e3   : > { %v2333_v30 = vadd.bf16 %v5531_v2, %v2162_v43 }
 0x2e4   : > { %v2396_v10 = vmax.bf16 %v4737_v47, %v2332_v56  ;;  %v4406_v56 = vld [vmem:[#allocation9 + $0x250] ss:$8 sps:$4 sm:$0xff]  }
 0x2e5   : > { %3312 = vmatpush1.bf16.msra.mxu0 %v4382_v7  ;;  %v1800_v61 = vpop.f32.mrb[32].mxu1  ;;  %v2397_v58 = vmax.bf16 %v4737_v47, %v2333_v30 }
 0x2e6   : > { %v1802_v62 = vpop.f32.mrb[33].mxu1  ;;  %3313 = vmatprep.subr.bf16.mxu0 %v4387_v51  ;;  %v4411_v51 = vld [vmem:[#allocation9 + $0x264] ss:$8 sps:$4 sm:$0xff]  }
 0x2e7   : > { %v1804_v59 = vpop.f32.mrb[34].mxu1  ;;  %3274 = vmatprep.mubr.bf16.mxu0 %v2397_v58  ;;  %v4409_v58 = vld [vmem:[#allocation9 + $0x260] ss:$8 sps:$4 sm:$0xff]  }
 0x2e8   : > { %v2107_v2 = vpack.c.bf16 %v1804_v59, %v1800_v61  ;;  %v1806_v33 = vpop.f32.mrb[35].mxu1  ;;  %3275 = vmatmul.mubr.bf16.gmra.mrb[28].mxu0 %v2396_v10  ;;  %v4414_v10 = vld [vmem:[#allocation9 + $0x274] ss:$8 sps:$4 sm:$0xff]  }
 0x2e9   : > { %v2108_v50 = vpack.c.bf16 %v1806_v33, %v1802_v62  ;;  %3314 = vmatpush1.bf16.msra.mxu0 %v4385_v26 }
 0x2ea   : > { %v2278_v46 = vadd.bf16 %v5578_v39, %v2107_v2  ;;  %3315 = vmatprep.subr.bf16.mxu0 %v4390_v60 }
 0x2eb   : > { %v2279_v42 = vadd.bf16 %v5582_v63, %v2108_v50  ;;  %v4412_v50 = vld [vmem:[#allocation9 + $0x270] ss:$8 sps:$4 sm:$0xff]  }
 0x2ec   : > { %v2342_v37 = vmax.bf16 %v4737_v47, %v2278_v46  ;;  %v4417_v46 = vld [vmem:[#allocation9 + $0x284] ss:$8 sps:$4 sm:$0xff]  }
 0x2ed   : > { %3316 = vmatpush1.bf16.msra.mxu0 %v4388_v0  ;;  %v1810_v23 = vpop.f32.mrb[36].mxu1  ;;  %v2343_v28 = vmax.bf16 %v4737_v47, %v2279_v42 }
 0x2ee   : > { %v1812_v6 = vpop.f32.mrb[37].mxu1  ;;  %3398 = vmatprep.subr.bf16.mxu0 %v4393_v16 }
 0x2ef   : > { %v1814_v17 = vpop.f32.mrb[38].mxu1  ;;  %3317 = vmatprep.mubr.bf16.mxu0 %v2343_v28  ;;  %v4415_v28 = vld [vmem:[#allocation9 + $0x280] ss:$8 sps:$4 sm:$0xff]  }
 0x2f0   : > { %v2115_v35 = vpack.c.bf16 %v1814_v17, %v1810_v23  ;;  %v1816_v22 = vpop.f32.mrb[39].mxu1  ;;  %3318 = vmatmul.mubr.bf16.vlgmr.msra.gmra.mrb[0].mxu0 %v2342_v37 }
 0x2f1   : > { %v2116_v36 = vpack.c.bf16 %v1816_v22, %v1812_v6  ;;  %3399 = vmatpush1.bf16.msra.mxu0 %v4391_v4  ;;  %v4420_v6 = vld [vmem:[#allocation9 + $0x294] ss:$8 sps:$4 sm:$0xff]  }
 0x2f2   : > { %v2286_v12 = vadd.bf16 %v5578_v39, %v2115_v35  ;;  %3400 = vmatprep.subr.bf16.mxu0 %v4396_v40 }
 0x2f3   : > { %v2287_v14 = vadd.bf16 %v5582_v63, %v2116_v36  ;;  %v4418_v36 = vld [vmem:[#allocation9 + $0x290] ss:$8 sps:$4 sm:$0xff]  }
 0x2f4   : > { %v2350_v18 = vmax.bf16 %v4737_v47, %v2286_v12  ;;  %v4423_v12 = vld [vmem:[#allocation9 + $0x2a4] ss:$8 sps:$4 sm:$0xff]  }
 0x2f5   : > { %3401 = vmatpush1.bf16.msra.mxu0 %v4394_v34  ;;  %v1820_v5 = vpop.f32.mrb[40].mxu1  ;;  %v2351_v1 = vmax.bf16 %v4737_v47, %v2287_v14  ;;  %v2171_v14 = vcombine.high %v5509_v52, %v5509_v52  ;;  %v4424_v52 = vld [vmem:[#allocation9 + $0x2b0] ss:$8 sps:$4 sm:$0xff]  }
 0x2f6   : > { %v1822_v19 = vpop.f32.mrb[41].mxu1  ;;  %3402 = vmatprep.subr.bf16.mxu0 %v4399_v41 }
 0x2f7   : > { %v1824_v32 = vpop.f32.mrb[42].mxu1  ;;  %3327 = vmatprep.mubr.bf16.mxu0 %v2351_v1 }
 0x2f8   : > { %v2123_v20 = vpack.c.bf16 %v1824_v32, %v1820_v5  ;;  %v1826_v15 = vpop.f32.mrb[43].mxu1  ;;  %3328 = vmatmul.mubr.bf16.gmra.mrb[4].mxu0 %v2350_v18 }
 0x2f9   : > { %v2124_v44 = vpack.c.bf16 %v1826_v15, %v1822_v19  ;;  %3403 = vmatpush1.bf16.msra.mxu0 %v4397_v53  ;;  %v4421_v53 = vld [vmem:[#allocation9 + $0x2a0] ss:$8 sps:$4 sm:$0xff]  }
 0x2fa   : > { %v2294_v25 = vadd.bf16 %v5578_v39, %v2123_v20  ;;  %3404 = vmatprep.subr.bf16.mxu0 %v4402_v45  ;;  %v4426_v45 = vld [vmem:[#allocation9 + $0x2b4] ss:$8 sps:$4 sm:$0xff]   ;;  %v2185_v20 = vrot.slane %v2171_v14, %v5504_v29  ;;  %v4443_v14 = vld [vmem:[#allocation9 + $0x310] ss:$8 sps:$4 sm:$0xff]  }
 0x2fb   : > { %v2295_v3 = vadd.bf16 %v5582_v63, %v2124_v44 }
 0x2fc   : > { %v2358_v54 = vmax.bf16 %v4737_v47, %v2294_v25 }
 0x2fd   : > { %3405 = vmatpush1.bf16.msra.mxu0 %v4400_v49  ;;  %v1830_v48 = vpop.f32.mrb[44].mxu1  ;;  %v2359_v8 = vmax.bf16 %v4737_v47, %v2295_v3 }
 0x2fe   : > { %v1832_v57 = vpop.f32.mrb[45].mxu1  ;;  %3406 = vmatprep.subr.bf16.mxu0 %v4405_v11  ;;  %v4429_v11 = vld [vmem:[#allocation9 + $0x2c4] ss:$8 sps:$4 sm:$0xff]  }
 0x2ff   : > { %v1834_v27 = vpop.f32.mrb[46].mxu1  ;;  %3337 = vmatprep.mubr.bf16.mxu0 %v2359_v8 }
 0x300   : > { %v2131_v13 = vpack.c.bf16 %v1834_v27, %v1830_v48  ;;  %v1836_v43 = vpop.f32.mrb[47].mxu1  ;;  %3338 = vmatmul.mubr.bf16.gmra.mrb[8].mxu0 %v2358_v54  ;;  %v2187_v48 = vcombine.high %v2185_v20, %v2185_v20  ;;  %v4432_v27 = vld [vmem:[#allocation9 + $0x2d4] ss:$8 sps:$4 sm:$0xff]  }
 0x301   : > { %v2132_v7 = vpack.c.bf16 %v1836_v43, %v1832_v57  ;;  %3407 = vmatpush1.bf16.msra.mxu0 %v4403_v24  ;;  %v4427_v57 = vld [vmem:[#allocation9 + $0x2c0] ss:$8 sps:$4 sm:$0xff]  }
 0x302   : > { %v2302_v55 = vadd.bf16 %v5578_v39, %v2131_v13  ;;  %3408 = vmatprep.subr.bf16.mxu0 %v4408_v38  ;;  %v5616_v13 = vrot.slane %v2185_v20, %v5504_v29 }
 0x303   : > { %v2303_v30 = vadd.bf16 %v5582_v63, %v2132_v7  ;;  %v5619_v7 = vrot.slane %v2187_v48, %v5504_v29  ;;  %v4454_v48 = vld [vmem:[#allocation9 + $0x344] ss:$8 sps:$4 sm:$0xff]  }
 0x304   : > { %v2366_v62 = vmax.bf16 %v4737_v47, %v2302_v55 }
 0x305   : > { %3409 = vmatpush1.bf16.msra.mxu0 %v4406_v56  ;;  %v1840_v9 = vpop.f32.mrb[48].mxu1  ;;  %v2367_v61 = vmax.bf16 %v4737_v47, %v2303_v30  ;;  %v4430_v30 = vld [vmem:[#allocation9 + $0x2d0] ss:$8 sps:$4 sm:$0xff]  }
 0x306   : > { %v1842_v26 = vpop.f32.mrb[49].mxu1  ;;  %3410 = vmatprep.subr.bf16.mxu0 %v4411_v51 }
 0x307   : > { %v1844_v60 = vpop.f32.mrb[50].mxu1  ;;  %3347 = vmatprep.mubr.bf16.mxu0 %v2367_v61  ;;  %v2249_v61 = vpack.i.b16 %v5616_v13, %v5616_v13 }
 0x308   : > { %v2139_v59 = vpack.c.bf16 %v1844_v60, %v1840_v9  ;;  %v1846_v2 = vpop.f32.mrb[51].mxu1  ;;  %3348 = vmatmul.mubr.bf16.gmra.mrb[12].mxu0 %v2366_v62  ;;  %v2256_v62 = vpack.i.b16 %v5619_v7, %v5619_v7  ;;  %v4434_v60 = vld [vmem:[#allocation9 + $0x2e0] ss:$8 sps:$4 sm:$0xff]  }
 0x309   : > { %v2140_v33 = vpack.c.bf16 %v1846_v2, %v1842_v26  ;;  %3411 = vmatpush1.bf16.msra.mxu0 %v4409_v58  ;;  %v4436_v58 = vld [vmem:[#allocation9 + $0x2e4] ss:$8 sps:$4 sm:$0xff]   ;;  %v5629_v2 = vrot.slane %v2249_v61, %v5301_v31 }
 0x30a   : > { %v2310_v0 = vadd.bf16 %v5578_v39, %v2139_v59  ;;  %3412 = vmatprep.subr.bf16.mxu0 %v4414_v10 }
 0x30b   : > { %v2311_v16 = vadd.bf16 %v5582_v63, %v2140_v33  ;;  %v4439_v33 = vld [vmem:[#allocation9 + $0x2f4] ss:$8 sps:$4 sm:$0xff]  }
 0x30c   : > { %v2374_v37 = vmax.bf16 %v4737_v47, %v2310_v0 }
 0x30d   : > { %3413 = vmatpush1.bf16.msra.mxu0 %v4412_v50  ;;  %v1850_v42 = vpop.f32.mrb[52].mxu1  ;;  %v2375_v23 = vmax.bf16 %v4737_v47, %v2311_v16 }
 0x30e   : > { %v1852_v4 = vpop.f32.mrb[53].mxu1  ;;  %3414 = vmatprep.subr.bf16.mxu0 %v4417_v46 }
 0x30f   : > { %v1854_v40 = vpop.f32.mrb[54].mxu1  ;;  %3357 = vmatprep.mubr.bf16.mxu0 %v2375_v23 }
 0x310   : > { %v2147_v17 = vpack.c.bf16 %v1854_v40, %v1850_v42  ;;  %v1856_v35 = vpop.f32.mrb[55].mxu1  ;;  %3358 = vmatmul.mubr.bf16.gmra.mrb[16].mxu0 %v2374_v37  ;;  %v4437_v42 = vld [vmem:[#allocation9 + $0x2f0] ss:$8 sps:$4 sm:$0xff]   ;;  %v4440_v40 = vld [vmem:[#allocation9 + $0x300] ss:$8 sps:$4 sm:$0xff]  }
 0x311   : > { %v2148_v22 = vpack.c.bf16 %v1856_v35, %v1852_v4  ;;  %3415 = vmatpush1.bf16.msra.mxu0 %v4415_v28  ;;  %v4442_v28 = vld [vmem:[#allocation9 + $0x304] ss:$8 sps:$4 sm:$0xff]  }
 0x312   : > { %v2318_v34 = vadd.bf16 %v5578_v39, %v2147_v17  ;;  %3416 = vmatprep.subr.bf16.mxu0 %v4420_v6 }
 0x313   : > { %v2319_v41 = vadd.bf16 %v5582_v63, %v2148_v22  ;;  %v4445_v22 = vld [vmem:[#allocation9 + $0x314] ss:$8 sps:$4 sm:$0xff]  }
 0x314   : > { %v2382_v18 = vmax.bf16 %v4737_v47, %v2318_v34 }
 0x315   : > { %3417 = vmatpush1.bf16.msra.mxu0 %v4418_v36  ;;  %v1860_v5 = vpop.f32.mrb[56].mxu1  ;;  %v2383_v1 = vmax.bf16 %v4737_v47, %v2319_v41 }
 0x316   : > { %v1862_v19 = vpop.f32.mrb[57].mxu1  ;;  %3418 = vmatprep.subr.bf16.mxu0 %v4423_v12 }
 0x317   : > { %v1864_v32 = vpop.f32.mrb[58].mxu1  ;;  %3367 = vmatprep.mubr.bf16.mxu0 %v2383_v1  ;;  %v4448_v1 = vld [vmem:[#allocation9 + $0x324] ss:$8 sps:$4 sm:$0xff]  }
 0x318   : > { %v2155_v15 = vpack.c.bf16 %v1864_v32, %v1860_v5  ;;  %v1866_v44 = vpop.f32.mrb[59].mxu1  ;;  %3368 = vmatmul.mubr.bf16.gmra.mrb[20].mxu0 %v2382_v18 }
 0x319   : > { %v2156_v49 = vpack.c.bf16 %v1866_v44, %v1862_v19  ;;  %3419 = vmatpush1.bf16.msra.mxu0 %v4421_v53 }
 0x31a   : > { %v2326_v25 = vadd.bf16 %v5578_v39, %v2155_v15  ;;  %3420 = vmatprep.subr.bf16.mxu0 %v4426_v45  ;;  %v4446_v45 = vld [vmem:[#allocation9 + $0x320] ss:$8 sps:$4 sm:$0xff]   ;;  %v4451_v15 = vld [vmem:[#allocation9 + $0x334] ss:$8 sps:$4 sm:$0xff]  }
 0x31b   : > { %v2327_v3 = vadd.bf16 %v5582_v63, %v2156_v49 }
 0x31c   : > { %v2390_v38 = vmax.bf16 %v4737_v47, %v2326_v25 }
 0x31d   : > { %3421 = vmatpush1.bf16.msra.mxu0 %v4424_v52  ;;  %v1870_v8 = vpop.f32.mrb[60].mxu1  ;;  %v2391_v24 = vmax.bf16 %v4737_v47, %v2327_v3 }
 0x31e   : > { %v1872_v54 = vpop.f32.mrb[61].mxu1  ;;  %3422 = vmatprep.subr.bf16.mxu0 %v4429_v11  ;;  %v4449_v11 = vld [vmem:[#allocation9 + $0x330] ss:$8 sps:$4 sm:$0xff]  }
 0x31f   : > { %v1874_v43 = vpop.f32.mrb[62].mxu1  ;;  %3377 = vmatprep.mubr.bf16.mxu0 %v2391_v24 }
 0x320   : > { %v2163_v56 = vpack.c.bf16 %v1874_v43, %v1870_v8  ;;  %v1876_v55 = vpop.f32.mrb[63].mxu1  ;;  %3378 = vmatmul.mubr.bf16.gmra.mrb[24].mxu0 %v2390_v38  ;;  %v4457_v43 = vld [vmem:[#allocation9 + $0x354] ss:$8 sps:$4 sm:$0xff]  }
 0x321   : > { %v2164_v51 = vpack.c.bf16 %v1876_v55, %v1872_v54  ;;  %3423 = vmatpush1.bf16.msra.mxu0 %v4427_v57  ;;  %v4452_v54 = vld [vmem:[#allocation9 + $0x340] ss:$8 sps:$4 sm:$0xff]  }
 0x322   : > { %v2334_v9 = vadd.bf16 %v5578_v39, %v2163_v56  ;;  %3424 = vmatprep.subr.bf16.mxu0 %v4432_v27 }
 0x323   : > { %v2335_v26 = vadd.bf16 %v5582_v63, %v2164_v51  ;;  %v5633_v63 = vrot.slane %v2256_v62, %v5301_v31 }
 0x324   : > { %v2398_v39 = vmax.bf16 %v4737_v47, %v2334_v9  ;;  %v4455_v9 = vld [vmem:[#allocation9 + $0x350] ss:$8 sps:$4 sm:$0xff]  }
 0x325   : > { %3425 = vmatpush1.bf16.msra.mxu0 %v4430_v30  ;;  %v1913_v29 = vpop.f32.mrb[64].mxu1  ;;  %v2399_v10 = vmax.bf16 %v4737_v47, %v2335_v26 }
 0x326   : > { %v1915_v59 = vpop.f32.mrb[65].mxu1  ;;  %3426 = vmatprep.subr.bf16.mxu0 %v4436_v58  ;;  %v4460_v58 = vld [vmem:[#allocation9 + $0x364] ss:$8 sps:$4 sm:$0xff]  }
 0x327   : > { %v1917_v50 = vpop.f32.mrb[66].mxu1  ;;  %3387 = vmatprep.mubr.bf16.mxu0 %v2399_v10  ;;  %v4458_v10 = vld [vmem:[#allocation9 + $0x360] ss:$8 sps:$4 sm:$0xff]  }
 0x328   : > { %v2109_v0 = vpack.c.bf16 %v1917_v50, %v1913_v29  ;;  %v1919_v46 = vpop.f32.mrb[67].mxu1  ;;  %3388 = vmatmul.mubr.bf16.gmra.mrb[28].mxu0 %v2398_v39  ;;  %v4463_v39 = vld [vmem:[#allocation9 + $0x374] ss:$8 sps:$4 sm:$0xff]  }
 0x329   : > { %v2110_v16 = vpack.c.bf16 %v1919_v46, %v1915_v59  ;;  %3427 = vmatpush1.bf16.msra.mxu0 %v4434_v60 }
 0x32a   : > { %v2280_v23 = vadd.bf16 %v5629_v2, %v2109_v0  ;;  %3428 = vmatprep.subr.bf16.mxu0 %v4439_v33 }
 0x32b   : > { %v2281_v4 = vadd.bf16 %v5633_v63, %v2110_v16  ;;  %v4461_v16 = vld [vmem:[#allocation9 + $0x370] ss:$8 sps:$4 sm:$0xff]  }
 0x32c   : > { %v2344_v17 = vmax.bf16 %v4737_v47, %v2280_v23  ;;  %v4466_v23 = vld [vmem:[#allocation9 + $0x384] ss:$8 sps:$4 sm:$0xff]  }
 0x32d   : > { %3429 = vmatpush1.bf16.msra.mxu0 %v4437_v42  ;;  %v1923_v37 = vpop.f32.mrb[68].mxu1  ;;  %v2345_v6 = vmax.bf16 %v4737_v47, %v2281_v4 }
 0x32e   : > { %v1925_v35 = vpop.f32.mrb[69].mxu1  ;;  %3511 = vmatprep.subr.bf16.mxu0 %v4442_v28 }
 0x32f   : > { %v1927_v36 = vpop.f32.mrb[70].mxu1  ;;  %3430 = vmatprep.mubr.bf16.mxu0 %v2345_v6  ;;  %v4464_v6 = vld [vmem:[#allocation9 + $0x380] ss:$8 sps:$4 sm:$0xff]  }
 0x330   : > { %v2117_v34 = vpack.c.bf16 %v1927_v36, %v1923_v37  ;;  %v1929_v12 = vpop.f32.mrb[71].mxu1  ;;  %3431 = vmatmul.mubr.bf16.vlgmr.msra.gmra.mrb[0].mxu0 %v2344_v17 }
 0x331   : > { %v2118_v41 = vpack.c.bf16 %v1929_v12, %v1925_v35  ;;  %3512 = vmatpush1.bf16.msra.mxu0 %v4440_v40  ;;  %v4469_v35 = vld [vmem:[#allocation9 + $0x394] ss:$8 sps:$4 sm:$0xff]  }
 0x332   : > { %v2288_v5 = vadd.bf16 %v5629_v2, %v2117_v34  ;;  %3513 = vmatprep.subr.bf16.mxu0 %v4445_v22 }
 0x333   : > { %v2289_v53 = vadd.bf16 %v5633_v63, %v2118_v41  ;;  %v4467_v41 = vld [vmem:[#allocation9 + $0x390] ss:$8 sps:$4 sm:$0xff]  }
 0x334   : > { %v2352_v20 = vmax.bf16 %v4737_v47, %v2288_v5  ;;  %v4472_v5 = vld [vmem:[#allocation9 + $0x3a4] ss:$8 sps:$4 sm:$0xff]  }
 0x335   : > { %3514 = vmatpush1.bf16.msra.mxu0 %v4443_v14  ;;  %v1933_v19 = vpop.f32.mrb[72].mxu1  ;;  %v2353_v18 = vmax.bf16 %v4737_v47, %v2289_v53 }
 0x336   : > { %v1935_v32 = vpop.f32.mrb[73].mxu1  ;;  %3515 = vmatprep.subr.bf16.mxu0 %v4448_v1 }
 0x337   : > { %v1937_v44 = vpop.f32.mrb[74].mxu1  ;;  %3440 = vmatprep.mubr.bf16.mxu0 %v2353_v18  ;;  %v4470_v18 = vld [vmem:[#allocation9 + $0x3a0] ss:$8 sps:$4 sm:$0xff]  }
 0x338   : > { %v2125_v49 = vpack.c.bf16 %v1937_v44, %v1933_v19  ;;  %v1939_v52 = vpop.f32.mrb[75].mxu1  ;;  %3441 = vmatmul.mubr.bf16.gmra.mrb[4].mxu0 %v2352_v20  ;;  %v4475_v20 = vld [vmem:[#allocation9 + $0x3b4] ss:$8 sps:$4 sm:$0xff]  }
 0x339   : > { %v2126_v25 = vpack.c.bf16 %v1939_v52, %v1935_v32  ;;  %3516 = vmatpush1.bf16.msra.mxu0 %v4446_v45 }
 0x33a   : > { %v2296_v3 = vadd.bf16 %v5629_v2, %v2125_v49  ;;  %3517 = vmatprep.subr.bf16.mxu0 %v4451_v15 }
 0x33b   : > { %v2297_v8 = vadd.bf16 %v5633_v63, %v2126_v25  ;;  %v4473_v25 = vld [vmem:[#allocation9 + $0x3b0] ss:$8 sps:$4 sm:$0xff]  }
 0x33c   : > { %v2360_v27 = vmax.bf16 %v4737_v47, %v2296_v3  ;;  %v4478_v3 = vld [vmem:[#allocation9 + $0x3c4] ss:$8 sps:$4 sm:$0xff]  }
 0x33d   : > { %3518 = vmatpush1.bf16.msra.mxu0 %v4449_v11  ;;  %v1943_v24 = vpop.f32.mrb[76].mxu1  ;;  %v2361_v57 = vmax.bf16 %v4737_v47, %v2297_v8 }
 0x33e   : > { %v1945_v38 = vpop.f32.mrb[77].mxu1  ;;  %3519 = vmatprep.subr.bf16.mxu0 %v4454_v48 }
 0x33f   : > { %v1947_v56 = vpop.f32.mrb[78].mxu1  ;;  %3450 = vmatprep.mubr.bf16.mxu0 %v2361_v57  ;;  %v4476_v57 = vld [vmem:[#allocation9 + $0x3c0] ss:$8 sps:$4 sm:$0xff]  }
 0x340   : > { %v2133_v55 = vpack.c.bf16 %v1947_v56, %v1943_v24  ;;  %v1949_v51 = vpop.f32.mrb[79].mxu1  ;;  %3451 = vmatmul.mubr.bf16.gmra.mrb[8].mxu0 %v2360_v27  ;;  %v4481_v27 = vld [vmem:[#allocation9 + $0x3d4] ss:$8 sps:$4 sm:$0xff]  }
 0x341   : > { %v2134_v30 = vpack.c.bf16 %v1949_v51, %v1945_v38  ;;  %3520 = vmatpush1.bf16.msra.mxu0 %v4452_v54 }
 0x342   : > { %v2304_v61 = vadd.bf16 %v5629_v2, %v2133_v55  ;;  %3521 = vmatprep.subr.bf16.mxu0 %v4457_v43  ;;  %v2217_v43 = vcombine.high %v5616_v13, %v5616_v13  ;;  %v2219_v55 = vcombine.high %v5619_v7, %v5619_v7 }
 0x343   : > { %v2305_v26 = vadd.bf16 %v5633_v63, %v2134_v30 }
 0x344   : > { %v2368_v59 = vmax.bf16 %v4737_v47, %v2304_v61  ;;  %v4479_v61 = vld [vmem:[#allocation9 + $0x3d0] ss:$8 sps:$4 sm:$0xff]  }
 0x345   : > { %3522 = vmatpush1.bf16.msra.mxu0 %v4455_v9  ;;  %v1953_v62 = vpop.f32.mrb[80].mxu1  ;;  %v2369_v29 = vmax.bf16 %v4737_v47, %v2305_v26  ;;  %v2263_v26 = vpack.i.b16 %v2217_v43, %v2217_v43 }
 0x346   : > { %v1955_v60 = vpop.f32.mrb[81].mxu1  ;;  %3523 = vmatprep.subr.bf16.mxu0 %v4460_v58 }
 0x347   : > { %v1957_v33 = vpop.f32.mrb[82].mxu1  ;;  %3460 = vmatprep.mubr.bf16.mxu0 %v2369_v29 }
 0x348   : > { %v2141_v50 = vpack.c.bf16 %v1957_v33, %v1953_v62  ;;  %v1959_v0 = vpop.f32.mrb[83].mxu1  ;;  %3461 = vmatmul.mubr.bf16.gmra.mrb[12].mxu0 %v2368_v59  ;;  %v4484_v62 = vld [vmem:[#allocation9 + $0x3e4] ss:$8 sps:$4 sm:$0xff]   ;;  %v4482_v59 = vld [vmem:[#allocation9 + $0x3e0] ss:$8 sps:$4 sm:$0xff]  }
 0x349   : > { %v2142_v46 = vpack.c.bf16 %v1959_v0, %v1955_v60  ;;  %3524 = vmatpush1.bf16.msra.mxu0 %v4458_v10  ;;  %v2270_v10 = vpack.i.b16 %v2219_v55, %v2219_v55 }
 0x34a   : > { %v2312_v42 = vadd.bf16 %v5629_v2, %v2141_v50  ;;  %3525 = vmatprep.subr.bf16.mxu0 %v4463_v39  ;;  %v5671_v39 = vrot.slane %v2263_v26, %v5301_v31  ;;  %v4487_v50 = vld [vmem:[#allocation9 + $0x3f4] ss:$8 sps:$4 sm:$0xff]  }
 0x34b   : > { %v2313_v28 = vadd.bf16 %v5633_v63, %v2142_v46  ;;  %v5675_v0 = vrot.slane %v2270_v10, %v5301_v31 }
 0x34c   : > { %v2376_v17 = vmax.bf16 %v4737_v47, %v2312_v42  ;;  %v4485_v42 = vld [vmem:[#allocation9 + $0x3f0] ss:$8 sps:$4 sm:$0xff]  }
 0x34d   : > { %3526 = vmatpush1.bf16.msra.mxu0 %v4461_v16  ;;  %v1963_v4 = vpop.f32.mrb[84].mxu1  ;;  %v2377_v37 = vmax.bf16 %v4737_v47, %v2313_v28 }
 0x34e   : > { %v1965_v40 = vpop.f32.mrb[85].mxu1  ;;  %3527 = vmatprep.subr.bf16.mxu0 %v4466_v23 }
 0x34f   : > { %v1967_v22 = vpop.f32.mrb[86].mxu1  ;;  %3470 = vmatprep.mubr.bf16.mxu0 %v2377_v37 }
 0x350   : > { %v2149_v36 = vpack.c.bf16 %v1967_v22, %v1963_v4  ;;  %v1969_v34 = vpop.f32.mrb[87].mxu1  ;;  %3471 = vmatmul.mubr.bf16.gmra.mrb[16].mxu0 %v2376_v17 }
 0x351   : > { %v2150_v12 = vpack.c.bf16 %v1969_v34, %v1965_v40  ;;  %3528 = vmatpush1.bf16.msra.mxu0 %v4464_v6 }
 0x352   : > { %v2320_v14 = vadd.bf16 %v5629_v2, %v2149_v36  ;;  %3529 = vmatprep.subr.bf16.mxu0 %v4469_v35 }
 0x353   : > { %v2321_v1 = vadd.bf16 %v5633_v63, %v2150_v12 }
 0x354   : > { %v2384_v32 = vmax.bf16 %v4737_v47, %v2320_v14 }
 0x355   : > { %3530 = vmatpush1.bf16.msra.mxu0 %v4467_v41  ;;  %v1973_v53 = vpop.f32.mrb[88].mxu1  ;;  %v2385_v19 = vmax.bf16 %v4737_v47, %v2321_v1 }
 0x356   : > { %v1975_v45 = vpop.f32.mrb[89].mxu1  ;;  %3531 = vmatprep.subr.bf16.mxu0 %v4472_v5 }
 0x357   : > { %v1977_v15 = vpop.f32.mrb[90].mxu1  ;;  %3480 = vmatprep.mubr.bf16.mxu0 %v2385_v19 }
 0x358   : > { %v2157_v44 = vpack.c.bf16 %v1977_v15, %v1973_v53  ;;  %v1979_v49 = vpop.f32.mrb[91].mxu1  ;;  %3481 = vmatmul.mubr.bf16.gmra.mrb[20].mxu0 %v2384_v32 }
 0x359   : > { %v2158_v52 = vpack.c.bf16 %v1979_v49, %v1975_v45  ;;  %3532 = vmatpush1.bf16.msra.mxu0 %v4470_v18 }
 0x35a   : > { %v2328_v11 = vadd.bf16 %v5629_v2, %v2157_v44  ;;  %3533 = vmatprep.subr.bf16.mxu0 %v4475_v20 }
 0x35b   : > { %v2329_v48 = vadd.bf16 %v5633_v63, %v2158_v52 }
 0x35c   : > { %v2392_v38 = vmax.bf16 %v4737_v47, %v2328_v11 }
 0x35d   : > { %3534 = vmatpush1.bf16.msra.mxu0 %v4473_v25  ;;  %v1983_v8 = vpop.f32.mrb[92].mxu1  ;;  %v2393_v24 = vmax.bf16 %v4737_v47, %v2329_v48 }
 0x35e   : > { %v1985_v54 = vpop.f32.mrb[93].mxu1  ;;  %3535 = vmatprep.subr.bf16.mxu0 %v4478_v3 }
 0x35f   : > { %v1987_v56 = vpop.f32.mrb[94].mxu1  ;;  %3490 = vmatprep.mubr.bf16.mxu0 %v2393_v24 }
 0x360   : > { %v2165_v51 = vpack.c.bf16 %v1987_v56, %v1983_v8  ;;  %v1989_v30 = vpop.f32.mrb[95].mxu1  ;;  %3491 = vmatmul.mubr.bf16.gmra.mrb[24].mxu0 %v2392_v38 }
 0x361   : > { %v2166_v9 = vpack.c.bf16 %v1989_v30, %v1985_v54  ;;  %3536 = vmatpush1.bf16.msra.mxu0 %v4476_v57 }
 0x362   : > { %v2336_v58 = vadd.bf16 %v5629_v2, %v2165_v51  ;;  %3537 = vmatprep.subr.bf16.mxu0 %v4481_v27 }
 0x363   : > { %v2337_v29 = vadd.bf16 %v5633_v63, %v2166_v9 }
 0x364   : > { %v2400_v33 = vmax.bf16 %v4737_v47, %v2336_v58 }
 0x365   : > { %3538 = vmatpush1.bf16.msra.mxu0 %v4479_v61  ;;  %v2026_v13 = vpop.f32.mrb[96].mxu1  ;;  %v2401_v60 = vmax.bf16 %v4737_v47, %v2337_v29 }
 0x366   : > { %v2028_v7 = vpop.f32.mrb[97].mxu1  ;;  %3539 = vmatprep.subr.bf16.mxu0 %v4484_v62 }
 0x367   : > { %v2030_v2 = vpop.f32.mrb[98].mxu1  ;;  %3500 = vmatprep.mubr.bf16.mxu0 %v2401_v60 }
 0x368   : > { %v2111_v63 = vpack.c.bf16 %v2030_v2, %v2026_v13  ;;  %v2032_v46 = vpop.f32.mrb[99].mxu1  ;;  %3501 = vmatmul.mubr.bf16.gmra.mrb[28].mxu0 %v2400_v33 }
 0x369   : > { %v2112_v16 = vpack.c.bf16 %v2032_v46, %v2028_v7  ;;  %3540 = vmatpush1.bf16.msra.mxu0 %v4482_v59 }
 0x36a   : > { %v2282_v23 = vadd.bf16 %v5671_v39, %v2111_v63  ;;  %3541 = vmatprep.subr.bf16.mxu0 %v4487_v50 }
 0x36b   : > { %v2283_v28 = vadd.bf16 %v5675_v0, %v2112_v16 }
 0x36c   : > { %v2346_v6 = vmax.bf16 %v4737_v47, %v2282_v23 }
 0x36d   : > { %3542 = vmatpush1.bf16.msra.mxu0 %v4485_v42  ;;  %v2036_v4 = vpop.f32.mrb[100].mxu1  ;;  %v2347_v37 = vmax.bf16 %v4737_v47, %v2283_v28 }
 0x36e   : > { %v2038_v40 = vpop.f32.mrb[101].mxu1 }
 0x36f   : > { %v2040_v17 = vpop.f32.mrb[102].mxu1  ;;  %3543 = vmatprep.mubr.bf16.mxu0 %v2347_v37 }
 0x370   : > { %v2119_v35 = vpack.c.bf16 %v2040_v17, %v2036_v4  ;;  %v2042_v22 = vpop.f32.mrb[103].mxu1  ;;  %3544 = vmatmul.mubr.bf16.vlgmr.msra.gmra.mrb[0].mxu0 %v2346_v6 }
 0x371   : > { %v2120_v36 = vpack.c.bf16 %v2042_v22, %v2038_v40 }
 0x372   : > { %v2290_v34 = vadd.bf16 %v5671_v39, %v2119_v35 }
 0x373   : > { %v2291_v12 = vadd.bf16 %v5675_v0, %v2120_v36 }
 0x374   : > { %v2354_v1 = vmax.bf16 %v4737_v47, %v2290_v34 }
 0x375   : > { %v2046_v41 = vpop.f32.mrb[104].mxu1  ;;  %v2355_v14 = vmax.bf16 %v4737_v47, %v2291_v12 }
 0x376   : > { %v2048_v5 = vpop.f32.mrb[105].mxu1 }
 0x377   : > { %v2050_v53 = vpop.f32.mrb[106].mxu1  ;;  %3553 = vmatprep.mubr.bf16.mxu0 %v2355_v14 }
 0x378   : > { %v2127_v19 = vpack.c.bf16 %v2050_v53, %v2046_v41  ;;  %v2052_v18 = vpop.f32.mrb[107].mxu1  ;;  %3554 = vmatmul.mubr.bf16.gmra.mrb[4].mxu0 %v2354_v1  ;;  %v761_v1 = vld [vmem:[#allocation6 + $0x2] ss:$4 sm:$0x3] }
 0x379   : > { %v2128_v45 = vpack.c.bf16 %v2052_v18, %v2048_v5  ;;  %v5710_v53 = vrot.slane %v761_v1, %v5301_v31  ;;  %v5714_v18 = vrot.slane %v761_v1, %v5305_v21  ;;  %v744_v1 = vld [vmem:[%s4979_s10 + $0x80] sm:$0xff] }
 0x37a   : > { %v2298_v32 = vadd.bf16 %v5671_v39, %v2127_v19  ;;  %v728_v19 = vld [vmem:[%s4979_s10] sm:$0xff] }
 0x37b   : > { %v2299_v20 = vadd.bf16 %v5675_v0, %v2128_v45  ;;  %v729_v45 = vld [vmem:[%s4979_s10 + $0x8] sm:$0xff] }
 0x37c   : > { %v2362_v52 = vmax.bf16 %v4737_v47, %v2298_v32  ;;  %v731_v32 = vld [vmem:[%s4979_s10 + $0x18] sm:$0xff] }
 0x37d   : > { %v2056_v15 = vpop.f32.mrb[108].mxu1  ;;  %v2363_v44 = vmax.bf16 %v4737_v47, %v2299_v20  ;;  %v776_v31 = vadd.f32 %v5714_v18, %v731_v32  ;;  %v746_v32 = vld [vmem:[%s4979_s10 + $0x90] sm:$0xff] }
 0x37e   : > { %v2058_v49 = vpop.f32.mrb[109].mxu1 }
 0x37f   : > { %v2060_v25 = vpop.f32.mrb[110].mxu1  ;;  %3563 = vmatprep.mubr.bf16.mxu0 %v2363_v44 }
 0x380   : > { %v2135_v11 = vpack.c.bf16 %v2060_v25, %v2056_v15  ;;  %v2062_v3 = vpop.f32.mrb[111].mxu1  ;;  %3564 = vmatmul.mubr.bf16.gmra.mrb[8].mxu0 %v2362_v52  ;;  %v732_v25 = vld [vmem:[%s4979_s10 + $0x20] sm:$0xff] }
 0x381   : > { %v2136_v48 = vpack.c.bf16 %v2062_v3, %v2058_v49 }
 0x382   : > { %v2306_v8 = vadd.bf16 %v5671_v39, %v2135_v11 }
 0x383   : > { %v2307_v24 = vadd.bf16 %v5675_v0, %v2136_v48  ;;  %v733_v48 = vld [vmem:[%s4979_s10 + $0x28] sm:$0xff] }
 0x384   : > { %v2370_v27 = vmax.bf16 %v4737_v47, %v2306_v8 }
 0x385   : > { %v2066_v57 = vpop.f32.mrb[112].mxu1  ;;  %v2371_v54 = vmax.bf16 %v4737_v47, %v2307_v24  ;;  %v734_v24 = vld [vmem:[%s4979_s10 + $0x30] sm:$0xff] }
 0x386   : > { %v2068_v38 = vpop.f32.mrb[113].mxu1 }
 0x387   : > { %v2070_v43 = vpop.f32.mrb[114].mxu1  ;;  %3573 = vmatprep.mubr.bf16.mxu0 %v2371_v54  ;;  %v735_v54 = vld [vmem:[%s4979_s10 + $0x38] sm:$0xff] }
 0x388   : > { %v2143_v56 = vpack.c.bf16 %v2070_v43, %v2066_v57  ;;  %v2072_v55 = vpop.f32.mrb[115].mxu1  ;;  %3574 = vmatmul.mubr.bf16.gmra.mrb[12].mxu0 %v2370_v27  ;;  %v777_v57 = vadd.f32 %v5710_v53, %v732_v25  ;;  %v779_v27 = vadd.f32 %v5710_v53, %v734_v24  ;;  %v749_v24 = vld [vmem:[%s4979_s10 + $0xa8] sm:$0xff] }
 0x389   : > { %v2144_v51 = vpack.c.bf16 %v2072_v55, %v2068_v38  ;;  %v778_v38 = vadd.f32 %v5714_v18, %v733_v48 }
 0x38a   : > { %v2314_v30 = vadd.bf16 %v5671_v39, %v2143_v56  ;;  %v780_v56 = vadd.f32 %v5714_v18, %v735_v54  ;;  %v750_v54 = vld [vmem:[%s4979_s10 + $0xb0] sm:$0xff] }
 0x38b   : > { %v2315_v9 = vadd.bf16 %v5675_v0, %v2144_v51 }
 0x38c   : > { %v2378_v62 = vmax.bf16 %v4737_v47, %v2314_v30 }
 0x38d   : > { %v2076_v61 = vpop.f32.mrb[116].mxu1  ;;  %v2379_v58 = vmax.bf16 %v4737_v47, %v2315_v9 }
 0x38e   : > { %v2078_v26 = vpop.f32.mrb[117].mxu1 }
 0x38f   : > { %v2080_v29 = vpop.f32.mrb[118].mxu1  ;;  %3583 = vmatprep.mubr.bf16.mxu0 %v2379_v58 }
 0x390   : > { %v2151_v10 = vpack.c.bf16 %v2080_v29, %v2076_v61  ;;  %v2082_v13 = vpop.f32.mrb[119].mxu1  ;;  %3584 = vmatmul.mubr.bf16.gmra.mrb[16].mxu0 %v2378_v62  ;;  %v736_v61 = vld [vmem:[%s4979_s10 + $0x40] sm:$0xff]  ;;  %v737_v62 = vld [vmem:[%s4979_s10 + $0x48] sm:$0xff] }
 0x391   : > { %v2152_v60 = vpack.c.bf16 %v2082_v13, %v2078_v26  ;;  %v781_v13 = vadd.f32 %v5710_v53, %v736_v61 }
 0x392   : > { %v2322_v59 = vadd.bf16 %v5671_v39, %v2151_v10  ;;  %v738_v10 = vld [vmem:[%s4979_s10 + $0x50] sm:$0xff] }
 0x393   : > { %v2323_v7 = vadd.bf16 %v5675_v0, %v2152_v60  ;;  %v739_v60 = vld [vmem:[%s4979_s10 + $0x58] sm:$0xff] }
 0x394   : > { %v2386_v63 = vmax.bf16 %v4737_v47, %v2322_v59  ;;  %v782_v59 = vadd.f32 %v5714_v18, %v737_v62 }
 0x395   : > { %v2086_v33 = vpop.f32.mrb[120].mxu1  ;;  %v2387_v50 = vmax.bf16 %v4737_v47, %v2323_v7  ;;  %v783_v7 = vadd.f32 %v5710_v53, %v738_v10  ;;  %v753_v10 = vld [vmem:[%s4979_s10 + $0xc8] sm:$0xff] }
 0x396   : > { %v2088_v2 = vpop.f32.mrb[121].mxu1 }
 0x397   : > { %v2090_v46 = vpop.f32.mrb[122].mxu1  ;;  %3593 = vmatprep.mubr.bf16.mxu0 %v2387_v50  ;;  %v784_v50 = vadd.f32 %v5714_v18, %v739_v60  ;;  %v754_v60 = vld [vmem:[%s4979_s10 + $0xd0] sm:$0xff] }
 0x398   : > { %v2159_v16 = vpack.c.bf16 %v2090_v46, %v2086_v33  ;;  %v2092_v42 = vpop.f32.mrb[123].mxu1  ;;  %3594 = vmatmul.mubr.bf16.gmra.mrb[20].mxu0 %v2386_v63 }
 0x399   : > { %v2160_v23 = vpack.c.bf16 %v2092_v42, %v2088_v2  ;;  %v740_v42 = vld [vmem:[%s4979_s10 + $0x60] sm:$0xff] }
 0x39a   : > { %v2330_v28 = vadd.bf16 %v5671_v39, %v2159_v16 }
 0x39b   : > { %v2331_v4 = vadd.bf16 %v5675_v0, %v2160_v23 }
 0x39c   : > { %v2394_v17 = vmax.bf16 %v4737_v47, %v2330_v28 }
 0x39d   : > { %v2096_v37 = vpop.f32.mrb[124].mxu1  ;;  %v2395_v6 = vmax.bf16 %v4737_v47, %v2331_v4  ;;  %v741_v4 = vld [vmem:[%s4979_s10 + $0x68] sm:$0xff] }
 0x39e   : > { %v2098_v40 = vpop.f32.mrb[125].mxu1 }
 0x39f   : > { %v2100_v35 = vpop.f32.mrb[126].mxu1  ;;  %3603 = vmatprep.mubr.bf16.mxu0 %v2395_v6  ;;  %v742_v6 = vld [vmem:[%s4979_s10 + $0x70] sm:$0xff] }
 0x3a0   : > { %v2167_v22 = vpack.c.bf16 %v2100_v35, %v2096_v37  ;;  %v2102_v36 = vpop.f32.mrb[127].mxu1  ;;  %3604 = vmatmul.mubr.bf16.gmra.mrb[24].mxu0 %v2394_v17  ;;  %v743_v17 = vld [vmem:[%s4979_s10 + $0x78] sm:$0xff]  ;;  %v786_v35 = vadd.f32 %v5714_v18, %v741_v4 }
 0x3a1   : > { %v2168_v34 = vpack.c.bf16 %v2102_v36, %v2098_v40  ;;  %v785_v40 = vadd.f32 %v5710_v53, %v740_v42 }
 0x3a2   : > { %v2338_v12 = vadd.bf16 %v5671_v39, %v2167_v22  ;;  %v730_v39 = vld [vmem:[%s4979_s10 + $0x10] sm:$0xff]  ;;  %v787_v22 = vadd.f32 %v5710_v53, %v742_v6  ;;  %v757_v6 = vld [vmem:[%s4979_s10 + $0xe8] sm:$0xff] }
 0x3a3   : > { %v2339_v41 = vadd.bf16 %v5675_v0, %v2168_v34  ;;  %v773_v0 = vadd.f32 %v5710_v53, %v728_v19  ;;  %v775_v20 = vadd.f32 %v5710_v53, %v730_v39  ;;  %v788_v34 = vadd.f32 %v5714_v18, %v743_v17  ;;  %v745_v39 = vld [vmem:[%s4979_s10 + $0x88] sm:$0xff]  ;;  %v758_v17 = vld [vmem:[%s4979_s10 + $0xf0] sm:$0xff] }
 0x3a4   : > { %v2402_v5 = vmax.bf16 %v4737_v47, %v2338_v12 }
 0x3a5   : > { %v2403_v14 = vmax.bf16 %v4737_v47, %v2339_v41  ;;  %v774_v47 = vadd.f32 %v5714_v18, %v729_v45 }
 0x3a7   : > { %3613 = vmatprep.mubr.bf16.mxu0 %v2403_v14 }
 0x3a8   : > { %3614 = vmatmul.mubr.bf16.gmra.mrb[28].mxu0 %v2402_v5 }
 0x443   : > { %v3545_v15 = vpop.f32.mrb[0].mxu0 }
 0x444   : > { %v3624_v44 = vadd.f32 %v3545_v15, %v773_v0  ;;  %v3547_v49 = vpop.f32.mrb[1].mxu0  ;;  %v790_v15 = vadd.f32 %v5714_v18, %v745_v39 }
 0x445   : > { %v3625_v52 = vadd.f32 %v3547_v49, %v774_v47  ;;  %v3549_v21 = vpop.f32.mrb[2].mxu0  ;;  %v789_v47 = vadd.f32 %v5710_v53, %v744_v1 }
 0x446   : > { %3656 = vst [vmem:[%s5726_s30] sm:$0xff] %v3624_v44  ;;  %v3626_v11 = vadd.f32 %v3549_v21, %v775_v20  ;;  %v3551_v3 = vpop.f32.mrb[3].mxu0  ;;  %v747_v20 = vld [vmem:[%s4979_s10 + $0x98] sm:$0xff] }
 0x447   : > { %3657 = vst [vmem:[%s5726_s30 + $0x8] sm:$0xff] %v3625_v52  ;;  %v3627_v8 = vadd.f32 %v3551_v3, %v776_v31  ;;  %v791_v31 = vadd.f32 %v5710_v53, %v746_v32  ;;  %v792_v49 = vadd.f32 %v5714_v18, %v747_v20  ;;  %v748_v3 = vld [vmem:[%s4979_s10 + $0xa0] sm:$0xff] }
 0x448   : > { %3658 = vst [vmem:[%s5726_s30 + $0x10] sm:$0xff] %v3626_v11 }
 0x449   : > { %3659 = vst [vmem:[%s5726_s30 + $0x18] sm:$0xff] %v3627_v8 }
 0x44b   : > { %v3555_v43 = vpop.f32.mrb[4].mxu0 }
 0x44c   : > { %v3628_v55 = vadd.f32 %v3555_v43, %v777_v57  ;;  %v3557_v51 = vpop.f32.mrb[5].mxu0  ;;  %v794_v43 = vadd.f32 %v5714_v18, %v749_v24 }
 0x44d   : > { %v3629_v30 = vadd.f32 %v3557_v51, %v778_v38  ;;  %v3559_v9 = vpop.f32.mrb[6].mxu0  ;;  %v793_v38 = vadd.f32 %v5710_v53, %v748_v3 }
 0x44e   : > { %3660 = vst [vmem:[%s5726_s30 + $0x20] sm:$0xff] %v3628_v55  ;;  %v3630_v58 = vadd.f32 %v3559_v9, %v779_v27  ;;  %v3561_v26 = vpop.f32.mrb[7].mxu0  ;;  %v751_v27 = vld [vmem:[%s4979_s10 + $0xb8] sm:$0xff] }
 0x44f   : > { %3661 = vst [vmem:[%s5726_s30 + $0x28] sm:$0xff] %v3629_v30  ;;  %v3631_v29 = vadd.f32 %v3561_v26, %v780_v56  ;;  %v795_v56 = vadd.f32 %v5710_v53, %v750_v54  ;;  %v796_v51 = vadd.f32 %v5714_v18, %v751_v27  ;;  %v752_v26 = vld [vmem:[%s4979_s10 + $0xc0] sm:$0xff] }
 0x450   : > { %3662 = vst [vmem:[%s5726_s30 + $0x30] sm:$0xff] %v3630_v58 }
 0x451   : > { %3663 = vst [vmem:[%s5726_s30 + $0x38] sm:$0xff] %v3631_v29 }
 0x453   : > { %v3565_v33 = vpop.f32.mrb[8].mxu0 }
 0x454   : > { %v3632_v2 = vadd.f32 %v3565_v33, %v781_v13  ;;  %v3567_v63 = vpop.f32.mrb[9].mxu0  ;;  %v798_v33 = vadd.f32 %v5714_v18, %v753_v10 }
 0x455   : > { %v3633_v46 = vadd.f32 %v3567_v63, %v782_v59  ;;  %v3569_v16 = vpop.f32.mrb[10].mxu0  ;;  %v797_v59 = vadd.f32 %v5710_v53, %v752_v26 }
 0x456   : > { %3664 = vst [vmem:[%s5726_s30 + $0x40] sm:$0xff] %v3632_v2  ;;  %v3634_v23 = vadd.f32 %v3569_v16, %v783_v7  ;;  %v3571_v28 = vpop.f32.mrb[11].mxu0  ;;  %v755_v7 = vld [vmem:[%s4979_s10 + $0xd8] sm:$0xff] }
 0x457   : > { %3665 = vst [vmem:[%s5726_s30 + $0x48] sm:$0xff] %v3633_v46  ;;  %v3635_v37 = vadd.f32 %v3571_v28, %v784_v50  ;;  %v799_v50 = vadd.f32 %v5710_v53, %v754_v60  ;;  %v800_v63 = vadd.f32 %v5714_v18, %v755_v7  ;;  %v756_v28 = vld [vmem:[%s4979_s10 + $0xe0] sm:$0xff] }
 0x458   : > { %3666 = vst [vmem:[%s5726_s30 + $0x50] sm:$0xff] %v3634_v23 }
 0x459   : > { %3667 = vst [vmem:[%s5726_s30 + $0x58] sm:$0xff] %v3635_v37 }
 0x45b   : > { %v3575_v36 = vpop.f32.mrb[12].mxu0 }
 0x45c   : > { %v3636_v12 = vadd.f32 %v3575_v36, %v785_v40  ;;  %v3577_v41 = vpop.f32.mrb[13].mxu0  ;;  %v802_v36 = vadd.f32 %v5714_v18, %v757_v6 }
 0x45d   : > { %v3637_v14 = vadd.f32 %v3577_v41, %v786_v35  ;;  %v3579_v5 = vpop.f32.mrb[14].mxu0  ;;  %v801_v35 = vadd.f32 %v5710_v53, %v756_v28 }
 0x45e   : > { %3668 = vst [vmem:[%s5726_s30 + $0x60] sm:$0xff] %v3636_v12  ;;  %v3638_v19 = vadd.f32 %v3579_v5, %v787_v22  ;;  %v3581_v45 = vpop.f32.mrb[15].mxu0  ;;  %v759_v22 = vld [vmem:[%s4979_s10 + $0xf8] sm:$0xff] }
 0x45f   : > { %3669 = vst [vmem:[%s5726_s30 + $0x68] sm:$0xff] %v3637_v14  ;;  %v3639_v0 = vadd.f32 %v3581_v45, %v788_v34  ;;  %v803_v34 = vadd.f32 %v5710_v53, %v758_v17  ;;  %v804_v41 = vadd.f32 %v5714_v18, %v759_v22 }
 0x460   : > { %3670 = vst [vmem:[%s5726_s30 + $0x70] sm:$0xff] %v3638_v19 }
 0x461   : > { %3671 = vst [vmem:[%s5726_s30 + $0x78] sm:$0xff] %v3639_v0 }
 0x463   : > { %v3585_v44 = vpop.f32.mrb[16].mxu0 }
 0x464   : > { %v3640_v52 = vadd.f32 %v3585_v44, %v789_v47  ;;  %v3587_v21 = vpop.f32.mrb[17].mxu0 }
 0x465   : > { %v3641_v25 = vadd.f32 %v3587_v21, %v790_v15  ;;  %v3589_v11 = vpop.f32.mrb[18].mxu0 }
 0x466   : > { %3672 = vst [vmem:[%s5726_s30 + $0x80] sm:$0xff] %v3640_v52  ;;  %v3642_v48 = vadd.f32 %v3589_v11, %v791_v31  ;;  %v3591_v8 = vpop.f32.mrb[19].mxu0 }
 0x467   : > { %3673 = vst [vmem:[%s5726_s30 + $0x88] sm:$0xff] %v3641_v25  ;;  %v3643_v57 = vadd.f32 %v3591_v8, %v792_v49 }
 0x468   : > { %3674 = vst [vmem:[%s5726_s30 + $0x90] sm:$0xff] %v3642_v48 }
 0x469   : > { %3675 = vst [vmem:[%s5726_s30 + $0x98] sm:$0xff] %v3643_v57 }
 0x46b   : > { %v3595_v55 = vpop.f32.mrb[20].mxu0 }
 0x46c   : > { %v3644_v30 = vadd.f32 %v3595_v55, %v793_v38  ;;  %v3597_v9 = vpop.f32.mrb[21].mxu0 }
 0x46d   : > { %v3645_v61 = vadd.f32 %v3597_v9, %v794_v43  ;;  %v3599_v58 = vpop.f32.mrb[22].mxu0 }
 0x46e   : > { %3676 = vst [vmem:[%s5726_s30 + $0xa0] sm:$0xff] %v3644_v30  ;;  %v3646_v62 = vadd.f32 %v3599_v58, %v795_v56  ;;  %v3601_v29 = vpop.f32.mrb[23].mxu0 }
 0x46f   : > { %3677 = vst [vmem:[%s5726_s30 + $0xa8] sm:$0xff] %v3645_v61  ;;  %v3647_v13 = vadd.f32 %v3601_v29, %v796_v51 }
 0x470   : > { %3678 = vst [vmem:[%s5726_s30 + $0xb0] sm:$0xff] %v3646_v62 }
 0x471   : > { %3679 = vst [vmem:[%s5726_s30 + $0xb8] sm:$0xff] %v3647_v13 }
 0x473   : > { %v3605_v2 = vpop.f32.mrb[24].mxu0 }
 0x474   : > { %v3648_v46 = vadd.f32 %v3605_v2, %v797_v59  ;;  %v3607_v16 = vpop.f32.mrb[25].mxu0 }
 0x475   : > { %v3649_v42 = vadd.f32 %v3607_v16, %v798_v33  ;;  %v3609_v23 = vpop.f32.mrb[26].mxu0 }
 0x476   : > { %3680 = vst [vmem:[%s5726_s30 + $0xc0] sm:$0xff] %v3648_v46  ;;  %v3650_v4 = vadd.f32 %v3609_v23, %v799_v50  ;;  %v3611_v37 = vpop.f32.mrb[27].mxu0 }
 0x477   : > { %3681 = vst [vmem:[%s5726_s30 + $0xc8] sm:$0xff] %v3649_v42  ;;  %v3651_v40 = vadd.f32 %v3611_v37, %v800_v63 }
 0x478   : > { %3682 = vst [vmem:[%s5726_s30 + $0xd0] sm:$0xff] %v3650_v4 }
 0x479   : > { %3683 = vst [vmem:[%s5726_s30 + $0xd8] sm:$0xff] %v3651_v40 }
 0x47b   : > { %v3615_v12 = vpop.f32.mrb[28].mxu0 }
 0x47c   : > { %v3652_v14 = vadd.f32 %v3615_v12, %v801_v35  ;;  %v3617_v5 = vpop.f32.mrb[29].mxu0 }
 0x47d   : > { %v3653_v1 = vadd.f32 %v3617_v5, %v802_v36  ;;  %v3619_v19 = vpop.f32.mrb[30].mxu0 }
 0x47e   : > { %3684 = vst [vmem:[%s5726_s30 + $0xe0] sm:$0xff] %v3652_v14  ;;  %v3654_v45 = vadd.f32 %v3619_v19, %v803_v34  ;;  %v3621_v39 = vpop.f32.mrb[31].mxu0 }
 0x47f   : > { %3685 = vst [vmem:[%s5726_s30 + $0xe8] sm:$0xff] %v3653_v1  ;;  %v3655_v53 = vadd.f32 %v3621_v39, %v804_v41 }
 0x480   : > { %3686 = vst [vmem:[%s5726_s30 + $0xf0] sm:$0xff] %v3654_v45 }
 0x481   : > { %3687 = vst [vmem:[%s5726_s30 + $0xf8] sm:$0xff] %v3655_v53 }
 0x482   : > { %4647 = shalt.err (!%p4644_p5)
}
 0x483   : > { %s4648_s25 = scalar_lea.hbm %s5817_s7, 4096  ;;  %s4652_s26 = scalar_lea.hbm %s5876_s5, 8192 }
 0x484   : > { %p4649_p10 = scmp.ne.s32.totalorder %s5817_s7, %s4648_s25  ;;  %p4653_p3 = scmp.lt.u32.totalorder %s5817_s7, %s5876_s5 }
 0x485   : > { %p4654_p7 = scmp.lt.u32.totalorder %s4652_s26, %s4648_s25  ;;  %p4656_p12 = scmp.lt.u32.totalorder %s4648_s25, %s5817_s7 }
 0x486   : > { %p4650_p13 = pnand %p4649_p10, %p4915_p2 }
 0x487   : > { %p4655_p11 = por %p4654_p7, %p4653_p3 }
 0x488   : > { %p4651_p9 = pneg %p4650_p13 }
 0x489   : > { %p4657_p1 = por %p4656_p12, %p4655_p11 }
 0x48b   : > { %p4658_p4 = pnand %p4657_p1, %p4651_p9 }
 0x48d   : > { %4661 = shalt.err (!%p4658_p4)
}
 0x48e   : > { %s4739_s27 = smov 256   ;;  %s4740_s1 = smov 16  }
 0x48f   : > { %4206 = dma.vmem_to_hbm [thread:$0]  (%p4915_p2), %s5819_s9, 4096, %s5817_s7, %s3689_s21, %s4739_s27, %s4739_s27, %s4740_s1  }
 0x490 PF: > { %s3718_s24 = sand.u32 1, %s4704_s18   ;;  %p5896_p6 = scmp.ne.s32.totalorder %s5885_s29, 0 }
 0x491   : > { %p5897_p8 = scmp.ge.s32.totalorder %s4724_s23, 2  ;;  %s3719_s14 = scalar_lea.sflag [#allocation5], %s3718_s24 }
 0x493   : > { %p4223_p0 = pnand %p5897_p8, %p5896_p6 }
 0x495   : > { %4699 = dma.done.wait (!%p4223_p0), %s3719_s14, 4096  }
 0x496   : > { %4701 = vsyncadd (!%p4223_p0), %s3719_s14, 4294963200  ;;  %s23_s23 = sadd.s32 1, %s4724_s23   ;;  %s5898_s18 = smov %s4708_s19 }
 0x497   : > { %p20_p5 = scmp.ge.s32.totalorder %s23_s23, 4   ;;  %s5899_s19 = smov %s4712_s20 }
 0x498   : > { %s5900_s20 = smov %s4927_s6  ;;  %s5901_s21 = smov %s4720_s22 }
 0x499   : > { %s5902_s22 = smov %s5904_s15  ;;  %22 = sbr.rel (!%p20_p5) target bundleno = 10 (0xa), region = 102 }
 0x4a0   :  { %3724 = vsyncpa [#allocation4], 1 }
 0x4a1   :  { %3726 = vsyncpa [#allocation4 + $0x1], 1 }
 0x4a2   :  { %3727 = vsyncpa [#allocation7], 1 }
 0x4a3   :  { %3728 = vsyncpa [#allocation10], 1 }
 0x4a4   :  { %3729 = vsyncpa [#allocation5], 1 }
 0x4a5   :  { %3731 = vsyncpa [#allocation5 + $0x1], 1 }

// kernel: tpu_custom_call.1
= control target key start
LH: loop header
LB: loop body
LE: loop exit
PB: predicated region body
PF: predicated region fallthrough
CT: control target
= control target key end

     0   :  { %s5871_s0 = inlined_call_operand.hbm [shape: f32[256,256], index: 0, kind: input, shape index: {}]   ;;  %s5872_s1 = inlined_call_operand.hbm [shape: f32[3,256], index: 1, kind: input, shape index: {}]   ;;  %s5873_s2 = inlined_call_operand.hbm [shape: bf16[256,1024], index: 2, kind: input, shape index: {}]   ;;  %s5874_s3 = inlined_call_operand.vmem [shape: bf16[1,1024], index: 3, kind: input, shape index: {}]   ;;  %s5875_s4 = inlined_call_operand.hbm [shape: bf16[1024,256], index: 4, kind: input, shape index: {}]   ;;  %s5876_s5 = inlined_call_operand.hbm [shape: f32[256,256], index: 5, kind: output, shape index: {}]  }
   0x1   :  { %5881 = sst [smem:[#allocation16_spill]] %s5872_s1 }
   0x2   :  { %10 = vsyncpa [#allocation4], 0 }
   0x3   :  { %12 = vsyncpa [#allocation4 + $0x1], 0 }
   0x4   :  { %13 = vsyncpa [#allocation7], 0 }
   0x5   :  { %14 = vsyncpa [#allocation10], 0 }
   0x6   :  { %15 = vsyncpa [#allocation5], 0 }
   0x7   :  { %17 = vsyncpa [#allocation5 + $0x1], 0  ;;  %s4771_s18 = smov 0   ;;  %s4773_s19 = smov 0  }
   0x8   :  { %s4775_s20 = smov 0   ;;  %s4777_s21 = smov 0  }
   0x9   :  { %s4779_s22 = smov 0   ;;  %s4781_s23 = smov 0  }
   0xa LB: > { %s3813_s24 = sadd.s32 4294967295, %s4724_s23   ;;  %s3814_s25 = sadd.s32 4294967294, %s4724_s23   ;;  %s4724_s23 = sphi %s4781_s23, %s23_s23   ;;  %s4720_s22 = sphi %s4779_s22, %s5902_s22   ;;  %s4716_s21 = sphi %s4777_s21, %s5901_s21   ;;  %s4712_s20 = sphi %s4775_s20, %s5900_s20   ;;  %s4708_s19 = sphi %s4773_s19, %s5899_s19   ;;  %s4704_s18 = sphi %s4771_s18, %s5898_s18  }
   0xb   : > { %p55_p0 = scmp.ne.s32.totalorder %s4708_s19, %s4704_s18  ;;  %p4805_p1 = scmp.eq.s32.totalorder %s3813_s24, 0 }
   0xc   : > { %p4809_p2 = scmp.eq.s32.totalorder %s3813_s24, 1  ;;  %p169_p3 = scmp.eq.s32.totalorder %s3814_s25, 1 }
   0xd   : > { %s5882_s26 = scalar_select %p4805_p1, 1, 0 }
   0xe   : > { %s5883_s27 = scalar_select %p4809_p2, 1, 0 }
   0xf   : > { %p4815_p4 = por %p4805_p1, %p55_p0  ;;  %p3815_p5 = scmp.ge.s32.totalorder %s4724_s23, 1 }
  0x10   : > { %p4820_p6 = por %p169_p3, %p55_p0  ;;  %p176_p7 = scmp.lt.s32.totalorder %s4724_s23, 3 }
  0x11   : > { %s5884_s28 = scalar_select %p4815_p4, 1, 0 }
  0x12   : > { %s5885_s29 = scalar_select %p4820_p6, 1, 0 }
  0x13   : > { %p4825_p8 = pnand %p3815_p5, %p176_p7  ;;  %s4726_s6 = smov [#allocation6]  }
  0x14   : > { %s189_s7 = sshll.u32 %s4726_s6, 4  ;;  %s4727_s8 = smov [#allocation8]   ;;  %s190_s7 = int_to_ptr.vmem [resolvable:$true] %s189_s7 }
  0x15   : > { %s5886_s30 = scalar_select %p4825_p8, 1, 0 }
  0x16   : > { %p4208_p10 = pneg %p4825_p8  ;;  %s199_s9 = sshll.u32 %s4727_s8, 4  ;;  %s4838_s9 = int_to_ptr.vmem [resolvable:$true] %s199_s9 }
  0x17   : > { %s4728_s11 = smov [#allocation9]   ;;  %s5888_s1 = sld [smem:[#allocation16_spill]] }
  0x18   : > { %p4834_p11 = pnand %p4208_p10, %p4805_p1  ;;  %s4840_s12 = sshll.u32 %s4728_s11, 4  ;;  %s216_s12 = int_to_ptr.vmem [resolvable:$true] %s4840_s12 }
  0x1a   : > { %p4850_p13 = pneg %p4834_p11 }
  0x1d   : > { %s4520_s15 = scalar_lea.hbm %s5888_s1, 128 }
  0x1e   : > { %p4521_p12 = scmp.ne.s32.totalorder %s5888_s1, %s4520_s15  ;;  %p4527_p5 = scmp.lt.u32.totalorder %s4520_s15, %s5888_s1 }
  0x20   : > { %p4523_p0 = pnand %p4850_p13, %p4521_p12 }
  0x22   : > { %p4524_p3 = pneg %p4523_p0 }
  0x24   : > { %p4529_p7 = pnand %p4527_p5, %p4524_p3 }
  0x26   : > { %4532 = shalt.err (!%p4529_p7)
}
  0x27   : > { %s4533_s8 = scalar_lea.vmem %s190_s7, 128  ;;  %p4541_p1 = scmp.lt.s32.totalorder %s190_s7, %s190_s7 }
  0x28   : > { %p4534_p10 = scmp.ne.s32.totalorder %s190_s7, %s4533_s8  ;;  %p4542_p4 = scmp.lt.s32.totalorder %s4533_s8, %s4533_s8 }
  0x2a   : > { %p4536_p9 = pnand %p4534_p10, %p4850_p13  ;;  %p4543_p8 = por %p4542_p4, %p4541_p1 }
  0x2c   : > { %p4537_p6 = pneg %p4536_p9 }
  0x2e   : > { %p4544_p2 = pnand %p4543_p8, %p4537_p6 }
  0x30   : > { %4547 = shalt.err (!%p4544_p2)
}
  0x31   : > { %4211 = dma.hbm_to_vmem [thread:$0]  (!%p4834_p11), %s5888_s1, 128, %s190_s7, [#allocation7]  }
  0x32   : > { %s4548_s16 = scalar_lea.hbm %s5873_s2, 16384 }
  0x33   : > { %p4549_p9 = scmp.ne.s32.totalorder %s5873_s2, %s4548_s16  ;;  %p4555_p2 = scmp.lt.u32.totalorder %s4548_s16, %s5873_s2 }
  0x35   : > { %p4551_p12 = pnand %p4549_p9, %p4850_p13 }
  0x37   : > { %p4552_p1 = pneg %p4551_p12 }
  0x39   : > { %p4557_p4 = pnand %p4555_p2, %p4552_p1 }
  0x3b   : > { %4560 = shalt.err (!%p4557_p4)
}
  0x3c   : > { %s4561_s7 = scalar_lea.vmem %s4838_s9, 16384  ;;  %p4569_p3 = scmp.lt.s32.totalorder %s4838_s9, %s4838_s9 }
  0x3d   : > { %p4562_p6 = scmp.ne.s32.totalorder %s4838_s9, %s4561_s7  ;;  %p4570_p5 = scmp.lt.s32.totalorder %s4561_s7, %s4561_s7 }
  0x3f   : > { %p4564_p8 = pnand %p4562_p6, %p4850_p13  ;;  %p4571_p7 = por %p4570_p5, %p4569_p3 }
  0x41   : > { %p4565_p0 = pneg %p4564_p8 }
  0x43   : > { %p4572_p10 = pnand %p4571_p7, %p4565_p0 }
  0x45   : > { %4575 = shalt.err (!%p4572_p10)
}
  0x46   : > { %s4729_s11 = smov 512   ;;  %s4730_s13 = smov 32  }
  0x47   : > { %4214 = dma.hbm_to_vmem [thread:$0]  (!%p4834_p11), %s5873_s2, 16384, %s4838_s9, [#allocation7], %s4729_s11, %s4729_s11, %s4730_s13  }
  0x48   : > { %s4576_s25 = scalar_lea.hbm %s5875_s4, 16384 }
  0x49   : > { %p4577_p9 = scmp.ne.s32.totalorder %s5875_s4, %s4576_s25  ;;  %p4583_p2 = scmp.lt.u32.totalorder %s4576_s25, %s5875_s4 }
  0x4b   : > { %p4579_p12 = pnand %p4577_p9, %p4850_p13 }
  0x4d   : > { %p4580_p1 = pneg %p4579_p12 }
  0x4f   : > { %p4585_p4 = pnand %p4583_p2, %p4580_p1 }
  0x51   : > { %4588 = shalt.err (!%p4585_p4)
}
  0x52   : > { %s4589_s14 = scalar_lea.vmem %s216_s12, 16384  ;;  %p4597_p3 = scmp.lt.s32.totalorder %s216_s12, %s216_s12 }
  0x53   : > { %p4590_p6 = scmp.ne.s32.totalorder %s216_s12, %s4589_s14  ;;  %p4598_p5 = scmp.lt.s32.totalorder %s4589_s14, %s4589_s14 }
  0x55   : > { %p4592_p8 = pnand %p4590_p6, %p4850_p13  ;;  %p4599_p7 = por %p4598_p5, %p4597_p3 }
  0x57   : > { %p4593_p0 = pneg %p4592_p8 }
  0x59   : > { %p4600_p10 = pnand %p4599_p7, %p4593_p0 }
  0x5b   : > { %4603 = shalt.err (!%p4600_p10)
}
  0x5c   : > { %s4731_s9 = smov 128   ;;  %s4732_s1 = smov 8  }
  0x5d   : > { %4217 = dma.hbm_to_vmem [thread:$0]  (!%p4834_p11), %s5875_s4, 16384, %s216_s12, [#allocation10], %s4731_s9, %s4731_s9, %s4732_s1  }
  0x5e   : > { %s42_s13 = sadd.s32 1, %s4712_s20  ;;  %s35_s15 = sadd.s32 1, %s4720_s22 }
  0x5f   : > { %p49_p13 = scmp.ne.s32.totalorder %s4712_s20, %s4708_s19  ;;  %p37_p9 = scmp.ge.s32.totalorder %s35_s15, 2 }
  0x60   : > { %p50_p12 = scmp.eq.s32.totalorder %s4724_s23, 0  ;;  %p5890_p1 = scmp.ne.s32.totalorder %s5883_s27, 0 }
  0x61   : > { %p4229_p4 = scmp.lt.s32.totalorder %s4724_s23, 2  ;;  %s5904_s15 = smov (%p37_p9, %s35_s15), 0 }
  0x62   : > { %p4915_p2 = por %p5890_p1, %p49_p13  ;;  %p51_p6 = por %p50_p12, %p49_p13 }
  0x63   : > { %s229_s10 = sand.u32 1, %s4712_s20   ;;  %s39_s17 = ssub.s32 %s4720_s22, %s5904_s15 }
  0x64   : > { %p40_p8 = scmp.eq.s32.totalorder %s39_s17, 0  ;;  %s3820_s12 = sshll.u32 %s229_s10, 8 }
  0x65   : > { %s4093_s25 = sshll.u32 %s4720_s22, 12  ;;  %s233_s14 = scalar_lea.vmem [#allocation3], %s3820_s12 }
  0x66   : > { %s4927_s6 = scalar_select %p40_p8, %s4712_s20, %s42_s13  }
  0x67   : > { %s4932_s27 = scalar_lea.hbm %s5871_s0, %s4093_s25  ;;  %s241_s9 = sshll.u32 %s233_s14, 4  ;;  %s4934_s9 = int_to_ptr.vmem [resolvable:$true] %s241_s9 }
  0x68   : > { %p4938_p11 = pnand %p4229_p4, %p51_p6  ;;  %s4942_s24 = scalar_lea.sflag [#allocation4], %s229_s10 }
  0x69   : > { %s4604_s11 = scalar_lea.hbm %s4932_s27, 4096  ;;  %s4609_s12 = scalar_lea.hbm %s5871_s0, 8192 }
  0x6a   : > { %p4605_p0 = scmp.ne.s32.totalorder %s4932_s27, %s4604_s11  ;;  %p4606_p3 = pneg %p4938_p11 }
  0x6b   : > { %p4610_p10 = scmp.lt.u32.totalorder %s4932_s27, %s5871_s0  ;;  %p4611_p13 = scmp.lt.u32.totalorder %s4609_s12, %s4604_s11 }
  0x6c   : > { %p4607_p5 = pnand %p4606_p3, %p4605_p0  ;;  %p4613_p12 = scmp.lt.u32.totalorder %s4604_s11, %s4932_s27 }
  0x6d   : > { %p4612_p9 = por %p4611_p13, %p4610_p10 }
  0x6e   : > { %p4608_p7 = pneg %p4607_p5 }
  0x6f   : > { %p4614_p1 = por %p4613_p12, %p4612_p9 }
  0x71   : > { %p4615_p4 = pnand %p4614_p1, %p4608_p7 }
  0x73   : > { %4618 = shalt.err (!%p4615_p4)
}
  0x74   : > { %s4619_s10 = scalar_lea.vmem %s4934_s9, 4096  ;;  %s4733_s7 = smov [#allocation3]  }
  0x75   : > { %p4620_p6 = scmp.ne.s32.totalorder %s4934_s9, %s4619_s10  ;;  %s4624_s14 = sshll.u32 %s4733_s7, 4  ;;  %s4625_s14 = int_to_ptr.vmem [resolvable:$false] %s4624_s14 }
  0x76   : > { %s4626_s13 = scalar_lea.vmem %s4625_s14, 8192  ;;  %p4627_p5 = scmp.lt.s32.totalorder %s4934_s9, %s4625_s14 }
  0x77   : > { %p4622_p8 = pnand %p4620_p6, %p4606_p3  ;;  %p4628_p10 = scmp.lt.s32.totalorder %s4626_s13, %s4619_s10 }
  0x79   : > { %p4623_p0 = pneg %p4622_p8  ;;  %p4629_p13 = por %p4628_p10, %p4627_p5 }
  0x7b   : > { %p4630_p9 = pnand %p4629_p13, %p4623_p0 }
  0x7d   : > { %4633 = shalt.err (!%p4630_p9)
}
  0x7e   : > { %s4734_s11 = smov 256   ;;  %s4735_s17 = smov 16  }
  0x7f   : > { %4221 = dma.hbm_to_vmem [thread:$0]  (!%p4938_p11), %s4932_s27, 4096, %s4934_s9, %s4942_s24, %s4734_s11, %s4734_s11, %s4735_s17  }
  0x80   : > { %p5893_p3 = scmp.ne.s32.totalorder %s5886_s30, 0 }
  0x81   : > { %s4973_s12 = sand.u32 (!%p5893_p3), 1, %s4708_s19   ;;  %p5894_p7 = scmp.ne.s32.totalorder (!%p5893_p3), %s5884_s28, 0 }
  0x82   : > { %253 = sbr.rel (%p5893_p3) target bundleno = 1168 (0x490), region = 40  ;;  %s3825_s25 = sshll.u32 (!%p5893_p3), %s4973_s12, 8 }
  0x83   : > { %s256_s8 = scalar_lea.sflag (!%p5893_p3), [#allocation4], %s4973_s12  ;;  %s4979_s10 = scalar_lea.vmem (!%p5893_p3), [#allocation3], %s3825_s25 }
  0x89   : > { %4687 = dma.done.wait (%p5894_p7), %s256_s8, 4096  }
  0x8a   : > { %4689 = vsyncadd (%p5894_p7), %s256_s8, 4294963200  ;;  %p5895_p11 = scmp.ne.s32.totalorder %s5882_s26, 0 }
  0x8c   : > { %4691 = dma.done.wait (%p5895_p11), [#allocation7], 16512  }
  0x8d   : > { %4693 = vsyncadd (%p5895_p11), [#allocation7], 4294950784 }
  0x8e   : > { %4695 = dma.done.wait (%p5895_p11), [#allocation10], 16384  }
  0x8f   : > { %4697 = vsyncadd (%p5895_p11), [#allocation10], 4294950912  ;;  %v4994_v0 = vld [vmem:[%s4979_s10] sm:$0xff]  ;;  %v4997_v1 = vld [vmem:[%s4979_s10 + $0x8] sm:$0xff]  ;;  %s5726_s30 = scalar_lea.vmem [#allocation11], %s3825_s25  ;;  %s4095_s27 = sshll.u32 %s4716_s21, 12 }
  0x90   : > { %v5000_v2 = vld [vmem:[%s4979_s10 + $0x20] sm:$0xff]  ;;  %v338_v3 = vadd.f32 %v4997_v1, %v4994_v0  ;;  %v5005_v4 = vld [vmem:[%s4979_s10 + $0x28] sm:$0xff]  ;;  %v5008_v5 = vld [vmem:[%s4979_s10 + $0x10] sm:$0xff]  ;;  %s3703_s9 = sshll.u32 %s5726_s30, 4  ;;  %s5817_s7 = scalar_lea.hbm %s5876_s5, %s4095_s27  ;;  %s5819_s9 = int_to_ptr.vmem [resolvable:$true] %s3703_s9 }
  0x91   : > { %v5011_v6 = vld [vmem:[%s4979_s10 + $0x18] sm:$0xff]  ;;  %v344_v7 = vadd.f32 %v5005_v4, %v5000_v2  ;;  %v5016_v8 = vld [vmem:[%s4979_s10 + $0x30] sm:$0xff]  ;;  %v5026_v12 = vld [vmem:[%s4979_s10 + $0x40] sm:$0xff]  ;;  %s3689_s21 = scalar_lea.sflag [#allocation5], %s4973_s12  ;;  %s4634_s14 = scalar_lea.vmem %s5819_s9, 4096 }
  0x92   : > { %v5019_v9 = vld [vmem:[%s4979_s10 + $0x38] sm:$0xff]  ;;  %339 = vadd.xlane.f32.xlu0 %v338_v3  ;;  %v341_v10 = vadd.f32 %v5011_v6, %v5008_v5  ;;  %v5029_v13 = vld [vmem:[%s4979_s10 + $0x48] sm:$0xff]  ;;  %v5032_v14 = vld [vmem:[%s4979_s10 + $0x50] sm:$0xff]  ;;  %p4635_p12 = scmp.ne.s32.totalorder %s5819_s9, %s4634_s14  ;;  %s4738_s13 = smov [#allocation11]  }
  0x93   : > { %345 = vadd.xlane.f32.xlu1 %v344_v7  ;;  %v347_v11 = vadd.f32 %v5019_v9, %v5016_v8  ;;  %v5035_v15 = vld [vmem:[%s4979_s10 + $0x58] sm:$0xff]  ;;  %v350_v16 = vadd.f32 %v5029_v13, %v5026_v12  ;;  %v5042_v18 = vld [vmem:[%s4979_s10 + $0x60] sm:$0xff]  ;;  %v5045_v19 = vld [vmem:[%s4979_s10 + $0x68] sm:$0xff]  ;;  %s4638_s11 = sshll.u32 %s4738_s13, 4  ;;  %s4639_s11 = int_to_ptr.vmem [resolvable:$false] %s4638_s11 }
  0x94   : > { %v353_v17 = vadd.f32 %v5035_v15, %v5032_v14  ;;  %v5048_v20 = vld [vmem:[%s4979_s10 + $0x70] sm:$0xff]  ;;  %v5051_v21 = vld [vmem:[%s4979_s10 + $0x78] sm:$0xff]  ;;  %v5054_v22 = vld [vmem:[%s4979_s10 + $0x80] sm:$0xff]  ;;  %v356_v24 = vadd.f32 %v5045_v19, %v5042_v18  ;;  %p4636_p1 = pnand %p4635_p12, %p4915_p2  ;;  %s4640_s17 = scalar_lea.vmem %s4639_s11, 8192 }
  0x95   : > { %v5057_v23 = vld [vmem:[%s4979_s10 + $0x88] sm:$0xff]  ;;  %v5062_v25 = vld [vmem:[%s4979_s10 + $0x90] sm:$0xff]  ;;  %v5065_v26 = vld [vmem:[%s4979_s10 + $0x98] sm:$0xff]  ;;  %v359_v27 = vadd.f32 %v5051_v21, %v5048_v20  ;;  %p4641_p6 = scmp.lt.s32.totalorder %s5819_s9, %s4639_s11  ;;  %p4642_p8 = scmp.lt.s32.totalorder %s4640_s17, %s4634_s14 }
  0x96   : > { %342 = vadd.xlane.f32.xlu0 %v341_v10  ;;  %v5070_v28 = vld [vmem:[%s4979_s10 + $0xa0] sm:$0xff]  ;;  %v5073_v29 = vld [vmem:[%s4979_s10 + $0xa8] sm:$0xff]  ;;  %v362_v30 = vadd.f32 %v5057_v23, %v5054_v22  ;;  %v5078_v31 = vld [vmem:[%s4979_s10 + $0xb0] sm:$0xff]  ;;  %v365_v33 = vadd.f32 %v5065_v26, %v5062_v25  ;;  %p4637_p4 = pneg %p4636_p1 }
  0x97   : > { %348 = vadd.xlane.f32.xlu1 %v347_v11  ;;  %v5081_v32 = vld [vmem:[%s4979_s10 + $0xb8] sm:$0xff]  ;;  %v5086_v34 = vld [vmem:[%s4979_s10 + $0xc0] sm:$0xff]  ;;  %v5089_v35 = vld [vmem:[%s4979_s10 + $0xc8] sm:$0xff]  ;;  %v368_v36 = vadd.f32 %v5073_v29, %v5070_v28  ;;  %p4643_p0 = por %p4642_p8, %p4641_p6 }
  0x98   : > { %v5094_v37 = vld [vmem:[%s4979_s10 + $0xd0] sm:$0xff]  ;;  %v5097_v38 = vld [vmem:[%s4979_s10 + $0xd8] sm:$0xff]  ;;  %v371_v39 = vadd.f32 %v5081_v32, %v5078_v31  ;;  %v5102_v40 = vld [vmem:[%s4979_s10 + $0xe0] sm:$0xff]  ;;  %v374_v42 = vadd.f32 %v5089_v35, %v5086_v34 }
  0x99   : > { %v5105_v41 = vld [vmem:[%s4979_s10 + $0xe8] sm:$0xff]  ;;  %v5110_v43 = vld [vmem:[%s4979_s10 + $0xf0] sm:$0xff]  ;;  %v5113_v44 = vld [vmem:[%s4979_s10 + $0xf8] sm:$0xff]  ;;  %v377_v45 = vadd.f32 %v5097_v38, %v5094_v37  ;;  %p4644_p5 = pnand %p4643_p0, %p4637_p4 }
  0x9a   : > { %351 = vadd.xlane.f32.xlu0 %v350_v16  ;;  %v380_v46 = vadd.f32 %v5105_v41, %v5102_v40  ;;  %v383_v47 = vadd.f32 %v5113_v44, %v5110_v43  ;;  %v885_v48 = vld [vmem:[#allocation8] sm:$0xff] }
  0x9b   : > { %354 = vadd.xlane.f32.xlu1 %v353_v17  ;;  %v889_v49 = vld [vmem:[#allocation8 + $0x20] sm:$0xff] }
  0x9c   : > { %v893_v50 = vld [vmem:[#allocation8 + $0x40] sm:$0xff]  ;;  %v3831_v51 = vcombine.high %v885_v48, %v889_v49  ;;  %v3830_v52 = vcombine.low %v885_v48, %v889_v49 }
  0x9d   : > { %v897_v53 = vld [vmem:[#allocation8 + $0x60] sm:$0xff] }
  0x9e   : > { %357 = vadd.xlane.f32.xlu0 %v356_v24  ;;  %v3839_v54 = vcombine.high %v893_v50, %v897_v53  ;;  %v901_v55 = vld [vmem:[#allocation8 + $0x80] sm:$0xff]  ;;  %1653 = vmatprep.subr.bf16.mxu1 %v3831_v51  ;;  %v3838_v57 = vcombine.low %v893_v50, %v897_v53 }
  0x9f   : > { %360 = vadd.xlane.f32.xlu1 %v359_v27  ;;  %v905_v56 = vld [vmem:[#allocation8 + $0xa0] sm:$0xff]  ;;  %1654 = vmatpush1.bf16.msra.mxu1 %v3830_v52 }
  0xa0   : > { %1655 = vmatprep.subr.bf16.mxu1 %v3839_v54  ;;  %v3847_v58 = vcombine.high %v901_v55, %v905_v56  ;;  %v909_v59 = vld [vmem:[#allocation8 + $0xc0] sm:$0xff]  ;;  %v3846_v61 = vcombine.low %v901_v55, %v905_v56 }
  0xa1   : > { %v913_v60 = vld [vmem:[#allocation8 + $0xe0] sm:$0xff] }
  0xa2   : > { %363 = vadd.xlane.f32.xlu0 %v362_v30  ;;  %v3855_v62 = vcombine.high %v909_v59, %v913_v60  ;;  %v917_v63 = vld [vmem:[#allocation8 + $0x100] sm:$0xff]  ;;  %v3854_v7 = vcombine.low %v909_v59, %v913_v60 }
  0xa3   : > { %366 = vadd.xlane.f32.xlu1 %v365_v33  ;;  %1656 = vmatpush1.bf16.msra.mxu1 %v3838_v57  ;;  %v921_v3 = vld [vmem:[#allocation8 + $0x120] sm:$0xff] }
  0xa4   : > { %1657 = vmatprep.subr.bf16.mxu1 %v3847_v58  ;;  %v3863_v10 = vcombine.high %v917_v63, %v921_v3  ;;  %v925_v11 = vld [vmem:[#allocation8 + $0x140] sm:$0xff]  ;;  %v3862_v17 = vcombine.low %v917_v63, %v921_v3 }
  0xa5   : > { %v929_v16 = vld [vmem:[#allocation8 + $0x160] sm:$0xff] }
  0xa6   : > { %369 = vadd.xlane.f32.xlu0 %v368_v36  ;;  %v3871_v24 = vcombine.high %v925_v11, %v929_v16  ;;  %v933_v27 = vld [vmem:[#allocation8 + $0x180] sm:$0xff]  ;;  %v3870_v33 = vcombine.low %v925_v11, %v929_v16 }
  0xa7   : > { %372 = vadd.xlane.f32.xlu1 %v371_v39  ;;  %1658 = vmatpush1.bf16.msra.mxu1 %v3846_v61  ;;  %v937_v30 = vld [vmem:[#allocation8 + $0x1a0] sm:$0xff] }
  0xa8   : > { %1659 = vmatprep.subr.bf16.mxu1 %v3855_v62  ;;  %v3879_v36 = vcombine.high %v933_v27, %v937_v30  ;;  %v941_v39 = vld [vmem:[#allocation8 + $0x1c0] sm:$0xff] }
  0xa9   : > { %v953_v48 = vld [vmem:[#allocation8 + $0x220] sm:$0xff] }
  0xaa   : > { %375 = vadd.xlane.f32.xlu0 %v374_v42  ;;  %v945_v42 = vld [vmem:[#allocation8 + $0x1e0] sm:$0xff] }
  0xab   : > { %378 = vadd.xlane.f32.xlu1 %v377_v45  ;;  %1660 = vmatpush1.bf16.msra.mxu1 %v3854_v7  ;;  %v3878_v45 = vcombine.low %v933_v27, %v937_v30  ;;  %v3886_v49 = vcombine.low %v941_v39, %v945_v42  ;;  %v5121_v51 = vld [vmem:[#allocation8 + $0x240] sm:$0xff] }
  0xac   : > { %1661 = vmatprep.subr.bf16.mxu1 %v3863_v10  ;;  %v5123_v52 = vld [vmem:[#allocation8 + $0x260] sm:$0xff] }
  0xad   : > { %v3903_v54 = vcombine.high %v5121_v51, %v5123_v52 }
  0xae   : > { %381 = vadd.xlane.f32.xlu0 %v380_v46  ;;  %v3887_v46 = vcombine.high %v941_v39, %v945_v42 }
  0xaf   : > { %384 = vadd.xlane.f32.xlu1 %v383_v47  ;;  %1662 = vmatpush1.bf16.msra.mxu1 %v3862_v17  ;;  %v949_v47 = vld [vmem:[#allocation8 + $0x200] sm:$0xff] }
  0xb0   : > { %1663 = vmatprep.subr.bf16.mxu1 %v3871_v24  ;;  %v3895_v50 = vcombine.high %v949_v47, %v953_v48  ;;  %v3894_v53 = vcombine.low %v949_v47, %v953_v48 }
  0xb3   : > { %1664 = vmatpush1.bf16.msra.mxu1 %v3870_v33 }
  0xb4   : > { %1665 = vmatprep.subr.bf16.mxu1 %v3879_v36 }
  0xb7   : > { %1666 = vmatpush1.bf16.msra.mxu1 %v3878_v45 }
  0xb8   : > { %1667 = vmatprep.subr.bf16.mxu1 %v3887_v46 }
  0xbb   : > { %1668 = vmatpush1.bf16.msra.mxu1 %v3886_v49 }
  0xbc   : > { %1669 = vmatprep.subr.bf16.mxu1 %v3895_v50 }
  0xbf   : > { %1670 = vmatpush1.bf16.msra.mxu1 %v3894_v53 }
  0xc0   : > { %1671 = vmatprep.subr.bf16.mxu1 %v3903_v54 }
 0x11f   : > { %v340_v55 = vpop.xlane.xlu0 %339 }
 0x120   : > { %v387_v56 = vmul.f32 0.00390625, %v340_v55  ;;  %v346_v57 = vpop.xlane.xlu1 %345 }
 0x121   : > { %v389_v58 = vmul.f32 0.00390625, %v346_v57 }
 0x122   : > { %v5128_v59 = vsub.f32 %v4994_v0, %v387_v56  ;;  %v5131_v60 = vsub.f32 %v4997_v1, %v387_v56 }
 0x123   : > { %v5134_v61 = vsub.f32 %v5000_v2, %v389_v58  ;;  %v5137_v62 = vsub.f32 %v5005_v4, %v389_v58  ;;  %v343_v63 = vpop.xlane.xlu0 %342 }
 0x124   : > { %v388_v3 = vmul.f32 0.00390625, %v343_v63  ;;  %v349_v7 = vpop.xlane.xlu1 %348  ;;  %v435_v10 = vmul.f32 %v5128_v59, %v5128_v59  ;;  %v436_v11 = vmul.f32 %v5131_v60, %v5131_v60 }
 0x125   : > { %v390_v0 = vmul.f32 0.00390625, %v349_v7  ;;  %v439_v1 = vmul.f32 %v5134_v61, %v5134_v61  ;;  %v440_v2 = vmul.f32 %v5137_v62, %v5137_v62 }
 0x126   : > { %v5148_v16 = vsub.f32 %v5008_v5, %v388_v3  ;;  %v5151_v4 = vsub.f32 %v5011_v6, %v388_v3  ;;  %v467_v17 = vadd.f32 %v436_v11, %v435_v10 }
 0x127   : > { %v5154_v24 = vsub.f32 %v5016_v8, %v390_v0  ;;  %v5157_v27 = vsub.f32 %v5019_v9, %v390_v0  ;;  %v352_v30 = vpop.xlane.xlu0 %351  ;;  %v473_v39 = vadd.f32 %v440_v2, %v439_v1 }
 0x128   : > { %v391_v33 = vmul.f32 0.00390625, %v352_v30  ;;  %468 = vadd.xlane.f32.xlu0 %v467_v17  ;;  %v355_v36 = vpop.xlane.xlu1 %354  ;;  %v437_v42 = vmul.f32 %v5148_v16, %v5148_v16  ;;  %v438_v5 = vmul.f32 %v5151_v4, %v5151_v4 }
 0x129   : > { %v392_v6 = vmul.f32 0.00390625, %v355_v36  ;;  %v441_v45 = vmul.f32 %v5154_v24, %v5154_v24  ;;  %v442_v8 = vmul.f32 %v5157_v27, %v5157_v27 }
 0x12a   : > { %v5168_v9 = vsub.f32 %v5026_v12, %v391_v33  ;;  %v5171_v46 = vsub.f32 %v5029_v13, %v391_v33  ;;  %v470_v47 = vadd.f32 %v438_v5, %v437_v42 }
 0x12b   : > { %v5174_v48 = vsub.f32 %v5032_v14, %v392_v6  ;;  %v5177_v49 = vsub.f32 %v5035_v15, %v392_v6  ;;  %v358_v50 = vpop.xlane.xlu0 %357  ;;  %v476_v55 = vadd.f32 %v442_v8, %v441_v45 }
 0x12c   : > { %v393_v53 = vmul.f32 0.00390625, %v358_v50  ;;  %474 = vadd.xlane.f32.xlu0 %v473_v39  ;;  %471 = vadd.xlane.f32.xlu1 %v470_v47  ;;  %v361_v54 = vpop.xlane.xlu1 %360  ;;  %v443_v12 = vmul.f32 %v5168_v9, %v5168_v9  ;;  %v444_v13 = vmul.f32 %v5171_v46, %v5171_v46  ;;  %v3902_v47 = vcombine.low %v5121_v51, %v5123_v52 }
 0x12d   : > { %v394_v56 = vmul.f32 0.00390625, %v361_v54  ;;  %v445_v14 = vmul.f32 %v5174_v48, %v5174_v48  ;;  %v446_v15 = vmul.f32 %v5177_v49, %v5177_v49 }
 0x12e   : > { %v5188_v57 = vsub.f32 %v5042_v18, %v393_v53  ;;  %v5191_v58 = vsub.f32 %v5045_v19, %v393_v53  ;;  %v479_v63 = vadd.f32 %v444_v13, %v443_v12  ;;  %1672 = vmatpush1.bf16.msra.mxu1 %v3902_v47 }
 0x12f   : > { %v5194_v3 = vsub.f32 %v5048_v20, %v394_v56  ;;  %v5197_v7 = vsub.f32 %v5051_v21, %v394_v56  ;;  %v364_v10 = vpop.xlane.xlu0 %363  ;;  %v482_v1 = vadd.f32 %v446_v15, %v445_v14  ;;  %v965_v14 = vld [vmem:[#allocation8 + $0x280] sm:$0xff] }
 0x130   : > { %v395_v11 = vmul.f32 0.00390625, %v364_v10  ;;  %477 = vadd.xlane.f32.xlu1 %v476_v55  ;;  %480 = vadd.xlane.f32.xlu0 %v479_v63  ;;  %v367_v0 = vpop.xlane.xlu1 %366  ;;  %v447_v18 = vmul.f32 %v5188_v57, %v5188_v57  ;;  %v448_v19 = vmul.f32 %v5191_v58, %v5191_v58  ;;  %v969_v15 = vld [vmem:[#allocation8 + $0x2a0] sm:$0xff] }
 0x131   : > { %v396_v2 = vmul.f32 0.00390625, %v367_v0  ;;  %v449_v20 = vmul.f32 %v5194_v3, %v5194_v3  ;;  %v450_v21 = vmul.f32 %v5197_v7, %v5197_v7 }
 0x132   : > { %v5208_v17 = vsub.f32 %v5054_v22, %v395_v11  ;;  %v5211_v30 = vsub.f32 %v5057_v23, %v395_v11  ;;  %v485_v33 = vadd.f32 %v448_v19, %v447_v18  ;;  %v3910_v18 = vcombine.low %v965_v14, %v969_v15 }
 0x133   : > { %v5214_v36 = vsub.f32 %v5062_v25, %v396_v2  ;;  %v5217_v39 = vsub.f32 %v5065_v26, %v396_v2  ;;  %v370_v42 = vpop.xlane.xlu0 %369  ;;  %v488_v45 = vadd.f32 %v450_v21, %v449_v20 }
 0x134   : > { %v397_v5 = vmul.f32 0.00390625, %v370_v42  ;;  %483 = vadd.xlane.f32.xlu1 %v482_v1  ;;  %486 = vadd.xlane.f32.xlu0 %v485_v33  ;;  %v373_v6 = vpop.xlane.xlu1 %372  ;;  %v451_v22 = vmul.f32 %v5208_v17, %v5208_v17  ;;  %v452_v23 = vmul.f32 %v5211_v30, %v5211_v30 }
 0x135   : > { %v398_v8 = vmul.f32 0.00390625, %v373_v6  ;;  %v453_v25 = vmul.f32 %v5214_v36, %v5214_v36  ;;  %v454_v26 = vmul.f32 %v5217_v39, %v5217_v39  ;;  %v977_v6 = vld [vmem:[#allocation8 + $0x2e0] sm:$0xff] }
 0x136   : > { %v5230_v50 = vsub.f32 %v5070_v28, %v397_v5  ;;  %v5233_v53 = vsub.f32 %v5073_v29, %v397_v5  ;;  %v491_v54 = vadd.f32 %v452_v23, %v451_v22  ;;  %v973_v5 = vld [vmem:[#allocation8 + $0x2c0] sm:$0xff] }
 0x137   : > { %v5236_v55 = vsub.f32 %v5078_v31, %v398_v8  ;;  %v5239_v12 = vsub.f32 %v5081_v32, %v398_v8  ;;  %v376_v13 = vpop.xlane.xlu0 %375  ;;  %v494_v56 = vadd.f32 %v454_v26, %v453_v25  ;;  %v3911_v31 = vcombine.high %v965_v14, %v969_v15  ;;  %v985_v14 = vld [vmem:[#allocation8 + $0x320] sm:$0xff] }
 0x138   : > { %v399_v63 = vmul.f32 0.00390625, %v376_v13  ;;  %489 = vadd.xlane.f32.xlu1 %v488_v45  ;;  %492 = vadd.xlane.f32.xlu0 %v491_v54  ;;  %v379_v28 = vpop.xlane.xlu1 %378  ;;  %v455_v29 = vmul.f32 %v5230_v50, %v5230_v50  ;;  %v456_v51 = vmul.f32 %v5233_v53, %v5233_v53  ;;  %v3919_v22 = vcombine.high %v973_v5, %v977_v6 }
 0x139   : > { %v400_v52 = vmul.f32 0.00390625, %v379_v28  ;;  %v457_v32 = vmul.f32 %v5236_v55, %v5236_v55  ;;  %v458_v10 = vmul.f32 %v5239_v12, %v5239_v12  ;;  %1673 = vmatprep.subr.bf16.mxu1 %v3911_v31  ;;  %v3918_v26 = vcombine.low %v973_v5, %v977_v6  ;;  %v993_v31 = vld [vmem:[#allocation8 + $0x360] sm:$0xff]  ;;  %v5291_v5 = vld [vmem:[#allocation8 + $0x28] sm:$0xff] }
 0x13a   : > { %v5250_v11 = vsub.f32 %v5086_v34, %v399_v63  ;;  %v5253_v0 = vsub.f32 %v5089_v35, %v399_v63  ;;  %v497_v1 = vadd.f32 %v456_v51, %v455_v29  ;;  %1674 = vmatpush1.bf16.msra.mxu1 %v3910_v18  ;;  %v989_v51 = vld [vmem:[#allocation8 + $0x340] sm:$0xff] }
 0x13b   : > { %v5256_v19 = vsub.f32 %v5094_v37, %v400_v52  ;;  %v5259_v2 = vsub.f32 %v5097_v38, %v400_v52  ;;  %v382_v20 = vpop.xlane.xlu0 %381  ;;  %v500_v42 = vadd.f32 %v458_v10, %v457_v32  ;;  %1675 = vmatprep.subr.bf16.mxu1 %v3919_v22  ;;  %v3935_v52 = vcombine.high %v989_v51, %v993_v31  ;;  %v997_v10 = vld [vmem:[#allocation8 + $0x380] sm:$0xff] }
 0x13c   : > { %v401_v21 = vmul.f32 0.00390625, %v382_v20  ;;  %495 = vadd.xlane.f32.xlu1 %v494_v56  ;;  %498 = vadd.xlane.f32.xlu0 %v497_v1  ;;  %v385_v33 = vpop.xlane.xlu1 %384  ;;  %v459_v34 = vmul.f32 %v5250_v11, %v5250_v11  ;;  %v460_v35 = vmul.f32 %v5253_v0, %v5253_v0  ;;  %v3934_v32 = vcombine.low %v989_v51, %v993_v31  ;;  %v1001_v1 = vld [vmem:[#allocation8 + $0x3a0] sm:$0xff]  ;;  %v337_v51 = vld [vmem:[#allocation6] sm:$0x77] }
 0x13d   : > { %v402_v45 = vmul.f32 0.00390625, %v385_v33  ;;  %v461_v37 = vmul.f32 %v5256_v19, %v5256_v19  ;;  %v462_v38 = vmul.f32 %v5259_v2, %v5259_v2  ;;  %v3943_v18 = vcombine.high %v997_v10, %v1001_v1  ;;  %v1009_v33 = vld [vmem:[#allocation8 + $0x3e0] sm:$0xff] }
 0x13e   : > { %v5270_v23 = vsub.f32 %v5102_v40, %v401_v21  ;;  %v5273_v8 = vsub.f32 %v5105_v41, %v401_v21  ;;  %v503_v25 = vadd.f32 %v460_v35, %v459_v34  ;;  %v981_v41 = vld [vmem:[#allocation8 + $0x300] sm:$0xff]  ;;  %1676 = vmatpush1.bf16.msra.mxu1 %v3918_v26  ;;  %v3942_v20 = vcombine.low %v997_v10, %v1001_v1  ;;  %v5289_v35 = vld [vmem:[#allocation8 + $0x8] sm:$0xff] }
 0x13f   : > { %v5276_v47 = vsub.f32 %v5110_v43, %v402_v45  ;;  %v5279_v54 = vsub.f32 %v5113_v44, %v402_v45  ;;  %v506_v13 = vadd.f32 %v462_v38, %v461_v37  ;;  %v3927_v44 = vcombine.high %v981_v41, %v985_v14  ;;  %v1005_v21 = vld [vmem:[#allocation8 + $0x3c0] sm:$0xff] }
 0x140   : > { %501 = vadd.xlane.f32.xlu1 %v500_v42  ;;  %504 = vadd.xlane.f32.xlu0 %v503_v25  ;;  %v463_v56 = vmul.f32 %v5270_v23, %v5270_v23  ;;  %v464_v40 = vmul.f32 %v5273_v8, %v5273_v8  ;;  %v3926_v28 = vcombine.low %v981_v41, %v985_v14  ;;  %v596_v38 = vlaneseq }
 0x141   : > { %v465_v15 = vmul.f32 %v5276_v47, %v5276_v47  ;;  %v466_v43 = vmul.f32 %v5279_v54, %v5279_v54  ;;  %1677 = vmatprep.subr.bf16.mxu1 %v3927_v44  ;;  %v3951_v42 = vcombine.high %v1005_v21, %v1009_v33  ;;  %v3950_v34 = vcombine.low %v1005_v21, %v1009_v33 }
 0x142   : > { %v509_v63 = vadd.f32 %v464_v40, %v463_v56  ;;  %1678 = vmatpush1.bf16.msra.mxu1 %v3926_v28  ;;  %v3833_v6 = vcombine.high %v5289_v35, %v5291_v5  ;;  %v3832_v45 = vcombine.low %v5289_v35, %v5291_v5  ;;  %v5297_v56 = vshrl.u32 %v596_v38, 7 }
 0x143   : > { %v512_v29 = vadd.f32 %v466_v43, %v465_v15  ;;  %1679 = vmatprep.subr.bf16.mxu1 %v3935_v52 }
 0x144   : > { %507 = vadd.xlane.f32.xlu1 %v506_v13  ;;  %510 = vadd.xlane.f32.xlu0 %v509_v63  ;;  %v602_v63 = vsub.s32 4, %v5297_v56  ;;  %v5301_v31 = vsub.s32 0, %v5297_v56  ;;  %v652_v10 = vsub.s32 5, %v5297_v56  ;;  %v5305_v21 = vsub.s32 1, %v5297_v56 }
 0x146   : > { %1680 = vmatpush1.bf16.msra.mxu1 %v3934_v32  ;;  %v653_v38 = vrot.slane %v337_v51, %v652_v10 }
 0x147   : > { %1681 = vmatprep.subr.bf16.mxu1 %v3943_v18 }
 0x148   : > { %513 = vadd.xlane.f32.xlu1 %v512_v29 }
 0x14a   : > { %1682 = vmatpush1.bf16.msra.mxu1 %v3942_v20  ;;  %v603_v20 = vrot.slane %v337_v51, %v602_v63 }
 0x14b   : > { %1683 = vmatprep.subr.bf16.mxu1 %v3951_v42  ;;  %v599_v42 = vrot.slane %v337_v51, %v5301_v31 }
 0x14e   : > { %1684 = vmatpush1.bf16.msra.mxu1 %v3950_v34 }
 0x14f   : > { %1766 = vmatprep.subr.bf16.mxu1 %v3833_v6 }
 0x1b5   : > { %v469_v37 = vpop.xlane.xlu0 %468 }
 0x1b6   : > { %v515_v22 = vmul.f32 0.00390625, %v469_v37 }
 0x1b8   : > { %v531_v25 = vadd.f32 1e-05, %v515_v22 }
 0x1b9   : > { %v472_v26 = vpop.xlane.xlu1 %471  ;;  %v475_v13 = vpop.xlane.xlu0 %474 }
 0x1ba   : > { %4488 = vrsqrt.f32 %v531_v25  ;;  %v516_v40 = vmul.f32 0.00390625, %v472_v26  ;;  %v517_v41 = vmul.f32 0.00390625, %v475_v13  ;;  %v5310_v26 = vrot.slane %v603_v20, %v5301_v31 }
 0x1bb   : > { %v649_v13 = vrot.slane %v337_v51, %v5305_v21 }
 0x1bc   : > { %v532_v14 = vadd.f32 1e-05, %v516_v40  ;;  %v533_v15 = vadd.f32 1e-05, %v517_v41 }
 0x1bd   : > { %v478_v43 = vpop.xlane.xlu1 %477  ;;  %v481_v44 = vpop.xlane.xlu0 %480 }
 0x1be   : > { %4490 = vrsqrt.f32 %v532_v14  ;;  %v518_v28 = vmul.f32 0.00390625, %v478_v43  ;;  %v519_v29 = vmul.f32 0.00390625, %v481_v44  ;;  %v5315_v14 = vrot.slane %v599_v42, %v5301_v31 }
 0x1bf   : > { %4492 = vrsqrt.f32 %v533_v15 }
 0x1c0   : > { %v534_v52 = vadd.f32 1e-05, %v518_v28  ;;  %v535_v32 = vadd.f32 1e-05, %v519_v29  ;;  %v5318_v28 = vrot.slane %v653_v38, %v5305_v21 }
 0x1c1   : > { %v484_v1 = vpop.xlane.xlu1 %483  ;;  %v487_v18 = vpop.xlane.xlu0 %486 }
 0x1c2   : > { %4494 = vrsqrt.f32 %v534_v52  ;;  %v520_v33 = vmul.f32 0.00390625, %v484_v1  ;;  %v521_v34 = vmul.f32 0.00390625, %v487_v18 }
 0x1c3   : > { %4496 = vrsqrt.f32 %v535_v32  ;;  %v5324_v32 = vrot.slane %v649_v13, %v5305_v21  ;;  %v898_v13 = vld [vmem:[#allocation8 + $0x68] sm:$0xff] }
 0x1c4   : > { %v4489_v6 = vpop.eup %4488  ;;  %v536_v37 = vadd.f32 1e-05, %v520_v33  ;;  %v537_v15 = vadd.f32 1e-05, %v521_v34 }
 0x1c5   : > { %v564_v22 = vmul.f32 %v4489_v6, %v5131_v60  ;;  %v490_v25 = vpop.xlane.xlu1 %489  ;;  %v563_v40 = vmul.f32 %v4489_v6, %v5128_v59  ;;  %v493_v43 = vpop.xlane.xlu0 %492 }
 0x1c6   : > { %4498 = vrsqrt.f32 %v536_v37  ;;  %v522_v41 = vmul.f32 0.00390625, %v490_v25  ;;  %v523_v10 = vmul.f32 0.00390625, %v493_v43  ;;  %v894_v25 = vld [vmem:[#allocation8 + $0x48] sm:$0xff] }
 0x1c7   : > { %v615_v59 = vmul.f32 %v5310_v26, %v564_v22  ;;  %v614_v18 = vmul.f32 %v5315_v14, %v563_v40 }
 0x1c8   : > { %v4491_v44 = vpop.eup %4490  ;;  %v538_v63 = vadd.f32 1e-05, %v522_v41  ;;  %v539_v40 = vadd.f32 1e-05, %v523_v10 }
 0x1c9   : > { %v4493_v60 = vpop.eup %4492  ;;  %v565_v29 = vmul.f32 %v4491_v44, %v5148_v16  ;;  %v566_v52 = vmul.f32 %v4491_v44, %v5151_v4  ;;  %v496_v51 = vpop.xlane.xlu1 %495  ;;  %v665_v38 = vadd.f32 %v5318_v28, %v615_v59  ;;  %v664_v41 = vadd.f32 %v5324_v32, %v614_v18 }
 0x1ca   : > { %4500 = vrsqrt.f32 %v538_v63  ;;  %v524_v1 = vmul.f32 0.00390625, %v496_v51  ;;  %v568_v20 = vmul.f32 %v4493_v60, %v5137_v62  ;;  %v3841_v51 = vcombine.high %v894_v25, %v898_v13 }
 0x1cb   : > { %4502 = vrsqrt.f32 %v537_v15  ;;  %v617_v33 = vmul.f32 %v5310_v26, %v566_v52  ;;  %v616_v16 = vmul.f32 %v5315_v14, %v565_v29  ;;  %v567_v15 = vmul.f32 %v4493_v60, %v5134_v61  ;;  %v499_v29 = vpop.xlane.xlu0 %498  ;;  %v902_v60 = vld [vmem:[#allocation8 + $0x88] sm:$0xff] }
 0x1cc   : > { %v4495_v42 = vpop.eup %4494  ;;  %v540_v4 = vadd.f32 1e-05, %v524_v1  ;;  %v906_v1 = vld [vmem:[#allocation8 + $0xa8] sm:$0xff] }
 0x1cd   : > { %v4497_v34 = vpop.eup %4496  ;;  %v569_v6 = vmul.f32 %v4495_v42, %v5154_v24  ;;  %v570_v37 = vmul.f32 %v4495_v42, %v5157_v27  ;;  %v667_v22 = vadd.f32 %v5318_v28, %v617_v33  ;;  %v502_v62 = vpop.xlane.xlu1 %501  ;;  %v666_v44 = vadd.f32 %v5324_v32, %v616_v16 }
 0x1ce   : > { %v619_v24 = vmul.f32 %v5310_v26, %v568_v20  ;;  %v572_v27 = vmul.f32 %v4497_v34, %v5171_v46  ;;  %4504 = vrsqrt.f32 %v540_v4  ;;  %v526_v10 = vmul.f32 0.00390625, %v502_v62 }
 0x1cf   : > { %v5336_v43 = vpack.c.bf16 %v667_v22, %v665_v38  ;;  %v621_v52 = vmul.f32 %v5310_v26, %v570_v37  ;;  %v5344_v61 = vpack.c.bf16 %v666_v44, %v664_v41  ;;  %v620_v18 = vmul.f32 %v5315_v14, %v569_v6  ;;  %v914_v44 = vld [vmem:[#allocation8 + $0xe8] sm:$0xff] }
 0x1d0   : > { %v4499_v63 = vpop.eup %4498  ;;  %4506 = vrsqrt.f32 %v539_v40  ;;  %v525_v20 = vmul.f32 0.00390625, %v499_v29  ;;  %v669_v46 = vadd.f32 %v5318_v28, %v619_v24  ;;  %v618_v16 = vmul.f32 %v5315_v14, %v567_v15  ;;  %v910_v15 = vld [vmem:[#allocation8 + $0xc8] sm:$0xff] }
 0x1d1   : > { %v574_v59 = vmul.f32 %v4499_v63, %v5177_v49  ;;  %1685 = vmatprep.mubr.bf16.mxu1 %v5336_v43  ;;  %v671_v33 = vadd.f32 %v5318_v28, %v621_v52  ;;  %v3840_v42 = vcombine.low %v894_v25, %v898_v13  ;;  %v3849_v4 = vcombine.high %v902_v60, %v906_v1  ;;  %v508_v5 = vpop.xlane.xlu1 %507 }
 0x1d2   : > { %1686 = vmatmul.mubr.bf16.vlgmr.msra.gmra.mrb[0].mxu1 %v5344_v61  ;;  %v623_v37 = vmul.f32 %v5310_v26, %v572_v27  ;;  %v573_v22 = vmul.f32 %v4499_v63, %v5174_v48  ;;  %v542_v40 = vadd.f32 1e-05, %v526_v10  ;;  %v670_v41 = vadd.f32 %v5324_v32, %v620_v18  ;;  %v505_v63 = vpop.xlane.xlu0 %504  ;;  %v918_v10 = vld [vmem:[#allocation8 + $0x108] sm:$0xff] }
 0x1d3   : > { %1767 = vmatpush1.bf16.msra.mxu1 %v3832_v45  ;;  %v625_v6 = vmul.f32 %v5310_v26, %v574_v59  ;;  %v5357_v62 = vpack.c.bf16 %v671_v33, %v669_v46  ;;  %v571_v45 = vmul.f32 %v4497_v34, %v5168_v9  ;;  %v541_v25 = vadd.f32 1e-05, %v525_v20  ;;  %v922_v18 = vld [vmem:[#allocation8 + $0x128] sm:$0xff] }
 0x1d4   : > { %v4501_v49 = vpop.eup %4500  ;;  %1768 = vmatprep.subr.bf16.mxu1 %v3841_v51  ;;  %v668_v13 = vadd.f32 %v5324_v32, %v618_v16  ;;  %v3848_v27 = vcombine.low %v902_v60, %v906_v1  ;;  %v673_v29 = vadd.f32 %v5318_v28, %v623_v37  ;;  %v3857_v52 = vcombine.high %v910_v15, %v914_v44 }
 0x1d5   : > { %v4503_v38 = vpop.eup %4502  ;;  %v578_v35 = vmul.f32 %v4501_v49, %v5197_v7  ;;  %1695 = vmatprep.mubr.bf16.mxu1 %v5357_v62  ;;  %v675_v48 = vadd.f32 %v5318_v28, %v625_v6  ;;  %4508 = vrsqrt.f32 %v542_v40  ;;  %v528_v7 = vmul.f32 0.00390625, %v508_v5  ;;  %v926_v6 = vld [vmem:[#allocation8 + $0x148] sm:$0xff] }
 0x1d6   : > { %v576_v24 = vmul.f32 %v4503_v38, %v5191_v58  ;;  %v5367_v51 = vpack.c.bf16 %v670_v41, %v668_v13  ;;  %v624_v9 = vmul.f32 %v5315_v14, %v573_v22  ;;  %4510 = vrsqrt.f32 %v541_v25  ;;  %v930_v22 = vld [vmem:[#allocation8 + $0x168] sm:$0xff]  ;;  %v514_v41 = vpop.xlane.xlu1 %513 }
 0x1d7   : > { %1769 = vmatpush1.bf16.msra.mxu1 %v3840_v42  ;;  %v5370_v59 = vpack.c.bf16 %v675_v48, %v673_v29  ;;  %v629_v58 = vmul.f32 %v5310_v26, %v578_v35  ;;  %v527_v20 = vmul.f32 0.00390625, %v505_v63  ;;  %v622_v60 = vmul.f32 %v5315_v14, %v571_v45 }
 0x1d8   : > { %1770 = vmatprep.subr.bf16.mxu1 %v3849_v4  ;;  %v4505_v34 = vpop.eup %4504  ;;  %v3856_v46 = vcombine.low %v910_v15, %v914_v44  ;;  %v627_v33 = vmul.f32 %v5310_v26, %v576_v24  ;;  %v577_v16 = vmul.f32 %v4501_v49, %v5194_v3  ;;  %v544_v42 = vadd.f32 1e-05, %v528_v7  ;;  %v511_v3 = vpop.xlane.xlu0 %510 }
 0x1d9   : > { %v3865_v4 = vcombine.high %v918_v10, %v922_v18  ;;  %v674_v37 = vadd.f32 %v5324_v32, %v624_v9  ;;  %v582_v40 = vmul.f32 %v4505_v34, %v5217_v39  ;;  %v679_v35 = vadd.f32 %v5318_v28, %v629_v58 }
 0x1da   : > { %1696 = vmatmul.mubr.bf16.gmra.mrb[4].mxu1 %v5367_v51  ;;  %v4507_v1 = vpop.eup %4506  ;;  %v575_v5 = vmul.f32 %v4503_v38, %v5188_v57  ;;  %v543_v45 = vadd.f32 1e-05, %v527_v20  ;;  %v672_v15 = vadd.f32 %v5324_v32, %v622_v60  ;;  %v3864_v49 = vcombine.low %v918_v10, %v922_v18  ;;  %v934_v57 = vld [vmem:[#allocation8 + $0x188] sm:$0xff] }
 0x1db   : > { %1771 = vmatpush1.bf16.msra.mxu1 %v3848_v27  ;;  %1705 = vmatprep.mubr.bf16.mxu1 %v5370_v59  ;;  %v580_v44 = vmul.f32 %v4507_v1, %v5211_v30  ;;  %v677_v25 = vadd.f32 %v5318_v28, %v627_v33  ;;  %v3873_v13 = vcombine.high %v926_v6, %v930_v22  ;;  %4512 = vrsqrt.f32 %v544_v42  ;;  %v938_v38 = vld [vmem:[#allocation8 + $0x1a8] sm:$0xff] }
 0x1dc   : > { %1772 = vmatprep.subr.bf16.mxu1 %v3857_v52  ;;  %v530_v48 = vmul.f32 0.00390625, %v514_v41  ;;  %v5385_v39 = vpack.c.bf16 %v674_v37, %v672_v15  ;;  %v628_v24 = vmul.f32 %v5315_v14, %v577_v16  ;;  %v633_v27 = vmul.f32 %v5310_v26, %v582_v40  ;;  %v942_v16 = vld [vmem:[#allocation8 + $0x1c8] sm:$0xff] }
 0x1dd   : > { %v5388_v63 = vpack.c.bf16 %v679_v35, %v677_v25  ;;  %4514 = vrsqrt.f32 %v543_v45  ;;  %v529_v29 = vmul.f32 0.00390625, %v511_v3  ;;  %v626_v52 = vmul.f32 %v5315_v14, %v575_v5  ;;  %v946_v42 = vld [vmem:[#allocation8 + $0x1e8] sm:$0xff] }
 0x1de   : > { %v3872_v7 = vcombine.low %v926_v6, %v930_v22  ;;  %v631_v9 = vmul.f32 %v5310_v26, %v580_v44  ;;  %v581_v18 = vmul.f32 %v4505_v34, %v5214_v36  ;;  %v546_v58 = vadd.f32 1e-05, %v530_v48  ;;  %v950_v5 = vld [vmem:[#allocation8 + $0x208] sm:$0xff] }
 0x1df   : > { %1773 = vmatpush1.bf16.msra.mxu1 %v3856_v46  ;;  %v4509_v30 = vpop.eup %4508  ;;  %v3881_v20 = vcombine.high %v934_v57, %v938_v38  ;;  %v678_v60 = vadd.f32 %v5324_v32, %v628_v24  ;;  %v683_v33 = vadd.f32 %v5318_v28, %v633_v27  ;;  %v545_v37 = vadd.f32 1e-05, %v529_v29 }
 0x1e0   : > { %1774 = vmatprep.subr.bf16.mxu1 %v3865_v4  ;;  %v4511_v10 = vpop.eup %4510  ;;  %v586_v46 = vmul.f32 %v4509_v30, %v5239_v12  ;;  %v579_v4 = vmul.f32 %v4507_v1, %v5208_v17  ;;  %v676_v6 = vadd.f32 %v5324_v32, %v626_v52  ;;  %v3880_v36 = vcombine.low %v934_v57, %v938_v38  ;;  %v954_v17 = vld [vmem:[#allocation8 + $0x228] sm:$0xff] }
 0x1e1   : > { %v584_v22 = vmul.f32 %v4511_v10, %v5233_v53  ;;  %v681_v34 = vadd.f32 %v5318_v28, %v631_v9  ;;  %4516 = vrsqrt.f32 %v546_v58  ;;  %v3889_v12 = vcombine.high %v942_v16, %v946_v42  ;;  %v958_v57 = vld [vmem:[#allocation8 + $0x248] sm:$0xff] }
 0x1e2   : > { %1706 = vmatmul.mubr.bf16.gmra.mrb[8].mxu1 %v5385_v39  ;;  %v5403_v40 = vpack.c.bf16 %v678_v60, %v676_v6  ;;  %v632_v41 = vmul.f32 %v5315_v14, %v581_v18  ;;  %v637_v1 = vmul.f32 %v5310_v26, %v586_v46  ;;  %4518 = vrsqrt.f32 %v545_v37  ;;  %v962_v38 = vld [vmem:[#allocation8 + $0x268] sm:$0xff] }
 0x1e3   : > { %1775 = vmatpush1.bf16.msra.mxu1 %v3864_v49  ;;  %1715 = vmatprep.mubr.bf16.mxu1 %v5388_v63  ;;  %v5406_v35 = vpack.c.bf16 %v683_v33, %v681_v34  ;;  %v630_v53 = vmul.f32 %v5315_v14, %v579_v4  ;;  %v3888_v15 = vcombine.low %v942_v16, %v946_v42  ;;  %v4297_v9 = vld [vmem:[#allocation9] ss:$8 sps:$4 sm:$0xff]   ;;  %v4298_v42 = vld [vmem:[#allocation9 + $0x14] ss:$8 sps:$4 sm:$0xff]   ;;  %v4300_v4 = vld [vmem:[#allocation9 + $0x10] ss:$8 sps:$4 sm:$0xff]  }
 0x1e4   : > { %1776 = vmatprep.subr.bf16.mxu1 %v3873_v13  ;;  %v635_v44 = vmul.f32 %v5310_v26, %v584_v22  ;;  %v585_v49 = vmul.f32 %v4509_v30, %v5236_v55  ;;  %v3897_v25 = vcombine.high %v950_v5, %v954_v17  ;;  %v682_v13 = vadd.f32 %v5324_v32, %v632_v41  ;;  %v4295_v30 = vld [vmem:[#allocation9 + $0x4] ss:$8 sps:$4 sm:$0xff]  }
 0x1e5   : > { %v4513_v45 = vpop.eup %4512  ;;  %v687_v24 = vadd.f32 %v5318_v28, %v637_v1  ;;  %v583_v27 = vmul.f32 %v4511_v10, %v5230_v50  ;;  %v680_v29 = vadd.f32 %v5324_v32, %v630_v53  ;;  %v966_v60 = vld [vmem:[#allocation8 + $0x288] sm:$0xff]  ;;  %3172 = vmatprep.subr.bf16.mxu0 %v4295_v30  ;;  %v3904_v33 = vcombine.low %v958_v57, %v962_v38 }
 0x1e6   : > { %v590_v48 = vmul.f32 %v4513_v45, %v5259_v2  ;;  %v685_v55 = vadd.f32 %v5318_v28, %v635_v44  ;;  %v3905_v2 = vcombine.high %v958_v57, %v962_v38  ;;  %v636_v58 = vmul.f32 %v5315_v14, %v585_v49  ;;  %v970_v50 = vld [vmem:[#allocation8 + $0x2a8] sm:$0xff]  ;;  %3173 = vmatpush1.bf16.msra.mxu0 %v4297_v9  ;;  %v4304_v38 = vld [vmem:[#allocation9 + $0x34] ss:$8 sps:$4 sm:$0xff]  }
 0x1e7   : > { %1777 = vmatpush1.bf16.msra.mxu1 %v3872_v7  ;;  %v4515_v3 = vpop.eup %4514  ;;  %v3896_v7 = vcombine.low %v950_v5, %v954_v17  ;;  %v5421_v18 = vpack.c.bf16 %v682_v13, %v680_v29  ;;  %v634_v46 = vmul.f32 %v5315_v14, %v583_v27  ;;  %v589_v6 = vmul.f32 %v4513_v45, %v5256_v19  ;;  %v974_v41 = vld [vmem:[#allocation8 + $0x2c8] sm:$0xff]  ;;  %v4306_v27 = vld [vmem:[#allocation9 + $0x30] ss:$8 sps:$4 sm:$0xff]  }
 0x1e8   : > { %1778 = vmatprep.subr.bf16.mxu1 %v3881_v20  ;;  %v588_v52 = vmul.f32 %v4515_v3, %v5253_v0  ;;  %v5424_v20 = vpack.c.bf16 %v687_v24, %v685_v55  ;;  %v641_v10 = vmul.f32 %v5310_v26, %v590_v48  ;;  %v3913_v22 = vcombine.high %v966_v60, %v970_v50  ;;  %v978_v5 = vld [vmem:[#allocation8 + $0x2e8] sm:$0xff] }
 0x1e9   : > { %3174 = vmatprep.subr.bf16.mxu0 %v4298_v42  ;;  %v587_v17 = vmul.f32 %v4515_v3, %v5250_v11  ;;  %v684_v1 = vadd.f32 %v5324_v32, %v634_v46  ;;  %v3912_v19 = vcombine.low %v966_v60, %v970_v50  ;;  %v4303_v44 = vld [vmem:[#allocation9 + $0x20] ss:$8 sps:$4 sm:$0xff]   ;;  %v3921_v49 = vcombine.high %v974_v41, %v978_v5  ;;  %v4307_v50 = vld [vmem:[#allocation9 + $0x44] ss:$8 sps:$4 sm:$0xff]  }
 0x1ea   : > { %1716 = vmatmul.mubr.bf16.gmra.mrb[12].mxu1 %v5403_v40  ;;  %v639_v16 = vmul.f32 %v5310_v26, %v588_v52  ;;  %3175 = vmatpush1.bf16.msra.mxu0 %v4300_v4  ;;  %v982_v11 = vld [vmem:[#allocation8 + $0x308] sm:$0xff]  ;;  %v3920_v24 = vcombine.low %v974_v41, %v978_v5  ;;  %v4310_v4 = vld [vmem:[#allocation9 + $0x54] ss:$8 sps:$4 sm:$0xff]  }
 0x1eb   : > { %1779 = vmatpush1.bf16.msra.mxu1 %v3880_v36  ;;  %1725 = vmatprep.mubr.bf16.mxu1 %v5406_v35  ;;  %v4517_v0 = vpop.eup %4516  ;;  %v686_v36 = vadd.f32 %v5324_v32, %v636_v58  ;;  %v986_v3 = vld [vmem:[#allocation8 + $0x328] sm:$0xff] }
 0x1ec   : > { %1780 = vmatprep.subr.bf16.mxu1 %v3889_v12  ;;  %v4519_v37 = vpop.eup %4518  ;;  %v594_v34 = vmul.f32 %v4517_v0, %v5279_v54  ;;  %v691_v12 = vadd.f32 %v5318_v28, %v641_v10  ;;  %v689_v45 = vadd.f32 %v5318_v28, %v639_v16  ;;  %v593_v29 = vmul.f32 %v4517_v0, %v5276_v47  ;;  %v990_v30 = vld [vmem:[#allocation8 + $0x348] sm:$0xff] }
 0x1ed   : > { %v592_v53 = vmul.f32 %v4519_v37, %v5273_v8  ;;  %v5439_v54 = vpack.c.bf16 %v686_v36, %v684_v1  ;;  %v638_v8 = vmul.f32 %v5315_v14, %v587_v17  ;;  %v3929_v52 = vcombine.high %v982_v11, %v986_v3  ;;  %v994_v9 = vld [vmem:[#allocation8 + $0x368] sm:$0xff] }
 0x1ee   : > { %v5442_v13 = vpack.c.bf16 %v691_v12, %v689_v45  ;;  %v645_v48 = vmul.f32 %v5310_v26, %v594_v34  ;;  %v4309_v47 = vld [vmem:[#allocation9 + $0x40] ss:$8 sps:$4 sm:$0xff]   ;;  %v3937_v0 = vcombine.high %v990_v30, %v994_v9  ;;  %v644_v46 = vmul.f32 %v5315_v14, %v593_v29  ;;  %v4324_v29 = vld [vmem:[#allocation9 + $0x90] ss:$8 sps:$4 sm:$0xff]  }
 0x1ef   : > { %1781 = vmatpush1.bf16.msra.mxu1 %v3888_v15  ;;  %v4301_v15 = vld [vmem:[#allocation9 + $0x24] ss:$8 sps:$4 sm:$0xff]   ;;  %v643_v57 = vmul.f32 %v5310_v26, %v592_v53  ;;  %v688_v58 = vadd.f32 %v5324_v32, %v638_v8  ;;  %v3928_v26 = vcombine.low %v982_v11, %v986_v3  ;;  %v4315_v5 = vld [vmem:[#allocation9 + $0x60] ss:$8 sps:$4 sm:$0xff]   ;;  %v887_v53 = vld [vmem:[#allocation8 + $0x10] sm:$0xff] }
 0x1f0   : > { %1782 = vmatprep.subr.bf16.mxu1 %v3897_v25  ;;  %v640_v25 = vmul.f32 %v5315_v14, %v589_v6  ;;  %3176 = vmatprep.subr.bf16.mxu0 %v4301_v15  ;;  %v695_v55 = vadd.f32 %v5318_v28, %v645_v48  ;;  %v998_v16 = vld [vmem:[#allocation8 + $0x388] sm:$0xff]  ;;  %v4318_v15 = vld [vmem:[#allocation9 + $0x70] ss:$8 sps:$4 sm:$0xff]  }
 0x1f1   : > { %3177 = vmatpush1.bf16.msra.mxu0 %v4303_v44  ;;  %v693_v60 = vadd.f32 %v5318_v28, %v643_v57  ;;  %v1002_v42 = vld [vmem:[#allocation8 + $0x3a8] sm:$0xff]  ;;  %v3936_v28 = vcombine.low %v990_v30, %v994_v9  ;;  %v907_v57 = vld [vmem:[#allocation8 + $0xb0] sm:$0xff] }
 0x1f2   : > { %1726 = vmatmul.mubr.bf16.gmra.mrb[16].mxu1 %v5421_v18  ;;  %3178 = vmatprep.subr.bf16.mxu0 %v4304_v38  ;;  %v3945_v6 = vcombine.high %v998_v16, %v1002_v42  ;;  %v1006_v36 = vld [vmem:[#allocation8 + $0x3c8] sm:$0xff]  ;;  %v3944_v41 = vcombine.low %v998_v16, %v1002_v42  ;;  %v915_v30 = vld [vmem:[#allocation8 + $0xf0] sm:$0xff] }
 0x1f3   : > { %1783 = vmatpush1.bf16.msra.mxu1 %v3896_v7  ;;  %1735 = vmatprep.mubr.bf16.mxu1 %v5424_v20  ;;  %v690_v7 = vadd.f32 %v5324_v32, %v640_v25  ;;  %v1010_v34 = vld [vmem:[#allocation8 + $0x3e8] sm:$0xff]  ;;  %v899_v25 = vld [vmem:[#allocation8 + $0x70] sm:$0xff] }
 0x1f4   : > { %1784 = vmatprep.subr.bf16.mxu1 %v3905_v2  ;;  %v591_v2 = vmul.f32 %v4519_v37, %v5270_v23  ;;  %v4312_v37 = vld [vmem:[#allocation9 + $0x50] ss:$8 sps:$4 sm:$0xff]   ;;  %v3953_v1 = vcombine.high %v1006_v36, %v1010_v34  ;;  %v3952_v45 = vcombine.low %v1006_v36, %v1010_v34  ;;  %v4319_v3 = vld [vmem:[#allocation9 + $0x84] ss:$8 sps:$4 sm:$0xff]   ;;  %v4321_v48 = vld [vmem:[#allocation9 + $0x80] ss:$8 sps:$4 sm:$0xff]  }
 0x1f5   : > { %3179 = vmatpush1.bf16.msra.mxu0 %v4306_v27  ;;  %v5455_v10 = vpack.c.bf16 %v690_v7, %v688_v58  ;;  %v4322_v27 = vld [vmem:[#allocation9 + $0x94] ss:$8 sps:$4 sm:$0xff]   ;;  %v4327_v9 = vld [vmem:[#allocation9 + $0xa0] ss:$8 sps:$4 sm:$0xff]  }
 0x1f6   : > { %3180 = vmatprep.subr.bf16.mxu0 %v4307_v50  ;;  %v642_v23 = vmul.f32 %v5315_v14, %v591_v2  ;;  %v4313_v14 = vld [vmem:[#allocation9 + $0x64] ss:$8 sps:$4 sm:$0xff]   ;;  %v927_v42 = vld [vmem:[#allocation8 + $0x150] sm:$0xff] }
 0x1f7   : > { %1785 = vmatpush1.bf16.msra.mxu1 %v3904_v33  ;;  %v5458_v33 = vpack.c.bf16 %v695_v55, %v693_v60  ;;  %v911_v55 = vld [vmem:[#allocation8 + $0xd0] sm:$0xff] }
 0x1f8   : > { %1786 = vmatprep.subr.bf16.mxu1 %v3913_v22  ;;  %v694_v22 = vadd.f32 %v5324_v32, %v644_v46  ;;  %v692_v12 = vadd.f32 %v5324_v32, %v642_v23  ;;  %v4316_v32 = vld [vmem:[#allocation9 + $0x74] ss:$8 sps:$4 sm:$0xff]   ;;  %v3859_v58 = vcombine.high %v911_v55, %v915_v30  ;;  %v3858_v50 = vcombine.low %v911_v55, %v915_v30  ;;  %v4331_v46 = vld [vmem:[#allocation9 + $0xc4] ss:$8 sps:$4 sm:$0xff]  }
 0x1f9   : > { %3181 = vmatpush1.bf16.msra.mxu0 %v4309_v47  ;;  %v923_v60 = vld [vmem:[#allocation8 + $0x130] sm:$0xff] }
 0x1fa   : > { %1736 = vmatmul.mubr.bf16.gmra.mrb[20].mxu1 %v5439_v54  ;;  %3182 = vmatprep.subr.bf16.mxu0 %v4310_v4  ;;  %v5465_v17 = vpack.c.bf16 %v694_v22, %v692_v12  ;;  %v4328_v47 = vld [vmem:[#allocation9 + $0xb4] ss:$8 sps:$4 sm:$0xff]   ;;  %v4336_v12 = vld [vmem:[#allocation9 + $0xd0] ss:$8 sps:$4 sm:$0xff]  }
 0x1fb   : > { %1787 = vmatpush1.bf16.msra.mxu1 %v3912_v19  ;;  %1745 = vmatprep.mubr.bf16.mxu1 %v5442_v13  ;;  %v891_v19 = vld [vmem:[#allocation8 + $0x30] sm:$0xff] }
 0x1fc   : > { %1788 = vmatprep.subr.bf16.mxu1 %v3921_v49  ;;  %v3835_v44 = vcombine.high %v887_v53, %v891_v19  ;;  %v895_v49 = vld [vmem:[#allocation8 + $0x50] sm:$0xff]  ;;  %v3834_v11 = vcombine.low %v887_v53, %v891_v19 }
 0x1fd   : > { %3183 = vmatpush1.bf16.msra.mxu0 %v4312_v37  ;;  %v3843_v8 = vcombine.high %v895_v49, %v899_v25  ;;  %v3842_v38 = vcombine.low %v895_v49, %v899_v25  ;;  %v931_v23 = vld [vmem:[#allocation8 + $0x170] sm:$0xff] }
 0x1fe   : > { %3184 = vmatprep.subr.bf16.mxu0 %v4313_v14  ;;  %v3875_v37 = vcombine.high %v927_v42, %v931_v23  ;;  %v939_v22 = vld [vmem:[#allocation8 + $0x1b0] sm:$0xff]  ;;  %v3874_v36 = vcombine.low %v927_v42, %v931_v23 }
 0x1ff   : > { %1789 = vmatpush1.bf16.msra.mxu1 %v3920_v24  ;;  %v903_v24 = vld [vmem:[#allocation8 + $0x90] sm:$0xff] }
 0x200   : > { %1790 = vmatprep.subr.bf16.mxu1 %v3929_v52  ;;  %v4325_v52 = vld [vmem:[#allocation9 + $0xa4] ss:$8 sps:$4 sm:$0xff]   ;;  %v3851_v7 = vcombine.high %v903_v24, %v907_v57  ;;  %v3850_v2 = vcombine.low %v903_v24, %v907_v57  ;;  %v4334_v34 = vld [vmem:[#allocation9 + $0xd4] ss:$8 sps:$4 sm:$0xff]  }
 0x201   : > { %3185 = vmatpush1.bf16.msra.mxu0 %v4315_v5  ;;  %v943_v14 = vld [vmem:[#allocation8 + $0x1d0] sm:$0xff] }
 0x202   : > { %1746 = vmatmul.mubr.bf16.gmra.mrb[24].mxu1 %v5455_v10  ;;  %3186 = vmatprep.subr.bf16.mxu0 %v4316_v32  ;;  %v947_v5 = vld [vmem:[#allocation8 + $0x1f0] sm:$0xff]  ;;  %v4337_v32 = vld [vmem:[#allocation9 + $0xe4] ss:$8 sps:$4 sm:$0xff]  }
 0x203   : > { %1791 = vmatpush1.bf16.msra.mxu1 %v3928_v26  ;;  %1755 = vmatprep.mubr.bf16.mxu1 %v5458_v33  ;;  %v919_v26 = vld [vmem:[#allocation8 + $0x110] sm:$0xff]  ;;  %v3891_v53 = vcombine.high %v943_v14, %v947_v5 }
 0x204   : > { %1792 = vmatprep.subr.bf16.mxu1 %v3937_v0  ;;  %v4330_v0 = vld [vmem:[#allocation9 + $0xb0] ss:$8 sps:$4 sm:$0xff]   ;;  %v3867_v16 = vcombine.high %v919_v26, %v923_v60  ;;  %v3866_v4 = vcombine.low %v919_v26, %v923_v60  ;;  %v4340_v49 = vld [vmem:[#allocation9 + $0xf4] ss:$8 sps:$4 sm:$0xff]  }
 0x205   : > { %3187 = vmatpush1.bf16.msra.mxu0 %v4318_v15  ;;  %v951_v19 = vld [vmem:[#allocation8 + $0x210] sm:$0xff]  ;;  %v4339_v15 = vld [vmem:[#allocation9 + $0xe0] ss:$8 sps:$4 sm:$0xff]  }
 0x206   : > { %3188 = vmatprep.subr.bf16.mxu0 %v4319_v3  ;;  %v963_v3 = vld [vmem:[#allocation8 + $0x270] sm:$0xff] }
 0x207   : > { %1793 = vmatpush1.bf16.msra.mxu1 %v3936_v28  ;;  %v4333_v28 = vld [vmem:[#allocation9 + $0xc0] ss:$8 sps:$4 sm:$0xff]   ;;  %v967_v57 = vld [vmem:[#allocation8 + $0x290] sm:$0xff] }
 0x208   : > { %1794 = vmatprep.subr.bf16.mxu1 %v3945_v6  ;;  %v935_v6 = vld [vmem:[#allocation8 + $0x190] sm:$0xff] }
 0x209   : > { %3189 = vmatpush1.bf16.msra.mxu0 %v4321_v48  ;;  %v4342_v48 = vld [vmem:[#allocation9 + $0xf0] ss:$8 sps:$4 sm:$0xff]  }
 0x20a   : > { %1756 = vmatmul.mubr.bf16.gmra.mrb[28].mxu1 %v5465_v17  ;;  %3190 = vmatprep.subr.bf16.mxu0 %v4322_v27  ;;  %v4345_v27 = vld [vmem:[#allocation9 + $0x104] ss:$8 sps:$4 sm:$0xff]   ;;  %v979_v55 = vld [vmem:[#allocation8 + $0x2f0] sm:$0xff] }
 0x20b   : > { %1795 = vmatpush1.bf16.msra.mxu1 %v3944_v41  ;;  %1798 = vmatprep.mubr.bf16.mxu1 %v5336_v43  ;;  %v3883_v41 = vcombine.high %v935_v6, %v939_v22  ;;  %v1003_v42 = vld [vmem:[#allocation8 + $0x3b0] sm:$0xff] }
 0x20c   : > { %1796 = vmatprep.subr.bf16.mxu1 %v3953_v1  ;;  %v3882_v1 = vcombine.low %v935_v6, %v939_v22 }
 0x20d   : > { %3191 = vmatpush1.bf16.msra.mxu0 %v4324_v29 }
 0x20e   : > { %3192 = vmatprep.subr.bf16.mxu0 %v4325_v52 }
 0x20f   : > { %1797 = vmatpush1.bf16.msra.mxu1 %v3952_v45  ;;  %v955_v45 = vld [vmem:[#allocation8 + $0x230] sm:$0xff] }
 0x210   : > { %1879 = vmatprep.subr.bf16.mxu1 %v3835_v44  ;;  %v3890_v44 = vcombine.low %v943_v14, %v947_v5  ;;  %v3899_v25 = vcombine.high %v951_v19, %v955_v45  ;;  %v896_v14 = vld [vmem:[#allocation8 + $0x58] sm:$0xff] }
 0x211   : > { %3193 = vmatpush1.bf16.msra.mxu0 %v4327_v9  ;;  %v900_v5 = vld [vmem:[#allocation8 + $0x78] sm:$0xff] }
 0x212   : > { %1799 = vmatmul.mubr.bf16.vlgmr.msra.gmra.mrb[32].mxu1 %v5344_v61  ;;  %3194 = vmatprep.subr.bf16.mxu0 %v4328_v47  ;;  %v995_v47 = vld [vmem:[#allocation8 + $0x370] sm:$0xff] }
 0x213   : > { %1880 = vmatpush1.bf16.msra.mxu1 %v3834_v11  ;;  %1808 = vmatprep.mubr.bf16.mxu1 %v5357_v62  ;;  %v959_v11 = vld [vmem:[#allocation8 + $0x250] sm:$0xff] }
 0x214   : > { %1881 = vmatprep.subr.bf16.mxu1 %v3843_v8  ;;  %v3898_v8 = vcombine.low %v951_v19, %v955_v45  ;;  %v3907_v24 = vcombine.high %v959_v11, %v963_v3  ;;  %v3906_v29 = vcombine.low %v959_v11, %v963_v3  ;;  %v904_v19 = vld [vmem:[#allocation8 + $0x98] sm:$0xff] }
 0x215   : > { %3195 = vmatpush1.bf16.msra.mxu0 %v4330_v0  ;;  %v908_v45 = vld [vmem:[#allocation8 + $0xb8] sm:$0xff] }
 0x216   : > { %3196 = vmatprep.subr.bf16.mxu0 %v4331_v46  ;;  %v920_v3 = vld [vmem:[#allocation8 + $0x118] sm:$0xff] }
 0x217   : > { %1882 = vmatpush1.bf16.msra.mxu1 %v3842_v38  ;;  %v971_v38 = vld [vmem:[#allocation8 + $0x2b0] sm:$0xff] }
 0x218   : > { %1883 = vmatprep.subr.bf16.mxu1 %v3851_v7  ;;  %v3915_v52 = vcombine.high %v967_v57, %v971_v38  ;;  %v975_v7 = vld [vmem:[#allocation8 + $0x2d0] sm:$0xff]  ;;  %v3914_v30 = vcombine.low %v967_v57, %v971_v38  ;;  %v928_v57 = vld [vmem:[#allocation8 + $0x158] sm:$0xff] }
 0x219   : > { %3197 = vmatpush1.bf16.msra.mxu0 %v4333_v28  ;;  %v3923_v9 = vcombine.high %v975_v7, %v979_v55  ;;  %v3922_v26 = vcombine.low %v975_v7, %v979_v55  ;;  %v932_v38 = vld [vmem:[#allocation8 + $0x178] sm:$0xff] }
 0x21a   : > { %1809 = vmatmul.mubr.bf16.gmra.mrb[36].mxu1 %v5367_v51  ;;  %3198 = vmatprep.subr.bf16.mxu0 %v4334_v34  ;;  %v892_v34 = vld [vmem:[#allocation8 + $0x38] sm:$0xff]  ;;  %v3876_v55 = vcombine.low %v928_v57, %v932_v38 }
 0x21b   : > { %1884 = vmatpush1.bf16.msra.mxu1 %v3850_v2  ;;  %1818 = vmatprep.mubr.bf16.mxu1 %v5370_v59  ;;  %v983_v2 = vld [vmem:[#allocation8 + $0x310] sm:$0xff]  ;;  %v940_v7 = vld [vmem:[#allocation8 + $0x1b8] sm:$0xff] }
 0x21c   : > { %1885 = vmatprep.subr.bf16.mxu1 %v3859_v58  ;;  %v987_v58 = vld [vmem:[#allocation8 + $0x330] sm:$0xff] }
 0x21d   : > { %3199 = vmatpush1.bf16.msra.mxu0 %v4336_v12  ;;  %v3931_v60 = vcombine.high %v983_v2, %v987_v58  ;;  %v3930_v0 = vcombine.low %v983_v2, %v987_v58  ;;  %v948_v2 = vld [vmem:[#allocation8 + $0x1f8] sm:$0xff] }
 0x21e   : > { %3200 = vmatprep.subr.bf16.mxu0 %v4337_v32  ;;  %v3844_v32 = vcombine.low %v896_v14, %v900_v5 }
 0x21f   : > { %1886 = vmatpush1.bf16.msra.mxu1 %v3858_v50  ;;  %v991_v50 = vld [vmem:[#allocation8 + $0x350] sm:$0xff] }
 0x220   : > { %1887 = vmatprep.subr.bf16.mxu1 %v3867_v16  ;;  %v3939_v46 = vcombine.high %v991_v50, %v995_v47  ;;  %v999_v16 = vld [vmem:[#allocation8 + $0x390] sm:$0xff]  ;;  %v3938_v23 = vcombine.low %v991_v50, %v995_v47  ;;  %v956_v50 = vld [vmem:[#allocation8 + $0x238] sm:$0xff] }
 0x221   : > { %3201 = vmatpush1.bf16.msra.mxu0 %v4339_v15  ;;  %v3947_v28 = vcombine.high %v999_v16, %v1003_v42  ;;  %v3946_v6 = vcombine.low %v999_v16, %v1003_v42  ;;  %v3853_v15 = vcombine.high %v904_v19, %v908_v45  ;;  %v964_v16 = vld [vmem:[#allocation8 + $0x278] sm:$0xff] }
 0x222   : > { %1819 = vmatmul.mubr.bf16.gmra.mrb[40].mxu1 %v5385_v39  ;;  %3202 = vmatprep.subr.bf16.mxu0 %v4340_v49  ;;  %v916_v49 = vld [vmem:[#allocation8 + $0xf8] sm:$0xff] }
 0x223   : > { %1888 = vmatpush1.bf16.msra.mxu1 %v3866_v4  ;;  %1828 = vmatprep.mubr.bf16.mxu1 %v5388_v63  ;;  %v1007_v4 = vld [vmem:[#allocation8 + $0x3d0] sm:$0xff] }
 0x224   : > { %1889 = vmatprep.subr.bf16.mxu1 %v3875_v37  ;;  %v1011_v37 = vld [vmem:[#allocation8 + $0x3f0] sm:$0xff] }
 0x225   : > { %3203 = vmatpush1.bf16.msra.mxu0 %v4342_v48  ;;  %v3955_v22 = vcombine.high %v1007_v4, %v1011_v37  ;;  %v3954_v12 = vcombine.low %v1007_v4, %v1011_v37  ;;  %v924_v48 = vld [vmem:[#allocation8 + $0x138] sm:$0xff] }
 0x226   : > { %3285 = vmatprep.subr.bf16.mxu0 %v4345_v27  ;;  %v3868_v27 = vcombine.low %v920_v3, %v924_v48  ;;  %v972_v4 = vld [vmem:[#allocation8 + $0x2b8] sm:$0xff] }
 0x227   : > { %1890 = vmatpush1.bf16.msra.mxu1 %v3874_v36  ;;  %v888_v36 = vld [vmem:[#allocation8 + $0x18] sm:$0xff] }
 0x228   : > { %1891 = vmatprep.subr.bf16.mxu1 %v3883_v41  ;;  %v3837_v41 = vcombine.high %v888_v36, %v892_v34 }
 0x22a   : > { %1829 = vmatmul.mubr.bf16.gmra.mrb[44].mxu1 %v5403_v40 }
 0x22b   : > { %1892 = vmatpush1.bf16.msra.mxu1 %v3882_v1  ;;  %1838 = vmatprep.mubr.bf16.mxu1 %v5406_v35  ;;  %v3836_v1 = vcombine.low %v888_v36, %v892_v34  ;;  %v980_v36 = vld [vmem:[#allocation8 + $0x2f8] sm:$0xff] }
 0x22c   : > { %1893 = vmatprep.subr.bf16.mxu1 %v3891_v53  ;;  %v3845_v53 = vcombine.high %v896_v14, %v900_v5  ;;  %v988_v14 = vld [vmem:[#allocation8 + $0x338] sm:$0xff] }
 0x22f   : > { %1894 = vmatpush1.bf16.msra.mxu1 %v3890_v44  ;;  %v912_v44 = vld [vmem:[#allocation8 + $0xd8] sm:$0xff] }
 0x230   : > { %1895 = vmatprep.subr.bf16.mxu1 %v3899_v25  ;;  %v3852_v25 = vcombine.low %v904_v19, %v908_v45  ;;  %v3861_v11 = vcombine.high %v912_v44, %v916_v49  ;;  %v996_v19 = vld [vmem:[#allocation8 + $0x378] sm:$0xff] }
 0x232   : > { %1839 = vmatmul.mubr.bf16.gmra.mrb[48].mxu1 %v5421_v18 }
 0x233   : > { %1896 = vmatpush1.bf16.msra.mxu1 %v3898_v8  ;;  %1848 = vmatprep.mubr.bf16.mxu1 %v5424_v20  ;;  %v3860_v8 = vcombine.low %v912_v44, %v916_v49  ;;  %v1004_v44 = vld [vmem:[#allocation8 + $0x3b8] sm:$0xff] }
 0x234   : > { %1897 = vmatprep.subr.bf16.mxu1 %v3907_v24  ;;  %v3869_v24 = vcombine.high %v920_v3, %v924_v48  ;;  %v1012_v3 = vld [vmem:[#allocation8 + $0x3f8] sm:$0xff] }
 0x237   : > { %1898 = vmatpush1.bf16.msra.mxu1 %v3906_v29  ;;  %v3877_v29 = vcombine.high %v928_v57, %v932_v38  ;;  %v4736_v57 = vmov 1966171168  }
 0x238   : > { %1899 = vmatprep.subr.bf16.mxu1 %v3915_v52  ;;  %v936_v52 = vld [vmem:[#allocation8 + $0x198] sm:$0xff]  ;;  %v2173_v38 = vunpack.c.l.s4 %v4736_v57 }
 0x239   : > { %v3884_v58 = vcombine.low %v936_v52, %v940_v7 }
 0x23a   : > { %1849 = vmatmul.mubr.bf16.gmra.mrb[52].mxu1 %v5439_v54 }
 0x23b   : > { %1900 = vmatpush1.bf16.msra.mxu1 %v3914_v30  ;;  %1858 = vmatprep.mubr.bf16.mxu1 %v5442_v13  ;;  %v3885_v30 = vcombine.high %v936_v52, %v940_v7  ;;  %v5509_v52 = vld [vmem:[%s5874_s3] sm:$0xff] }
 0x23c   : > { %1901 = vmatprep.subr.bf16.mxu1 %v3923_v9  ;;  %v944_v9 = vld [vmem:[#allocation8 + $0x1d8] sm:$0xff] }
 0x23d   : > { %v3892_v47 = vcombine.low %v944_v9, %v948_v2 }
 0x23f   : > { %1902 = vmatpush1.bf16.msra.mxu1 %v3922_v26  ;;  %v3893_v26 = vcombine.high %v944_v9, %v948_v2 }
 0x240   : > { %1903 = vmatprep.subr.bf16.mxu1 %v3931_v60  ;;  %v952_v60 = vld [vmem:[#allocation8 + $0x218] sm:$0xff] }
 0x241   : > { %v3900_v42 = vcombine.low %v952_v60, %v956_v50 }
 0x242   : > { %1859 = vmatmul.mubr.bf16.gmra.mrb[56].mxu1 %v5455_v10 }
 0x243   : > { %1904 = vmatpush1.bf16.msra.mxu1 %v3930_v0  ;;  %1868 = vmatprep.mubr.bf16.mxu1 %v5458_v33  ;;  %v3901_v0 = vcombine.high %v952_v60, %v956_v50 }
 0x244   : > { %1905 = vmatprep.subr.bf16.mxu1 %v3939_v46  ;;  %v960_v46 = vld [vmem:[#allocation8 + $0x258] sm:$0xff] }
 0x245   : > { %v3908_v37 = vcombine.low %v960_v46, %v964_v16 }
 0x247   : > { %1906 = vmatpush1.bf16.msra.mxu1 %v3938_v23  ;;  %v3909_v23 = vcombine.high %v960_v46, %v964_v16  ;;  %v4343_v46 = vld [vmem:[#allocation9 + $0x100] ss:$8 sps:$4 sm:$0xff]  }
 0x248   : > { %1907 = vmatprep.subr.bf16.mxu1 %v3947_v28  ;;  %v968_v28 = vld [vmem:[#allocation8 + $0x298] sm:$0xff] }
 0x249   : > { %v3916_v34 = vcombine.low %v968_v28, %v972_v4 }
 0x24a   : > { %1869 = vmatmul.mubr.bf16.gmra.mrb[60].mxu1 %v5465_v17 }
 0x24b   : > { %1908 = vmatpush1.bf16.msra.mxu1 %v3946_v6  ;;  %1911 = vmatprep.mubr.bf16.mxu1 %v5336_v43  ;;  %v3917_v6 = vcombine.high %v968_v28, %v972_v4 }
 0x24c   : > { %1909 = vmatprep.subr.bf16.mxu1 %v3955_v22  ;;  %v976_v22 = vld [vmem:[#allocation8 + $0x2d8] sm:$0xff] }
 0x24d   : > { %v3924_v5 = vcombine.low %v976_v22, %v980_v36 }
 0x24f   : > { %1910 = vmatpush1.bf16.msra.mxu1 %v3954_v12  ;;  %v3925_v12 = vcombine.high %v976_v22, %v980_v36  ;;  %v4351_v22 = vld [vmem:[#allocation9 + $0x124] ss:$8 sps:$4 sm:$0xff]  }
 0x250   : > { %1992 = vmatprep.subr.bf16.mxu1 %v3837_v41  ;;  %v984_v41 = vld [vmem:[#allocation8 + $0x318] sm:$0xff] }
 0x251   : > { %v3932_v45 = vcombine.low %v984_v41, %v988_v14 }
 0x252   : > { %1912 = vmatmul.mubr.bf16.vlgmr.msra.gmra.mrb[64].mxu1 %v5344_v61 }
 0x253   : > { %1993 = vmatpush1.bf16.msra.mxu1 %v3836_v1  ;;  %1921 = vmatprep.mubr.bf16.mxu1 %v5357_v62  ;;  %v3933_v1 = vcombine.high %v984_v41, %v988_v14  ;;  %v4349_v41 = vld [vmem:[#allocation9 + $0x120] ss:$8 sps:$4 sm:$0xff]  }
 0x254   : > { %1994 = vmatprep.subr.bf16.mxu1 %v3845_v53  ;;  %v992_v53 = vld [vmem:[#allocation8 + $0x358] sm:$0xff] }
 0x255   : > { %v3940_v49 = vcombine.low %v992_v53, %v996_v19 }
 0x257   : > { %1995 = vmatpush1.bf16.msra.mxu1 %v3844_v32  ;;  %v3941_v32 = vcombine.high %v992_v53, %v996_v19 }
 0x258   : > { %1996 = vmatprep.subr.bf16.mxu1 %v3853_v15  ;;  %v1000_v15 = vld [vmem:[#allocation8 + $0x398] sm:$0xff] }
 0x259   : > { %v3948_v48 = vcombine.low %v1000_v15, %v1004_v44 }
 0x25a   : > { %1922 = vmatmul.mubr.bf16.gmra.mrb[68].mxu1 %v5367_v51 }
 0x25b   : > { %1997 = vmatpush1.bf16.msra.mxu1 %v3852_v25  ;;  %1931 = vmatprep.mubr.bf16.mxu1 %v5370_v59  ;;  %v3949_v25 = vcombine.high %v1000_v15, %v1004_v44  ;;  %v4357_v15 = vld [vmem:[#allocation9 + $0x144] ss:$8 sps:$4 sm:$0xff]  }
 0x25c   : > { %1998 = vmatprep.subr.bf16.mxu1 %v3861_v11  ;;  %v1008_v11 = vld [vmem:[#allocation8 + $0x3d8] sm:$0xff] }
 0x25f   : > { %1999 = vmatpush1.bf16.msra.mxu1 %v3860_v8  ;;  %v3957_v8 = vcombine.high %v1008_v11, %v1012_v3 }
 0x260   : > { %2000 = vmatprep.subr.bf16.mxu1 %v3869_v24  ;;  %v3956_v24 = vcombine.low %v1008_v11, %v1012_v3  ;;  %v4355_v11 = vld [vmem:[#allocation9 + $0x140] ss:$8 sps:$4 sm:$0xff]  }
 0x262   : > { %1932 = vmatmul.mubr.bf16.gmra.mrb[72].mxu1 %v5385_v39 }
 0x263   : > { %2001 = vmatpush1.bf16.msra.mxu1 %v3868_v27  ;;  %1941 = vmatprep.mubr.bf16.mxu1 %v5388_v63  ;;  %v2174_v27 = vunpack.c.0.s8 %v2173_v38 }
 0x264   : > { %2002 = vmatprep.subr.bf16.mxu1 %v3877_v29 }
 0x265   : > { %v5504_v29 = vsub.s32 %v2174_v27, %v5297_v56  ;;  %v4358_v27 = vld [vmem:[#allocation9 + $0x150] ss:$8 sps:$4 sm:$0xff]  }
 0x267   : > { %2003 = vmatpush1.bf16.msra.mxu1 %v3876_v55 }
 0x268   : > { %2004 = vmatprep.subr.bf16.mxu1 %v3885_v30 }
 0x26a   : > { %1942 = vmatmul.mubr.bf16.gmra.mrb[76].mxu1 %v5403_v40 }
 0x26b   : > { %2005 = vmatpush1.bf16.msra.mxu1 %v3884_v58  ;;  %1951 = vmatprep.mubr.bf16.mxu1 %v5406_v35 }
 0x26c   : > { %2006 = vmatprep.subr.bf16.mxu1 %v3893_v26 }
 0x26f   : > { %2007 = vmatpush1.bf16.msra.mxu1 %v3892_v47  ;;  %v4737_v47 = vmov 0  }
 0x270   : > { %2008 = vmatprep.subr.bf16.mxu1 %v3901_v0 }
 0x272   : > { %1952 = vmatmul.mubr.bf16.gmra.mrb[80].mxu1 %v5421_v18 }
 0x273   : > { %2009 = vmatpush1.bf16.msra.mxu1 %v3900_v42  ;;  %1961 = vmatprep.mubr.bf16.mxu1 %v5424_v20 }
 0x274   : > { %2010 = vmatprep.subr.bf16.mxu1 %v3909_v23  ;;  %v4348_v23 = vld [vmem:[#allocation9 + $0x114] ss:$8 sps:$4 sm:$0xff]  }
 0x277   : > { %2011 = vmatpush1.bf16.msra.mxu1 %v3908_v37 }
 0x278   : > { %2012 = vmatprep.subr.bf16.mxu1 %v3917_v6 }
 0x27a   : > { %1962 = vmatmul.mubr.bf16.gmra.mrb[84].mxu1 %v5439_v54 }
 0x27b   : > { %2013 = vmatpush1.bf16.msra.mxu1 %v3916_v34  ;;  %1971 = vmatprep.mubr.bf16.mxu1 %v5442_v13 }
 0x27c   : > { %2014 = vmatprep.subr.bf16.mxu1 %v3925_v12 }
 0x27f   : > { %2015 = vmatpush1.bf16.msra.mxu1 %v3924_v5 }
 0x280   : > { %2016 = vmatprep.subr.bf16.mxu1 %v3933_v1  ;;  %v4354_v1 = vld [vmem:[#allocation9 + $0x134] ss:$8 sps:$4 sm:$0xff]  }
 0x282   : > { %1972 = vmatmul.mubr.bf16.gmra.mrb[88].mxu1 %v5455_v10 }
 0x283   : > { %2017 = vmatpush1.bf16.msra.mxu1 %v3932_v45  ;;  %1981 = vmatprep.mubr.bf16.mxu1 %v5458_v33 }
 0x284   : > { %2018 = vmatprep.subr.bf16.mxu1 %v3941_v32  ;;  %v4352_v32 = vld [vmem:[#allocation9 + $0x130] ss:$8 sps:$4 sm:$0xff]  }
 0x287   : > { %2019 = vmatpush1.bf16.msra.mxu1 %v3940_v49 }
 0x288   : > { %2020 = vmatprep.subr.bf16.mxu1 %v3949_v25 }
 0x28a   : > { %1982 = vmatmul.mubr.bf16.gmra.mrb[92].mxu1 %v5465_v17 }
 0x28b   : > { %2021 = vmatpush1.bf16.msra.mxu1 %v3948_v48  ;;  %2024 = vmatprep.mubr.bf16.mxu1 %v5336_v43  ;;  %v2178_v43 = vrot.slane %v5509_v52, %v5504_v29 }
 0x28c   : > { %2022 = vmatprep.subr.bf16.mxu1 %v3957_v8  ;;  %v4360_v8 = vld [vmem:[#allocation9 + $0x154] ss:$8 sps:$4 sm:$0xff]  }
 0x28d   : > { %v2186_v7 = vcombine.high %v2178_v43, %v2178_v43 }
 0x28f   : > { %2023 = vmatpush1.bf16.msra.mxu1 %v3956_v24 }
 0x292   : > { %2025 = vmatmul.mubr.bf16.vlgmr.msra.gmra.mrb[96].mxu1 %v5344_v61  ;;  %v5516_v61 = vrot.slane %v2178_v43, %v5504_v29  ;;  %v4363_v43 = vld [vmem:[#allocation9 + $0x164] ss:$8 sps:$4 sm:$0xff]  }
 0x293   : > { %2034 = vmatprep.mubr.bf16.mxu1 %v5357_v62  ;;  %v5519_v62 = vrot.slane %v2186_v7, %v5504_v29 }
 0x294   : > { %v2221_v56 = vpack.i.b16 %v5516_v61, %v5516_v61 }
 0x295   : > { %v2228_v55 = vpack.i.b16 %v5519_v62, %v5519_v62 }
 0x297   : > { %v5531_v2 = vrot.slane %v2228_v55, %v5301_v31 }
 0x29a   : > { %2035 = vmatmul.mubr.bf16.gmra.mrb[100].mxu1 %v5367_v51 }
 0x29b   : > { %2044 = vmatprep.mubr.bf16.mxu1 %v5370_v59  ;;  %v5528_v59 = vrot.slane %v2221_v56, %v5301_v31 }
 0x2a2   : > { %2045 = vmatmul.mubr.bf16.gmra.mrb[104].mxu1 %v5385_v39 }
 0x2a3   : > { %2054 = vmatprep.mubr.bf16.mxu1 %v5388_v63 }
 0x2a5   : > { %v1687_v51 = vpop.f32.mrb[0].mxu1 }
 0x2a6   : > { %v1689_v30 = vpop.f32.mrb[1].mxu1 }
 0x2a7   : > { %v1691_v9 = vpop.f32.mrb[2].mxu1 }
 0x2a8   : > { %v2105_v58 = vpack.c.bf16 %v1691_v9, %v1687_v51  ;;  %v1693_v26 = vpop.f32.mrb[3].mxu1  ;;  %v4361_v51 = vld [vmem:[#allocation9 + $0x160] ss:$8 sps:$4 sm:$0xff]  }
 0x2a9   : > { %v2106_v39 = vpack.c.bf16 %v1693_v26, %v1689_v30 }
 0x2aa   : > { %v2276_v60 = vadd.bf16 %v5528_v59, %v2105_v58  ;;  %2055 = vmatmul.mubr.bf16.gmra.mrb[108].mxu1 %v5403_v40  ;;  %v4346_v40 = vld [vmem:[#allocation9 + $0x110] ss:$8 sps:$4 sm:$0xff]   ;;  %v4366_v58 = vld [vmem:[#allocation9 + $0x174] ss:$8 sps:$4 sm:$0xff]  }
 0x2ab   : > { %2064 = vmatprep.mubr.bf16.mxu1 %v5406_v35  ;;  %v2277_v63 = vadd.bf16 %v5531_v2, %v2106_v39 }
 0x2ac   : > { %v2340_v42 = vmax.bf16 %v4737_v47, %v2276_v60 }
 0x2ad   : > { %v1697_v50 = vpop.f32.mrb[4].mxu1  ;;  %v2341_v0 = vmax.bf16 %v4737_v47, %v2277_v63  ;;  %v4364_v63 = vld [vmem:[#allocation9 + $0x170] ss:$8 sps:$4 sm:$0xff]  }
 0x2ae   : > { %v1699_v16 = vpop.f32.mrb[5].mxu1 }
 0x2af   : > { %v1701_v28 = vpop.f32.mrb[6].mxu1  ;;  %3204 = vmatprep.mubr.bf16.mxu0 %v2341_v0 }
 0x2b0   : > { %v2113_v4 = vpack.c.bf16 %v1701_v28, %v1697_v50  ;;  %v1703_v37 = vpop.f32.mrb[7].mxu1  ;;  %3205 = vmatmul.mubr.bf16.vlgmr.msra.gmra.mrb[0].mxu0 %v2340_v42  ;;  %v4369_v50 = vld [vmem:[#allocation9 + $0x184] ss:$8 sps:$4 sm:$0xff]   ;;  %v4367_v42 = vld [vmem:[#allocation9 + $0x180] ss:$8 sps:$4 sm:$0xff]  }
 0x2b1   : > { %v2114_v6 = vpack.c.bf16 %v1703_v37, %v1699_v16  ;;  %3286 = vmatpush1.bf16.msra.mxu0 %v4343_v46 }
 0x2b2   : > { %v2284_v35 = vadd.bf16 %v5528_v59, %v2113_v4  ;;  %2065 = vmatmul.mubr.bf16.gmra.mrb[112].mxu1 %v5421_v18  ;;  %3287 = vmatprep.subr.bf16.mxu0 %v4348_v23  ;;  %v4372_v4 = vld [vmem:[#allocation9 + $0x194] ss:$8 sps:$4 sm:$0xff]  }
 0x2b3   : > { %v2285_v36 = vadd.bf16 %v5531_v2, %v2114_v6  ;;  %2074 = vmatprep.mubr.bf16.mxu1 %v5424_v20 }
 0x2b4   : > { %v2348_v5 = vmax.bf16 %v4737_v47, %v2284_v35  ;;  %v4370_v35 = vld [vmem:[#allocation9 + $0x190] ss:$8 sps:$4 sm:$0xff]  }
 0x2b5   : > { %3288 = vmatpush1.bf16.msra.mxu0 %v4346_v40  ;;  %v1707_v34 = vpop.f32.mrb[8].mxu1  ;;  %v2349_v12 = vmax.bf16 %v4737_v47, %v2285_v36  ;;  %v4375_v36 = vld [vmem:[#allocation9 + $0x1a4] ss:$8 sps:$4 sm:$0xff]  }
 0x2b6   : > { %v1709_v14 = vpop.f32.mrb[9].mxu1  ;;  %3289 = vmatprep.subr.bf16.mxu0 %v4351_v22 }
 0x2b7   : > { %v1711_v53 = vpop.f32.mrb[10].mxu1  ;;  %3214 = vmatprep.mubr.bf16.mxu0 %v2349_v12 }
 0x2b8   : > { %v2121_v19 = vpack.c.bf16 %v1711_v53, %v1707_v34  ;;  %v1713_v18 = vpop.f32.mrb[11].mxu1  ;;  %3215 = vmatmul.mubr.bf16.gmra.mrb[4].mxu0 %v2348_v5  ;;  %v4378_v53 = vld [vmem:[#allocation9 + $0x1b4] ss:$8 sps:$4 sm:$0xff]  }
 0x2b9   : > { %v2122_v45 = vpack.c.bf16 %v1713_v18, %v1709_v14  ;;  %3290 = vmatpush1.bf16.msra.mxu0 %v4349_v41  ;;  %v4373_v14 = vld [vmem:[#allocation9 + $0x1a0] ss:$8 sps:$4 sm:$0xff]  }
 0x2ba   : > { %v2292_v20 = vadd.bf16 %v5528_v59, %v2121_v19  ;;  %2075 = vmatmul.mubr.bf16.gmra.mrb[116].mxu1 %v5439_v54  ;;  %3291 = vmatprep.subr.bf16.mxu0 %v4354_v1 }
 0x2bb   : > { %v2293_v44 = vadd.bf16 %v5531_v2, %v2122_v45  ;;  %2084 = vmatprep.mubr.bf16.mxu1 %v5442_v13 }
 0x2bc   : > { %v2356_v48 = vmax.bf16 %v4737_v47, %v2292_v20  ;;  %v4376_v20 = vld [vmem:[#allocation9 + $0x1b0] ss:$8 sps:$4 sm:$0xff]  }
 0x2bd   : > { %3292 = vmatpush1.bf16.msra.mxu0 %v4352_v32  ;;  %v1717_v49 = vpop.f32.mrb[12].mxu1  ;;  %v2357_v25 = vmax.bf16 %v4737_v47, %v2293_v44  ;;  %v4381_v44 = vld [vmem:[#allocation9 + $0x1c4] ss:$8 sps:$4 sm:$0xff]  }
 0x2be   : > { %v1719_v3 = vpop.f32.mrb[13].mxu1  ;;  %3293 = vmatprep.subr.bf16.mxu0 %v4357_v15 }
 0x2bf   : > { %v1721_v24 = vpop.f32.mrb[14].mxu1  ;;  %3224 = vmatprep.mubr.bf16.mxu0 %v2357_v25 }
 0x2c0   : > { %v2129_v57 = vpack.c.bf16 %v1721_v24, %v1717_v49  ;;  %v1723_v54 = vpop.f32.mrb[15].mxu1  ;;  %3225 = vmatmul.mubr.bf16.gmra.mrb[8].mxu0 %v2356_v48  ;;  %v4384_v24 = vld [vmem:[#allocation9 + $0x1d4] ss:$8 sps:$4 sm:$0xff]  }
 0x2c1   : > { %v2130_v38 = vpack.c.bf16 %v1723_v54, %v1719_v3  ;;  %3294 = vmatpush1.bf16.msra.mxu0 %v4355_v11  ;;  %v4379_v3 = vld [vmem:[#allocation9 + $0x1c0] ss:$8 sps:$4 sm:$0xff]  }
 0x2c2   : > { %v2300_v13 = vadd.bf16 %v5528_v59, %v2129_v57  ;;  %2085 = vmatmul.mubr.bf16.gmra.mrb[120].mxu1 %v5455_v10  ;;  %3295 = vmatprep.subr.bf16.mxu0 %v4360_v8  ;;  %v2216_v57 = vcombine.high %v5516_v61, %v5516_v61 }
 0x2c3   : > { %v2301_v7 = vadd.bf16 %v5531_v2, %v2130_v38  ;;  %2094 = vmatprep.mubr.bf16.mxu1 %v5458_v33  ;;  %v2218_v38 = vcombine.high %v5519_v62, %v5519_v62 }
 0x2c4   : > { %v2364_v9 = vmax.bf16 %v4737_v47, %v2300_v13 }
 0x2c5   : > { %3296 = vmatpush1.bf16.msra.mxu0 %v4358_v27  ;;  %v1727_v56 = vpop.f32.mrb[16].mxu1  ;;  %v2365_v55 = vmax.bf16 %v4737_v47, %v2301_v7  ;;  %v4382_v7 = vld [vmem:[#allocation9 + $0x1d0] ss:$8 sps:$4 sm:$0xff]  }
 0x2c6   : > { %v1729_v30 = vpop.f32.mrb[17].mxu1  ;;  %3297 = vmatprep.subr.bf16.mxu0 %v4363_v43 }
 0x2c7   : > { %v1731_v26 = vpop.f32.mrb[18].mxu1  ;;  %3234 = vmatprep.mubr.bf16.mxu0 %v2365_v55  ;;  %v2235_v55 = vpack.i.b16 %v2216_v57, %v2216_v57 }
 0x2c8   : > { %v2137_v39 = vpack.c.bf16 %v1731_v26, %v1727_v56  ;;  %v1733_v10 = vpop.f32.mrb[19].mxu1  ;;  %3235 = vmatmul.mubr.bf16.gmra.mrb[12].mxu0 %v2364_v9  ;;  %v2242_v9 = vpack.i.b16 %v2218_v38, %v2218_v38  ;;  %v4385_v26 = vld [vmem:[#allocation9 + $0x1e0] ss:$8 sps:$4 sm:$0xff]   ;;  %v4408_v38 = vld [vmem:[#allocation9 + $0x254] ss:$8 sps:$4 sm:$0xff]  }
 0x2c9   : > { %v2138_v60 = vpack.c.bf16 %v1733_v10, %v1729_v30  ;;  %3298 = vmatpush1.bf16.msra.mxu0 %v4361_v51  ;;  %v4387_v51 = vld [vmem:[#allocation9 + $0x1e4] ss:$8 sps:$4 sm:$0xff]  }
 0x2ca   : > { %v2308_v33 = vadd.bf16 %v5528_v59, %v2137_v39  ;;  %2095 = vmatmul.mubr.bf16.gmra.mrb[124].mxu1 %v5465_v17  ;;  %3299 = vmatprep.subr.bf16.mxu0 %v4366_v58  ;;  %v5578_v39 = vrot.slane %v2235_v55, %v5301_v31 }
 0x2cb   : > { %v2309_v0 = vadd.bf16 %v5531_v2, %v2138_v60  ;;  %v4390_v60 = vld [vmem:[#allocation9 + $0x1f4] ss:$8 sps:$4 sm:$0xff]  }
 0x2cc   : > { %v2372_v28 = vmax.bf16 %v4737_v47, %v2308_v33 }
 0x2cd   : > { %3300 = vmatpush1.bf16.msra.mxu0 %v4364_v63  ;;  %v1737_v46 = vpop.f32.mrb[20].mxu1  ;;  %v2373_v16 = vmax.bf16 %v4737_v47, %v2309_v0  ;;  %v5582_v63 = vrot.slane %v2242_v9, %v5301_v31  ;;  %v4388_v0 = vld [vmem:[#allocation9 + $0x1f0] ss:$8 sps:$4 sm:$0xff]  }
 0x2ce   : > { %v1739_v23 = vpop.f32.mrb[21].mxu1  ;;  %3301 = vmatprep.subr.bf16.mxu0 %v4369_v50 }
 0x2cf   : > { %v1741_v37 = vpop.f32.mrb[22].mxu1  ;;  %3244 = vmatprep.mubr.bf16.mxu0 %v2373_v16  ;;  %v4393_v16 = vld [vmem:[#allocation9 + $0x204] ss:$8 sps:$4 sm:$0xff]  }
 0x2d0   : > { %v2145_v6 = vpack.c.bf16 %v1741_v37, %v1737_v46  ;;  %v1743_v40 = vpop.f32.mrb[23].mxu1  ;;  %3245 = vmatmul.mubr.bf16.gmra.mrb[16].mxu0 %v2372_v28 }
 0x2d1   : > { %v2146_v17 = vpack.c.bf16 %v1743_v40, %v1739_v23  ;;  %3302 = vmatpush1.bf16.msra.mxu0 %v4367_v42  ;;  %v4396_v40 = vld [vmem:[#allocation9 + $0x214] ss:$8 sps:$4 sm:$0xff]  }
 0x2d2   : > { %v2316_v22 = vadd.bf16 %v5528_v59, %v2145_v6  ;;  %3303 = vmatprep.subr.bf16.mxu0 %v4372_v4  ;;  %v4391_v4 = vld [vmem:[#allocation9 + $0x200] ss:$8 sps:$4 sm:$0xff]  }
 0x2d3   : > { %v2317_v34 = vadd.bf16 %v5531_v2, %v2146_v17 }
 0x2d4   : > { %v2380_v1 = vmax.bf16 %v4737_v47, %v2316_v22 }
 0x2d5   : > { %3304 = vmatpush1.bf16.msra.mxu0 %v4370_v35  ;;  %v1747_v12 = vpop.f32.mrb[24].mxu1  ;;  %v2381_v41 = vmax.bf16 %v4737_v47, %v2317_v34  ;;  %v4394_v34 = vld [vmem:[#allocation9 + $0x210] ss:$8 sps:$4 sm:$0xff]  }
 0x2d6   : > { %v1749_v5 = vpop.f32.mrb[25].mxu1  ;;  %3305 = vmatprep.subr.bf16.mxu0 %v4375_v36 }
 0x2d7   : > { %v1751_v19 = vpop.f32.mrb[26].mxu1  ;;  %3254 = vmatprep.mubr.bf16.mxu0 %v2381_v41  ;;  %v4399_v41 = vld [vmem:[#allocation9 + $0x224] ss:$8 sps:$4 sm:$0xff]  }
 0x2d8   : > { %v2153_v18 = vpack.c.bf16 %v1751_v19, %v1747_v12  ;;  %v1753_v45 = vpop.f32.mrb[27].mxu1  ;;  %3255 = vmatmul.mubr.bf16.gmra.mrb[20].mxu0 %v2380_v1 }
 0x2d9   : > { %v2154_v32 = vpack.c.bf16 %v1753_v45, %v1749_v5  ;;  %3306 = vmatpush1.bf16.msra.mxu0 %v4373_v14  ;;  %v4402_v45 = vld [vmem:[#allocation9 + $0x234] ss:$8 sps:$4 sm:$0xff]  }
 0x2da   : > { %v2324_v15 = vadd.bf16 %v5528_v59, %v2153_v18  ;;  %3307 = vmatprep.subr.bf16.mxu0 %v4378_v53  ;;  %v4397_v53 = vld [vmem:[#allocation9 + $0x220] ss:$8 sps:$4 sm:$0xff]  }
 0x2db   : > { %v2325_v49 = vadd.bf16 %v5531_v2, %v2154_v32 }
 0x2dc   : > { %v2388_v8 = vmax.bf16 %v4737_v47, %v2324_v15 }
 0x2dd   : > { %3308 = vmatpush1.bf16.msra.mxu0 %v4376_v20  ;;  %v1757_v25 = vpop.f32.mrb[28].mxu1  ;;  %v2389_v11 = vmax.bf16 %v4737_v47, %v2325_v49  ;;  %v4400_v49 = vld [vmem:[#allocation9 + $0x230] ss:$8 sps:$4 sm:$0xff]  }
 0x2de   : > { %v1759_v48 = vpop.f32.mrb[29].mxu1  ;;  %3309 = vmatprep.subr.bf16.mxu0 %v4381_v44 }
 0x2df   : > { %v1761_v54 = vpop.f32.mrb[30].mxu1  ;;  %3264 = vmatprep.mubr.bf16.mxu0 %v2389_v11  ;;  %v4405_v11 = vld [vmem:[#allocation9 + $0x244] ss:$8 sps:$4 sm:$0xff]  }
 0x2e0   : > { %v2161_v27 = vpack.c.bf16 %v1761_v54, %v1757_v25  ;;  %v1763_v13 = vpop.f32.mrb[31].mxu1  ;;  %3265 = vmatmul.mubr.bf16.gmra.mrb[24].mxu0 %v2388_v8 }
 0x2e1   : > { %v2162_v43 = vpack.c.bf16 %v1763_v13, %v1759_v48  ;;  %3310 = vmatpush1.bf16.msra.mxu0 %v4379_v3 }
 0x2e2   : > { %v2332_v56 = vadd.bf16 %v5528_v59, %v2161_v27  ;;  %3311 = vmatprep.subr.bf16.mxu0 %v4384_v24  ;;  %v4403_v24 = vld [vmem:[#allocation9 + $0x240] ss:$8 sps:$4 sm:$0xff]  }
 0x2e3   : > { %v2333_v30 = vadd.bf16 %v5531_v2, %v2162_v43 }
 0x2e4   : > { %v2396_v10 = vmax.bf16 %v4737_v47, %v2332_v56  ;;  %v4406_v56 = vld [vmem:[#allocation9 + $0x250] ss:$8 sps:$4 sm:$0xff]  }
 0x2e5   : > { %3312 = vmatpush1.bf16.msra.mxu0 %v4382_v7  ;;  %v1800_v61 = vpop.f32.mrb[32].mxu1  ;;  %v2397_v58 = vmax.bf16 %v4737_v47, %v2333_v30 }
 0x2e6   : > { %v1802_v62 = vpop.f32.mrb[33].mxu1  ;;  %3313 = vmatprep.subr.bf16.mxu0 %v4387_v51  ;;  %v4411_v51 = vld [vmem:[#allocation9 + $0x264] ss:$8 sps:$4 sm:$0xff]  }
 0x2e7   : > { %v1804_v59 = vpop.f32.mrb[34].mxu1  ;;  %3274 = vmatprep.mubr.bf16.mxu0 %v2397_v58  ;;  %v4409_v58 = vld [vmem:[#allocation9 + $0x260] ss:$8 sps:$4 sm:$0xff]  }
 0x2e8   : > { %v2107_v2 = vpack.c.bf16 %v1804_v59, %v1800_v61  ;;  %v1806_v33 = vpop.f32.mrb[35].mxu1  ;;  %3275 = vmatmul.mubr.bf16.gmra.mrb[28].mxu0 %v2396_v10  ;;  %v4414_v10 = vld [vmem:[#allocation9 + $0x274] ss:$8 sps:$4 sm:$0xff]  }
 0x2e9   : > { %v2108_v50 = vpack.c.bf16 %v1806_v33, %v1802_v62  ;;  %3314 = vmatpush1.bf16.msra.mxu0 %v4385_v26 }
 0x2ea   : > { %v2278_v46 = vadd.bf16 %v5578_v39, %v2107_v2  ;;  %3315 = vmatprep.subr.bf16.mxu0 %v4390_v60 }
 0x2eb   : > { %v2279_v42 = vadd.bf16 %v5582_v63, %v2108_v50  ;;  %v4412_v50 = vld [vmem:[#allocation9 + $0x270] ss:$8 sps:$4 sm:$0xff]  }
 0x2ec   : > { %v2342_v37 = vmax.bf16 %v4737_v47, %v2278_v46  ;;  %v4417_v46 = vld [vmem:[#allocation9 + $0x284] ss:$8 sps:$4 sm:$0xff]  }
 0x2ed   : > { %3316 = vmatpush1.bf16.msra.mxu0 %v4388_v0  ;;  %v1810_v23 = vpop.f32.mrb[36].mxu1  ;;  %v2343_v28 = vmax.bf16 %v4737_v47, %v2279_v42 }
 0x2ee   : > { %v1812_v6 = vpop.f32.mrb[37].mxu1  ;;  %3398 = vmatprep.subr.bf16.mxu0 %v4393_v16 }
 0x2ef   : > { %v1814_v17 = vpop.f32.mrb[38].mxu1  ;;  %3317 = vmatprep.mubr.bf16.mxu0 %v2343_v28  ;;  %v4415_v28 = vld [vmem:[#allocation9 + $0x280] ss:$8 sps:$4 sm:$0xff]  }
 0x2f0   : > { %v2115_v35 = vpack.c.bf16 %v1814_v17, %v1810_v23  ;;  %v1816_v22 = vpop.f32.mrb[39].mxu1  ;;  %3318 = vmatmul.mubr.bf16.vlgmr.msra.gmra.mrb[0].mxu0 %v2342_v37 }
 0x2f1   : > { %v2116_v36 = vpack.c.bf16 %v1816_v22, %v1812_v6  ;;  %3399 = vmatpush1.bf16.msra.mxu0 %v4391_v4  ;;  %v4420_v6 = vld [vmem:[#allocation9 + $0x294] ss:$8 sps:$4 sm:$0xff]  }
 0x2f2   : > { %v2286_v12 = vadd.bf16 %v5578_v39, %v2115_v35  ;;  %3400 = vmatprep.subr.bf16.mxu0 %v4396_v40 }
 0x2f3   : > { %v2287_v14 = vadd.bf16 %v5582_v63, %v2116_v36  ;;  %v4418_v36 = vld [vmem:[#allocation9 + $0x290] ss:$8 sps:$4 sm:$0xff]  }
 0x2f4   : > { %v2350_v18 = vmax.bf16 %v4737_v47, %v2286_v12  ;;  %v4423_v12 = vld [vmem:[#allocation9 + $0x2a4] ss:$8 sps:$4 sm:$0xff]  }
 0x2f5   : > { %3401 = vmatpush1.bf16.msra.mxu0 %v4394_v34  ;;  %v1820_v5 = vpop.f32.mrb[40].mxu1  ;;  %v2351_v1 = vmax.bf16 %v4737_v47, %v2287_v14  ;;  %v2171_v14 = vcombine.high %v5509_v52, %v5509_v52  ;;  %v4424_v52 = vld [vmem:[#allocation9 + $0x2b0] ss:$8 sps:$4 sm:$0xff]  }
 0x2f6   : > { %v1822_v19 = vpop.f32.mrb[41].mxu1  ;;  %3402 = vmatprep.subr.bf16.mxu0 %v4399_v41 }
 0x2f7   : > { %v1824_v32 = vpop.f32.mrb[42].mxu1  ;;  %3327 = vmatprep.mubr.bf16.mxu0 %v2351_v1 }
 0x2f8   : > { %v2123_v20 = vpack.c.bf16 %v1824_v32, %v1820_v5  ;;  %v1826_v15 = vpop.f32.mrb[43].mxu1  ;;  %3328 = vmatmul.mubr.bf16.gmra.mrb[4].mxu0 %v2350_v18 }
 0x2f9   : > { %v2124_v44 = vpack.c.bf16 %v1826_v15, %v1822_v19  ;;  %3403 = vmatpush1.bf16.msra.mxu0 %v4397_v53  ;;  %v4421_v53 = vld [vmem:[#allocation9 + $0x2a0] ss:$8 sps:$4 sm:$0xff]  }
 0x2fa   : > { %v2294_v25 = vadd.bf16 %v5578_v39, %v2123_v20  ;;  %3404 = vmatprep.subr.bf16.mxu0 %v4402_v45  ;;  %v4426_v45 = vld [vmem:[#allocation9 + $0x2b4] ss:$8 sps:$4 sm:$0xff]   ;;  %v2185_v20 = vrot.slane %v2171_v14, %v5504_v29  ;;  %v4443_v14 = vld [vmem:[#allocation9 + $0x310] ss:$8 sps:$4 sm:$0xff]  }
 0x2fb   : > { %v2295_v3 = vadd.bf16 %v5582_v63, %v2124_v44 }
 0x2fc   : > { %v2358_v54 = vmax.bf16 %v4737_v47, %v2294_v25 }
 0x2fd   : > { %3405 = vmatpush1.bf16.msra.mxu0 %v4400_v49  ;;  %v1830_v48 = vpop.f32.mrb[44].mxu1  ;;  %v2359_v8 = vmax.bf16 %v4737_v47, %v2295_v3 }
 0x2fe   : > { %v1832_v57 = vpop.f32.mrb[45].mxu1  ;;  %3406 = vmatprep.subr.bf16.mxu0 %v4405_v11  ;;  %v4429_v11 = vld [vmem:[#allocation9 + $0x2c4] ss:$8 sps:$4 sm:$0xff]  }
 0x2ff   : > { %v1834_v27 = vpop.f32.mrb[46].mxu1  ;;  %3337 = vmatprep.mubr.bf16.mxu0 %v2359_v8 }
 0x300   : > { %v2131_v13 = vpack.c.bf16 %v1834_v27, %v1830_v48  ;;  %v1836_v43 = vpop.f32.mrb[47].mxu1  ;;  %3338 = vmatmul.mubr.bf16.gmra.mrb[8].mxu0 %v2358_v54  ;;  %v2187_v48 = vcombine.high %v2185_v20, %v2185_v20  ;;  %v4432_v27 = vld [vmem:[#allocation9 + $0x2d4] ss:$8 sps:$4 sm:$0xff]  }
 0x301   : > { %v2132_v7 = vpack.c.bf16 %v1836_v43, %v1832_v57  ;;  %3407 = vmatpush1.bf16.msra.mxu0 %v4403_v24  ;;  %v4427_v57 = vld [vmem:[#allocation9 + $0x2c0] ss:$8 sps:$4 sm:$0xff]  }
 0x302   : > { %v2302_v55 = vadd.bf16 %v5578_v39, %v2131_v13  ;;  %3408 = vmatprep.subr.bf16.mxu0 %v4408_v38  ;;  %v5616_v13 = vrot.slane %v2185_v20, %v5504_v29 }
 0x303   : > { %v2303_v30 = vadd.bf16 %v5582_v63, %v2132_v7  ;;  %v5619_v7 = vrot.slane %v2187_v48, %v5504_v29  ;;  %v4454_v48 = vld [vmem:[#allocation9 + $0x344] ss:$8 sps:$4 sm:$0xff]  }
 0x304   : > { %v2366_v62 = vmax.bf16 %v4737_v47, %v2302_v55 }
 0x305   : > { %3409 = vmatpush1.bf16.msra.mxu0 %v4406_v56  ;;  %v1840_v9 = vpop.f32.mrb[48].mxu1  ;;  %v2367_v61 = vmax.bf16 %v4737_v47, %v2303_v30  ;;  %v4430_v30 = vld [vmem:[#allocation9 + $0x2d0] ss:$8 sps:$4 sm:$0xff]  }
 0x306   : > { %v1842_v26 = vpop.f32.mrb[49].mxu1  ;;  %3410 = vmatprep.subr.bf16.mxu0 %v4411_v51 }
 0x307   : > { %v1844_v60 = vpop.f32.mrb[50].mxu1  ;;  %3347 = vmatprep.mubr.bf16.mxu0 %v2367_v61  ;;  %v2249_v61 = vpack.i.b16 %v5616_v13, %v5616_v13 }
 0x308   : > { %v2139_v59 = vpack.c.bf16 %v1844_v60, %v1840_v9  ;;  %v1846_v2 = vpop.f32.mrb[51].mxu1  ;;  %3348 = vmatmul.mubr.bf16.gmra.mrb[12].mxu0 %v2366_v62  ;;  %v2256_v62 = vpack.i.b16 %v5619_v7, %v5619_v7  ;;  %v4434_v60 = vld [vmem:[#allocation9 + $0x2e0] ss:$8 sps:$4 sm:$0xff]  }
 0x309   : > { %v2140_v33 = vpack.c.bf16 %v1846_v2, %v1842_v26  ;;  %3411 = vmatpush1.bf16.msra.mxu0 %v4409_v58  ;;  %v4436_v58 = vld [vmem:[#allocation9 + $0x2e4] ss:$8 sps:$4 sm:$0xff]   ;;  %v5629_v2 = vrot.slane %v2249_v61, %v5301_v31 }
 0x30a   : > { %v2310_v0 = vadd.bf16 %v5578_v39, %v2139_v59  ;;  %3412 = vmatprep.subr.bf16.mxu0 %v4414_v10 }
 0x30b   : > { %v2311_v16 = vadd.bf16 %v5582_v63, %v2140_v33  ;;  %v4439_v33 = vld [vmem:[#allocation9 + $0x2f4] ss:$8 sps:$4 sm:$0xff]  }
 0x30c   : > { %v2374_v37 = vmax.bf16 %v4737_v47, %v2310_v0 }
 0x30d   : > { %3413 = vmatpush1.bf16.msra.mxu0 %v4412_v50  ;;  %v1850_v42 = vpop.f32.mrb[52].mxu1  ;;  %v2375_v23 = vmax.bf16 %v4737_v47, %v2311_v16 }
 0x30e   : > { %v1852_v4 = vpop.f32.mrb[53].mxu1  ;;  %3414 = vmatprep.subr.bf16.mxu0 %v4417_v46 }
 0x30f   : > { %v1854_v40 = vpop.f32.mrb[54].mxu1  ;;  %3357 = vmatprep.mubr.bf16.mxu0 %v2375_v23 }
 0x310   : > { %v2147_v17 = vpack.c.bf16 %v1854_v40, %v1850_v42  ;;  %v1856_v35 = vpop.f32.mrb[55].mxu1  ;;  %3358 = vmatmul.mubr.bf16.gmra.mrb[16].mxu0 %v2374_v37  ;;  %v4437_v42 = vld [vmem:[#allocation9 + $0x2f0] ss:$8 sps:$4 sm:$0xff]   ;;  %v4440_v40 = vld [vmem:[#allocation9 + $0x300] ss:$8 sps:$4 sm:$0xff]  }
 0x311   : > { %v2148_v22 = vpack.c.bf16 %v1856_v35, %v1852_v4  ;;  %3415 = vmatpush1.bf16.msra.mxu0 %v4415_v28  ;;  %v4442_v28 = vld [vmem:[#allocation9 + $0x304] ss:$8 sps:$4 sm:$0xff]  }
 0x312   : > { %v2318_v34 = vadd.bf16 %v5578_v39, %v2147_v17  ;;  %3416 = vmatprep.subr.bf16.mxu0 %v4420_v6 }
 0x313   : > { %v2319_v41 = vadd.bf16 %v5582_v63, %v2148_v22  ;;  %v4445_v22 = vld [vmem:[#allocation9 + $0x314] ss:$8 sps:$4 sm:$0xff]  }
 0x314   : > { %v2382_v18 = vmax.bf16 %v4737_v47, %v2318_v34 }
 0x315   : > { %3417 = vmatpush1.bf16.msra.mxu0 %v4418_v36  ;;  %v1860_v5 = vpop.f32.mrb[56].mxu1  ;;  %v2383_v1 = vmax.bf16 %v4737_v47, %v2319_v41 }
 0x316   : > { %v1862_v19 = vpop.f32.mrb[57].mxu1  ;;  %3418 = vmatprep.subr.bf16.mxu0 %v4423_v12 }
 0x317   : > { %v1864_v32 = vpop.f32.mrb[58].mxu1  ;;  %3367 = vmatprep.mubr.bf16.mxu0 %v2383_v1  ;;  %v4448_v1 = vld [vmem:[#allocation9 + $0x324] ss:$8 sps:$4 sm:$0xff]  }
 0x318   : > { %v2155_v15 = vpack.c.bf16 %v1864_v32, %v1860_v5  ;;  %v1866_v44 = vpop.f32.mrb[59].mxu1  ;;  %3368 = vmatmul.mubr.bf16.gmra.mrb[20].mxu0 %v2382_v18 }
 0x319   : > { %v2156_v49 = vpack.c.bf16 %v1866_v44, %v1862_v19  ;;  %3419 = vmatpush1.bf16.msra.mxu0 %v4421_v53 }
 0x31a   : > { %v2326_v25 = vadd.bf16 %v5578_v39, %v2155_v15  ;;  %3420 = vmatprep.subr.bf16.mxu0 %v4426_v45  ;;  %v4446_v45 = vld [vmem:[#allocation9 + $0x320] ss:$8 sps:$4 sm:$0xff]   ;;  %v4451_v15 = vld [vmem:[#allocation9 + $0x334] ss:$8 sps:$4 sm:$0xff]  }
 0x31b   : > { %v2327_v3 = vadd.bf16 %v5582_v63, %v2156_v49 }
 0x31c   : > { %v2390_v38 = vmax.bf16 %v4737_v47, %v2326_v25 }
 0x31d   : > { %3421 = vmatpush1.bf16.msra.mxu0 %v4424_v52  ;;  %v1870_v8 = vpop.f32.mrb[60].mxu1  ;;  %v2391_v24 = vmax.bf16 %v4737_v47, %v2327_v3 }
 0x31e   : > { %v1872_v54 = vpop.f32.mrb[61].mxu1  ;;  %3422 = vmatprep.subr.bf16.mxu0 %v4429_v11  ;;  %v4449_v11 = vld [vmem:[#allocation9 + $0x330] ss:$8 sps:$4 sm:$0xff]  }
 0x31f   : > { %v1874_v43 = vpop.f32.mrb[62].mxu1  ;;  %3377 = vmatprep.mubr.bf16.mxu0 %v2391_v24 }
 0x320   : > { %v2163_v56 = vpack.c.bf16 %v1874_v43, %v1870_v8  ;;  %v1876_v55 = vpop.f32.mrb[63].mxu1  ;;  %3378 = vmatmul.mubr.bf16.gmra.mrb[24].mxu0 %v2390_v38  ;;  %v4457_v43 = vld [vmem:[#allocation9 + $0x354] ss:$8 sps:$4 sm:$0xff]  }
 0x321   : > { %v2164_v51 = vpack.c.bf16 %v1876_v55, %v1872_v54  ;;  %3423 = vmatpush1.bf16.msra.mxu0 %v4427_v57  ;;  %v4452_v54 = vld [vmem:[#allocation9 + $0x340] ss:$8 sps:$4 sm:$0xff]  }
 0x322   : > { %v2334_v9 = vadd.bf16 %v5578_v39, %v2163_v56  ;;  %3424 = vmatprep.subr.bf16.mxu0 %v4432_v27 }
 0x323   : > { %v2335_v26 = vadd.bf16 %v5582_v63, %v2164_v51  ;;  %v5633_v63 = vrot.slane %v2256_v62, %v5301_v31 }
 0x324   : > { %v2398_v39 = vmax.bf16 %v4737_v47, %v2334_v9  ;;  %v4455_v9 = vld [vmem:[#allocation9 + $0x350] ss:$8 sps:$4 sm:$0xff]  }
 0x325   : > { %3425 = vmatpush1.bf16.msra.mxu0 %v4430_v30  ;;  %v1913_v29 = vpop.f32.mrb[64].mxu1  ;;  %v2399_v10 = vmax.bf16 %v4737_v47, %v2335_v26 }
 0x326   : > { %v1915_v59 = vpop.f32.mrb[65].mxu1  ;;  %3426 = vmatprep.subr.bf16.mxu0 %v4436_v58  ;;  %v4460_v58 = vld [vmem:[#allocation9 + $0x364] ss:$8 sps:$4 sm:$0xff]  }
 0x327   : > { %v1917_v50 = vpop.f32.mrb[66].mxu1  ;;  %3387 = vmatprep.mubr.bf16.mxu0 %v2399_v10  ;;  %v4458_v10 = vld [vmem:[#allocation9 + $0x360] ss:$8 sps:$4 sm:$0xff]  }
 0x328   : > { %v2109_v0 = vpack.c.bf16 %v1917_v50, %v1913_v29  ;;  %v1919_v46 = vpop.f32.mrb[67].mxu1  ;;  %3388 = vmatmul.mubr.bf16.gmra.mrb[28].mxu0 %v2398_v39  ;;  %v4463_v39 = vld [vmem:[#allocation9 + $0x374] ss:$8 sps:$4 sm:$0xff]  }
 0x329   : > { %v2110_v16 = vpack.c.bf16 %v1919_v46, %v1915_v59  ;;  %3427 = vmatpush1.bf16.msra.mxu0 %v4434_v60 }
 0x32a   : > { %v2280_v23 = vadd.bf16 %v5629_v2, %v2109_v0  ;;  %3428 = vmatprep.subr.bf16.mxu0 %v4439_v33 }
 0x32b   : > { %v2281_v4 = vadd.bf16 %v5633_v63, %v2110_v16  ;;  %v4461_v16 = vld [vmem:[#allocation9 + $0x370] ss:$8 sps:$4 sm:$0xff]  }
 0x32c   : > { %v2344_v17 = vmax.bf16 %v4737_v47, %v2280_v23  ;;  %v4466_v23 = vld [vmem:[#allocation9 + $0x384] ss:$8 sps:$4 sm:$0xff]  }
 0x32d   : > { %3429 = vmatpush1.bf16.msra.mxu0 %v4437_v42  ;;  %v1923_v37 = vpop.f32.mrb[68].mxu1  ;;  %v2345_v6 = vmax.bf16 %v4737_v47, %v2281_v4 }
 0x32e   : > { %v1925_v35 = vpop.f32.mrb[69].mxu1  ;;  %3511 = vmatprep.subr.bf16.mxu0 %v4442_v28 }
 0x32f   : > { %v1927_v36 = vpop.f32.mrb[70].mxu1  ;;  %3430 = vmatprep.mubr.bf16.mxu0 %v2345_v6  ;;  %v4464_v6 = vld [vmem:[#allocation9 + $0x380] ss:$8 sps:$4 sm:$0xff]  }
 0x330   : > { %v2117_v34 = vpack.c.bf16 %v1927_v36, %v1923_v37  ;;  %v1929_v12 = vpop.f32.mrb[71].mxu1  ;;  %3431 = vmatmul.mubr.bf16.vlgmr.msra.gmra.mrb[0].mxu0 %v2344_v17 }
 0x331   : > { %v2118_v41 = vpack.c.bf16 %v1929_v12, %v1925_v35  ;;  %3512 = vmatpush1.bf16.msra.mxu0 %v4440_v40  ;;  %v4469_v35 = vld [vmem:[#allocation9 + $0x394] ss:$8 sps:$4 sm:$0xff]  }
 0x332   : > { %v2288_v5 = vadd.bf16 %v5629_v2, %v2117_v34  ;;  %3513 = vmatprep.subr.bf16.mxu0 %v4445_v22 }
 0x333   : > { %v2289_v53 = vadd.bf16 %v5633_v63, %v2118_v41  ;;  %v4467_v41 = vld [vmem:[#allocation9 + $0x390] ss:$8 sps:$4 sm:$0xff]  }
 0x334   : > { %v2352_v20 = vmax.bf16 %v4737_v47, %v2288_v5  ;;  %v4472_v5 = vld [vmem:[#allocation9 + $0x3a4] ss:$8 sps:$4 sm:$0xff]  }
 0x335   : > { %3514 = vmatpush1.bf16.msra.mxu0 %v4443_v14  ;;  %v1933_v19 = vpop.f32.mrb[72].mxu1  ;;  %v2353_v18 = vmax.bf16 %v4737_v47, %v2289_v53 }
 0x336   : > { %v1935_v32 = vpop.f32.mrb[73].mxu1  ;;  %3515 = vmatprep.subr.bf16.mxu0 %v4448_v1 }
 0x337   : > { %v1937_v44 = vpop.f32.mrb[74].mxu1  ;;  %3440 = vmatprep.mubr.bf16.mxu0 %v2353_v18  ;;  %v4470_v18 = vld [vmem:[#allocation9 + $0x3a0] ss:$8 sps:$4 sm:$0xff]  }
 0x338   : > { %v2125_v49 = vpack.c.bf16 %v1937_v44, %v1933_v19  ;;  %v1939_v52 = vpop.f32.mrb[75].mxu1  ;;  %3441 = vmatmul.mubr.bf16.gmra.mrb[4].mxu0 %v2352_v20  ;;  %v4475_v20 = vld [vmem:[#allocation9 + $0x3b4] ss:$8 sps:$4 sm:$0xff]  }
 0x339   : > { %v2126_v25 = vpack.c.bf16 %v1939_v52, %v1935_v32  ;;  %3516 = vmatpush1.bf16.msra.mxu0 %v4446_v45 }
 0x33a   : > { %v2296_v3 = vadd.bf16 %v5629_v2, %v2125_v49  ;;  %3517 = vmatprep.subr.bf16.mxu0 %v4451_v15 }
 0x33b   : > { %v2297_v8 = vadd.bf16 %v5633_v63, %v2126_v25  ;;  %v4473_v25 = vld [vmem:[#allocation9 + $0x3b0] ss:$8 sps:$4 sm:$0xff]  }
 0x33c   : > { %v2360_v27 = vmax.bf16 %v4737_v47, %v2296_v3  ;;  %v4478_v3 = vld [vmem:[#allocation9 + $0x3c4] ss:$8 sps:$4 sm:$0xff]  }
 0x33d   : > { %3518 = vmatpush1.bf16.msra.mxu0 %v4449_v11  ;;  %v1943_v24 = vpop.f32.mrb[76].mxu1  ;;  %v2361_v57 = vmax.bf16 %v4737_v47, %v2297_v8 }
 0x33e   : > { %v1945_v38 = vpop.f32.mrb[77].mxu1  ;;  %3519 = vmatprep.subr.bf16.mxu0 %v4454_v48 }
 0x33f   : > { %v1947_v56 = vpop.f32.mrb[78].mxu1  ;;  %3450 = vmatprep.mubr.bf16.mxu0 %v2361_v57  ;;  %v4476_v57 = vld [vmem:[#allocation9 + $0x3c0] ss:$8 sps:$4 sm:$0xff]  }
 0x340   : > { %v2133_v55 = vpack.c.bf16 %v1947_v56, %v1943_v24  ;;  %v1949_v51 = vpop.f32.mrb[79].mxu1  ;;  %3451 = vmatmul.mubr.bf16.gmra.mrb[8].mxu0 %v2360_v27  ;;  %v4481_v27 = vld [vmem:[#allocation9 + $0x3d4] ss:$8 sps:$4 sm:$0xff]  }
 0x341   : > { %v2134_v30 = vpack.c.bf16 %v1949_v51, %v1945_v38  ;;  %3520 = vmatpush1.bf16.msra.mxu0 %v4452_v54 }
 0x342   : > { %v2304_v61 = vadd.bf16 %v5629_v2, %v2133_v55  ;;  %3521 = vmatprep.subr.bf16.mxu0 %v4457_v43  ;;  %v2217_v43 = vcombine.high %v5616_v13, %v5616_v13  ;;  %v2219_v55 = vcombine.high %v5619_v7, %v5619_v7 }
 0x343   : > { %v2305_v26 = vadd.bf16 %v5633_v63, %v2134_v30 }
 0x344   : > { %v2368_v59 = vmax.bf16 %v4737_v47, %v2304_v61  ;;  %v4479_v61 = vld [vmem:[#allocation9 + $0x3d0] ss:$8 sps:$4 sm:$0xff]  }
 0x345   : > { %3522 = vmatpush1.bf16.msra.mxu0 %v4455_v9  ;;  %v1953_v62 = vpop.f32.mrb[80].mxu1  ;;  %v2369_v29 = vmax.bf16 %v4737_v47, %v2305_v26  ;;  %v2263_v26 = vpack.i.b16 %v2217_v43, %v2217_v43 }
 0x346   : > { %v1955_v60 = vpop.f32.mrb[81].mxu1  ;;  %3523 = vmatprep.subr.bf16.mxu0 %v4460_v58 }
 0x347   : > { %v1957_v33 = vpop.f32.mrb[82].mxu1  ;;  %3460 = vmatprep.mubr.bf16.mxu0 %v2369_v29 }
 0x348   : > { %v2141_v50 = vpack.c.bf16 %v1957_v33, %v1953_v62  ;;  %v1959_v0 = vpop.f32.mrb[83].mxu1  ;;  %3461 = vmatmul.mubr.bf16.gmra.mrb[12].mxu0 %v2368_v59  ;;  %v4484_v62 = vld [vmem:[#allocation9 + $0x3e4] ss:$8 sps:$4 sm:$0xff]   ;;  %v4482_v59 = vld [vmem:[#allocation9 + $0x3e0] ss:$8 sps:$4 sm:$0xff]  }
 0x349   : > { %v2142_v46 = vpack.c.bf16 %v1959_v0, %v1955_v60  ;;  %3524 = vmatpush1.bf16.msra.mxu0 %v4458_v10  ;;  %v2270_v10 = vpack.i.b16 %v2219_v55, %v2219_v55 }
 0x34a   : > { %v2312_v42 = vadd.bf16 %v5629_v2, %v2141_v50  ;;  %3525 = vmatprep.subr.bf16.mxu0 %v4463_v39  ;;  %v5671_v39 = vrot.slane %v2263_v26, %v5301_v31  ;;  %v4487_v50 = vld [vmem:[#allocation9 + $0x3f4] ss:$8 sps:$4 sm:$0xff]  }
 0x34b   : > { %v2313_v28 = vadd.bf16 %v5633_v63, %v2142_v46  ;;  %v5675_v0 = vrot.slane %v2270_v10, %v5301_v31 }
 0x34c   : > { %v2376_v17 = vmax.bf16 %v4737_v47, %v2312_v42  ;;  %v4485_v42 = vld [vmem:[#allocation9 + $0x3f0] ss:$8 sps:$4 sm:$0xff]  }
 0x34d   : > { %3526 = vmatpush1.bf16.msra.mxu0 %v4461_v16  ;;  %v1963_v4 = vpop.f32.mrb[84].mxu1  ;;  %v2377_v37 = vmax.bf16 %v4737_v47, %v2313_v28 }
 0x34e   : > { %v1965_v40 = vpop.f32.mrb[85].mxu1  ;;  %3527 = vmatprep.subr.bf16.mxu0 %v4466_v23 }
 0x34f   : > { %v1967_v22 = vpop.f32.mrb[86].mxu1  ;;  %3470 = vmatprep.mubr.bf16.mxu0 %v2377_v37 }
 0x350   : > { %v2149_v36 = vpack.c.bf16 %v1967_v22, %v1963_v4  ;;  %v1969_v34 = vpop.f32.mrb[87].mxu1  ;;  %3471 = vmatmul.mubr.bf16.gmra.mrb[16].mxu0 %v2376_v17 }
 0x351   : > { %v2150_v12 = vpack.c.bf16 %v1969_v34, %v1965_v40  ;;  %3528 = vmatpush1.bf16.msra.mxu0 %v4464_v6 }
 0x352   : > { %v2320_v14 = vadd.bf16 %v5629_v2, %v2149_v36  ;;  %3529 = vmatprep.subr.bf16.mxu0 %v4469_v35 }
 0x353   : > { %v2321_v1 = vadd.bf16 %v5633_v63, %v2150_v12 }
 0x354   : > { %v2384_v32 = vmax.bf16 %v4737_v47, %v2320_v14 }
 0x355   : > { %3530 = vmatpush1.bf16.msra.mxu0 %v4467_v41  ;;  %v1973_v53 = vpop.f32.mrb[88].mxu1  ;;  %v2385_v19 = vmax.bf16 %v4737_v47, %v2321_v1 }
 0x356   : > { %v1975_v45 = vpop.f32.mrb[89].mxu1  ;;  %3531 = vmatprep.subr.bf16.mxu0 %v4472_v5 }
 0x357   : > { %v1977_v15 = vpop.f32.mrb[90].mxu1  ;;  %3480 = vmatprep.mubr.bf16.mxu0 %v2385_v19 }
 0x358   : > { %v2157_v44 = vpack.c.bf16 %v1977_v15, %v1973_v53  ;;  %v1979_v49 = vpop.f32.mrb[91].mxu1  ;;  %3481 = vmatmul.mubr.bf16.gmra.mrb[20].mxu0 %v2384_v32 }
 0x359   : > { %v2158_v52 = vpack.c.bf16 %v1979_v49, %v1975_v45  ;;  %3532 = vmatpush1.bf16.msra.mxu0 %v4470_v18 }
 0x35a   : > { %v2328_v11 = vadd.bf16 %v5629_v2, %v2157_v44  ;;  %3533 = vmatprep.subr.bf16.mxu0 %v4475_v20 }
 0x35b   : > { %v2329_v48 = vadd.bf16 %v5633_v63, %v2158_v52 }
 0x35c   : > { %v2392_v38 = vmax.bf16 %v4737_v47, %v2328_v11 }
 0x35d   : > { %3534 = vmatpush1.bf16.msra.mxu0 %v4473_v25  ;;  %v1983_v8 = vpop.f32.mrb[92].mxu1  ;;  %v2393_v24 = vmax.bf16 %v4737_v47, %v2329_v48 }
 0x35e   : > { %v1985_v54 = vpop.f32.mrb[93].mxu1  ;;  %3535 = vmatprep.subr.bf16.mxu0 %v4478_v3 }
 0x35f   : > { %v1987_v56 = vpop.f32.mrb[94].mxu1  ;;  %3490 = vmatprep.mubr.bf16.mxu0 %v2393_v24 }
 0x360   : > { %v2165_v51 = vpack.c.bf16 %v1987_v56, %v1983_v8  ;;  %v1989_v30 = vpop.f32.mrb[95].mxu1  ;;  %3491 = vmatmul.mubr.bf16.gmra.mrb[24].mxu0 %v2392_v38 }
 0x361   : > { %v2166_v9 = vpack.c.bf16 %v1989_v30, %v1985_v54  ;;  %3536 = vmatpush1.bf16.msra.mxu0 %v4476_v57 }
 0x362   : > { %v2336_v58 = vadd.bf16 %v5629_v2, %v2165_v51  ;;  %3537 = vmatprep.subr.bf16.mxu0 %v4481_v27 }
 0x363   : > { %v2337_v29 = vadd.bf16 %v5633_v63, %v2166_v9 }
 0x364   : > { %v2400_v33 = vmax.bf16 %v4737_v47, %v2336_v58 }
 0x365   : > { %3538 = vmatpush1.bf16.msra.mxu0 %v4479_v61  ;;  %v2026_v13 = vpop.f32.mrb[96].mxu1  ;;  %v2401_v60 = vmax.bf16 %v4737_v47, %v2337_v29 }
 0x366   : > { %v2028_v7 = vpop.f32.mrb[97].mxu1  ;;  %3539 = vmatprep.subr.bf16.mxu0 %v4484_v62 }
 0x367   : > { %v2030_v2 = vpop.f32.mrb[98].mxu1  ;;  %3500 = vmatprep.mubr.bf16.mxu0 %v2401_v60 }
 0x368   : > { %v2111_v63 = vpack.c.bf16 %v2030_v2, %v2026_v13  ;;  %v2032_v46 = vpop.f32.mrb[99].mxu1  ;;  %3501 = vmatmul.mubr.bf16.gmra.mrb[28].mxu0 %v2400_v33 }
 0x369   : > { %v2112_v16 = vpack.c.bf16 %v2032_v46, %v2028_v7  ;;  %3540 = vmatpush1.bf16.msra.mxu0 %v4482_v59 }
 0x36a   : > { %v2282_v23 = vadd.bf16 %v5671_v39, %v2111_v63  ;;  %3541 = vmatprep.subr.bf16.mxu0 %v4487_v50 }
 0x36b   : > { %v2283_v28 = vadd.bf16 %v5675_v0, %v2112_v16 }
 0x36c   : > { %v2346_v6 = vmax.bf16 %v4737_v47, %v2282_v23 }
 0x36d   : > { %3542 = vmatpush1.bf16.msra.mxu0 %v4485_v42  ;;  %v2036_v4 = vpop.f32.mrb[100].mxu1  ;;  %v2347_v37 = vmax.bf16 %v4737_v47, %v2283_v28 }
 0x36e   : > { %v2038_v40 = vpop.f32.mrb[101].mxu1 }
 0x36f   : > { %v2040_v17 = vpop.f32.mrb[102].mxu1  ;;  %3543 = vmatprep.mubr.bf16.mxu0 %v2347_v37 }
 0x370   : > { %v2119_v35 = vpack.c.bf16 %v2040_v17, %v2036_v4  ;;  %v2042_v22 = vpop.f32.mrb[103].mxu1  ;;  %3544 = vmatmul.mubr.bf16.vlgmr.msra.gmra.mrb[0].mxu0 %v2346_v6 }
 0x371   : > { %v2120_v36 = vpack.c.bf16 %v2042_v22, %v2038_v40 }
 0x372   : > { %v2290_v34 = vadd.bf16 %v5671_v39, %v2119_v35 }
 0x373   : > { %v2291_v12 = vadd.bf16 %v5675_v0, %v2120_v36 }
 0x374   : > { %v2354_v1 = vmax.bf16 %v4737_v47, %v2290_v34 }
 0x375   : > { %v2046_v41 = vpop.f32.mrb[104].mxu1  ;;  %v2355_v14 = vmax.bf16 %v4737_v47, %v2291_v12 }
 0x376   : > { %v2048_v5 = vpop.f32.mrb[105].mxu1 }
 0x377   : > { %v2050_v53 = vpop.f32.mrb[106].mxu1  ;;  %3553 = vmatprep.mubr.bf16.mxu0 %v2355_v14 }
 0x378   : > { %v2127_v19 = vpack.c.bf16 %v2050_v53, %v2046_v41  ;;  %v2052_v18 = vpop.f32.mrb[107].mxu1  ;;  %3554 = vmatmul.mubr.bf16.gmra.mrb[4].mxu0 %v2354_v1  ;;  %v761_v1 = vld [vmem:[#allocation6 + $0x2] ss:$4 sm:$0x3] }
 0x379   : > { %v2128_v45 = vpack.c.bf16 %v2052_v18, %v2048_v5  ;;  %v5710_v53 = vrot.slane %v761_v1, %v5301_v31  ;;  %v5714_v18 = vrot.slane %v761_v1, %v5305_v21  ;;  %v744_v1 = vld [vmem:[%s4979_s10 + $0x80] sm:$0xff] }
 0x37a   : > { %v2298_v32 = vadd.bf16 %v5671_v39, %v2127_v19  ;;  %v728_v19 = vld [vmem:[%s4979_s10] sm:$0xff] }
 0x37b   : > { %v2299_v20 = vadd.bf16 %v5675_v0, %v2128_v45  ;;  %v729_v45 = vld [vmem:[%s4979_s10 + $0x8] sm:$0xff] }
 0x37c   : > { %v2362_v52 = vmax.bf16 %v4737_v47, %v2298_v32  ;;  %v731_v32 = vld [vmem:[%s4979_s10 + $0x18] sm:$0xff] }
 0x37d   : > { %v2056_v15 = vpop.f32.mrb[108].mxu1  ;;  %v2363_v44 = vmax.bf16 %v4737_v47, %v2299_v20  ;;  %v776_v31 = vadd.f32 %v5714_v18, %v731_v32  ;;  %v746_v32 = vld [vmem:[%s4979_s10 + $0x90] sm:$0xff] }
 0x37e   : > { %v2058_v49 = vpop.f32.mrb[109].mxu1 }
 0x37f   : > { %v2060_v25 = vpop.f32.mrb[110].mxu1  ;;  %3563 = vmatprep.mubr.bf16.mxu0 %v2363_v44 }
 0x380   : > { %v2135_v11 = vpack.c.bf16 %v2060_v25, %v2056_v15  ;;  %v2062_v3 = vpop.f32.mrb[111].mxu1  ;;  %3564 = vmatmul.mubr.bf16.gmra.mrb[8].mxu0 %v2362_v52  ;;  %v732_v25 = vld [vmem:[%s4979_s10 + $0x20] sm:$0xff] }
 0x381   : > { %v2136_v48 = vpack.c.bf16 %v2062_v3, %v2058_v49 }
 0x382   : > { %v2306_v8 = vadd.bf16 %v5671_v39, %v2135_v11 }
 0x383   : > { %v2307_v24 = vadd.bf16 %v5675_v0, %v2136_v48  ;;  %v733_v48 = vld [vmem:[%s4979_s10 + $0x28] sm:$0xff] }
 0x384   : > { %v2370_v27 = vmax.bf16 %v4737_v47, %v2306_v8 }
 0x385   : > { %v2066_v57 = vpop.f32.mrb[112].mxu1  ;;  %v2371_v54 = vmax.bf16 %v4737_v47, %v2307_v24  ;;  %v734_v24 = vld [vmem:[%s4979_s10 + $0x30] sm:$0xff] }
 0x386   : > { %v2068_v38 = vpop.f32.mrb[113].mxu1 }
 0x387   : > { %v2070_v43 = vpop.f32.mrb[114].mxu1  ;;  %3573 = vmatprep.mubr.bf16.mxu0 %v2371_v54  ;;  %v735_v54 = vld [vmem:[%s4979_s10 + $0x38] sm:$0xff] }
 0x388   : > { %v2143_v56 = vpack.c.bf16 %v2070_v43, %v2066_v57  ;;  %v2072_v55 = vpop.f32.mrb[115].mxu1  ;;  %3574 = vmatmul.mubr.bf16.gmra.mrb[12].mxu0 %v2370_v27  ;;  %v777_v57 = vadd.f32 %v5710_v53, %v732_v25  ;;  %v779_v27 = vadd.f32 %v5710_v53, %v734_v24  ;;  %v749_v24 = vld [vmem:[%s4979_s10 + $0xa8] sm:$0xff] }
 0x389   : > { %v2144_v51 = vpack.c.bf16 %v2072_v55, %v2068_v38  ;;  %v778_v38 = vadd.f32 %v5714_v18, %v733_v48 }
 0x38a   : > { %v2314_v30 = vadd.bf16 %v5671_v39, %v2143_v56  ;;  %v780_v56 = vadd.f32 %v5714_v18, %v735_v54  ;;  %v750_v54 = vld [vmem:[%s4979_s10 + $0xb0] sm:$0xff] }
 0x38b   : > { %v2315_v9 = vadd.bf16 %v5675_v0, %v2144_v51 }
 0x38c   : > { %v2378_v62 = vmax.bf16 %v4737_v47, %v2314_v30 }
 0x38d   : > { %v2076_v61 = vpop.f32.mrb[116].mxu1  ;;  %v2379_v58 = vmax.bf16 %v4737_v47, %v2315_v9 }
 0x38e   : > { %v2078_v26 = vpop.f32.mrb[117].mxu1 }
 0x38f   : > { %v2080_v29 = vpop.f32.mrb[118].mxu1  ;;  %3583 = vmatprep.mubr.bf16.mxu0 %v2379_v58 }
 0x390   : > { %v2151_v10 = vpack.c.bf16 %v2080_v29, %v2076_v61  ;;  %v2082_v13 = vpop.f32.mrb[119].mxu1  ;;  %3584 = vmatmul.mubr.bf16.gmra.mrb[16].mxu0 %v2378_v62  ;;  %v736_v61 = vld [vmem:[%s4979_s10 + $0x40] sm:$0xff]  ;;  %v737_v62 = vld [vmem:[%s4979_s10 + $0x48] sm:$0xff] }
 0x391   : > { %v2152_v60 = vpack.c.bf16 %v2082_v13, %v2078_v26  ;;  %v781_v13 = vadd.f32 %v5710_v53, %v736_v61 }
 0x392   : > { %v2322_v59 = vadd.bf16 %v5671_v39, %v2151_v10  ;;  %v738_v10 = vld [vmem:[%s4979_s10 + $0x50] sm:$0xff] }
 0x393   : > { %v2323_v7 = vadd.bf16 %v5675_v0, %v2152_v60  ;;  %v739_v60 = vld [vmem:[%s4979_s10 + $0x58] sm:$0xff] }
 0x394   : > { %v2386_v63 = vmax.bf16 %v4737_v47, %v2322_v59  ;;  %v782_v59 = vadd.f32 %v5714_v18, %v737_v62 }
 0x395   : > { %v2086_v33 = vpop.f32.mrb[120].mxu1  ;;  %v2387_v50 = vmax.bf16 %v4737_v47, %v2323_v7  ;;  %v783_v7 = vadd.f32 %v5710_v53, %v738_v10  ;;  %v753_v10 = vld [vmem:[%s4979_s10 + $0xc8] sm:$0xff] }
 0x396   : > { %v2088_v2 = vpop.f32.mrb[121].mxu1 }
 0x397   : > { %v2090_v46 = vpop.f32.mrb[122].mxu1  ;;  %3593 = vmatprep.mubr.bf16.mxu0 %v2387_v50  ;;  %v784_v50 = vadd.f32 %v5714_v18, %v739_v60  ;;  %v754_v60 = vld [vmem:[%s4979_s10 + $0xd0] sm:$0xff] }
 0x398   : > { %v2159_v16 = vpack.c.bf16 %v2090_v46, %v2086_v33  ;;  %v2092_v42 = vpop.f32.mrb[123].mxu1  ;;  %3594 = vmatmul.mubr.bf16.gmra.mrb[20].mxu0 %v2386_v63 }
 0x399   : > { %v2160_v23 = vpack.c.bf16 %v2092_v42, %v2088_v2  ;;  %v740_v42 = vld [vmem:[%s4979_s10 + $0x60] sm:$0xff] }
 0x39a   : > { %v2330_v28 = vadd.bf16 %v5671_v39, %v2159_v16 }
 0x39b   : > { %v2331_v4 = vadd.bf16 %v5675_v0, %v2160_v23 }
 0x39c   : > { %v2394_v17 = vmax.bf16 %v4737_v47, %v2330_v28 }
 0x39d   : > { %v2096_v37 = vpop.f32.mrb[124].mxu1  ;;  %v2395_v6 = vmax.bf16 %v4737_v47, %v2331_v4  ;;  %v741_v4 = vld [vmem:[%s4979_s10 + $0x68] sm:$0xff] }
 0x39e   : > { %v2098_v40 = vpop.f32.mrb[125].mxu1 }
 0x39f   : > { %v2100_v35 = vpop.f32.mrb[126].mxu1  ;;  %3603 = vmatprep.mubr.bf16.mxu0 %v2395_v6  ;;  %v742_v6 = vld [vmem:[%s4979_s10 + $0x70] sm:$0xff] }
 0x3a0   : > { %v2167_v22 = vpack.c.bf16 %v2100_v35, %v2096_v37  ;;  %v2102_v36 = vpop.f32.mrb[127].mxu1  ;;  %3604 = vmatmul.mubr.bf16.gmra.mrb[24].mxu0 %v2394_v17  ;;  %v743_v17 = vld [vmem:[%s4979_s10 + $0x78] sm:$0xff]  ;;  %v786_v35 = vadd.f32 %v5714_v18, %v741_v4 }
 0x3a1   : > { %v2168_v34 = vpack.c.bf16 %v2102_v36, %v2098_v40  ;;  %v785_v40 = vadd.f32 %v5710_v53, %v740_v42 }
 0x3a2   : > { %v2338_v12 = vadd.bf16 %v5671_v39, %v2167_v22  ;;  %v730_v39 = vld [vmem:[%s4979_s10 + $0x10] sm:$0xff]  ;;  %v787_v22 = vadd.f32 %v5710_v53, %v742_v6  ;;  %v757_v6 = vld [vmem:[%s4979_s10 + $0xe8] sm:$0xff] }
 0x3a3   : > { %v2339_v41 = vadd.bf16 %v5675_v0, %v2168_v34  ;;  %v773_v0 = vadd.f32 %v5710_v53, %v728_v19  ;;  %v775_v20 = vadd.f32 %v5710_v53, %v730_v39  ;;  %v788_v34 = vadd.f32 %v5714_v18, %v743_v17  ;;  %v745_v39 = vld [vmem:[%s4979_s10 + $0x88] sm:$0xff]  ;;  %v758_v17 = vld [vmem:[%s4979_s10 + $0xf0] sm:$0xff] }
 0x3a4   : > { %v2402_v5 = vmax.bf16 %v4737_v47, %v2338_v12 }
 0x3a5   : > { %v2403_v14 = vmax.bf16 %v4737_v47, %v2339_v41  ;;  %v774_v47 = vadd.f32 %v5714_v18, %v729_v45 }
 0x3a7   : > { %3613 = vmatprep.mubr.bf16.mxu0 %v2403_v14 }
 0x3a8   : > { %3614 = vmatmul.mubr.bf16.gmra.mrb[28].mxu0 %v2402_v5 }
 0x443   : > { %v3545_v15 = vpop.f32.mrb[0].mxu0 }
 0x444   : > { %v3624_v44 = vadd.f32 %v3545_v15, %v773_v0  ;;  %v3547_v49 = vpop.f32.mrb[1].mxu0  ;;  %v790_v15 = vadd.f32 %v5714_v18, %v745_v39 }
 0x445   : > { %v3625_v52 = vadd.f32 %v3547_v49, %v774_v47  ;;  %v3549_v21 = vpop.f32.mrb[2].mxu0  ;;  %v789_v47 = vadd.f32 %v5710_v53, %v744_v1 }
 0x446   : > { %3656 = vst [vmem:[%s5726_s30] sm:$0xff] %v3624_v44  ;;  %v3626_v11 = vadd.f32 %v3549_v21, %v775_v20  ;;  %v3551_v3 = vpop.f32.mrb[3].mxu0  ;;  %v747_v20 = vld [vmem:[%s4979_s10 + $0x98] sm:$0xff] }
 0x447   : > { %3657 = vst [vmem:[%s5726_s30 + $0x8] sm:$0xff] %v3625_v52  ;;  %v3627_v8 = vadd.f32 %v3551_v3, %v776_v31  ;;  %v791_v31 = vadd.f32 %v5710_v53, %v746_v32  ;;  %v792_v49 = vadd.f32 %v5714_v18, %v747_v20  ;;  %v748_v3 = vld [vmem:[%s4979_s10 + $0xa0] sm:$0xff] }
 0x448   : > { %3658 = vst [vmem:[%s5726_s30 + $0x10] sm:$0xff] %v3626_v11 }
 0x449   : > { %3659 = vst [vmem:[%s5726_s30 + $0x18] sm:$0xff] %v3627_v8 }
 0x44b   : > { %v3555_v43 = vpop.f32.mrb[4].mxu0 }
 0x44c   : > { %v3628_v55 = vadd.f32 %v3555_v43, %v777_v57  ;;  %v3557_v51 = vpop.f32.mrb[5].mxu0  ;;  %v794_v43 = vadd.f32 %v5714_v18, %v749_v24 }
 0x44d   : > { %v3629_v30 = vadd.f32 %v3557_v51, %v778_v38  ;;  %v3559_v9 = vpop.f32.mrb[6].mxu0  ;;  %v793_v38 = vadd.f32 %v5710_v53, %v748_v3 }
 0x44e   : > { %3660 = vst [vmem:[%s5726_s30 + $0x20] sm:$0xff] %v3628_v55  ;;  %v3630_v58 = vadd.f32 %v3559_v9, %v779_v27  ;;  %v3561_v26 = vpop.f32.mrb[7].mxu0  ;;  %v751_v27 = vld [vmem:[%s4979_s10 + $0xb8] sm:$0xff] }
 0x44f   : > { %3661 = vst [vmem:[%s5726_s30 + $0x28] sm:$0xff] %v3629_v30  ;;  %v3631_v29 = vadd.f32 %v3561_v26, %v780_v56  ;;  %v795_v56 = vadd.f32 %v5710_v53, %v750_v54  ;;  %v796_v51 = vadd.f32 %v5714_v18, %v751_v27  ;;  %v752_v26 = vld [vmem:[%s4979_s10 + $0xc0] sm:$0xff] }
 0x450   : > { %3662 = vst [vmem:[%s5726_s30 + $0x30] sm:$0xff] %v3630_v58 }
 0x451   : > { %3663 = vst [vmem:[%s5726_s30 + $0x38] sm:$0xff] %v3631_v29 }
 0x453   : > { %v3565_v33 = vpop.f32.mrb[8].mxu0 }
 0x454   : > { %v3632_v2 = vadd.f32 %v3565_v33, %v781_v13  ;;  %v3567_v63 = vpop.f32.mrb[9].mxu0  ;;  %v798_v33 = vadd.f32 %v5714_v18, %v753_v10 }
 0x455   : > { %v3633_v46 = vadd.f32 %v3567_v63, %v782_v59  ;;  %v3569_v16 = vpop.f32.mrb[10].mxu0  ;;  %v797_v59 = vadd.f32 %v5710_v53, %v752_v26 }
 0x456   : > { %3664 = vst [vmem:[%s5726_s30 + $0x40] sm:$0xff] %v3632_v2  ;;  %v3634_v23 = vadd.f32 %v3569_v16, %v783_v7  ;;  %v3571_v28 = vpop.f32.mrb[11].mxu0  ;;  %v755_v7 = vld [vmem:[%s4979_s10 + $0xd8] sm:$0xff] }
 0x457   : > { %3665 = vst [vmem:[%s5726_s30 + $0x48] sm:$0xff] %v3633_v46  ;;  %v3635_v37 = vadd.f32 %v3571_v28, %v784_v50  ;;  %v799_v50 = vadd.f32 %v5710_v53, %v754_v60  ;;  %v800_v63 = vadd.f32 %v5714_v18, %v755_v7  ;;  %v756_v28 = vld [vmem:[%s4979_s10 + $0xe0] sm:$0xff] }
 0x458   : > { %3666 = vst [vmem:[%s5726_s30 + $0x50] sm:$0xff] %v3634_v23 }
 0x459   : > { %3667 = vst [vmem:[%s5726_s30 + $0x58] sm:$0xff] %v3635_v37 }
 0x45b   : > { %v3575_v36 = vpop.f32.mrb[12].mxu0 }
 0x45c   : > { %v3636_v12 = vadd.f32 %v3575_v36, %v785_v40  ;;  %v3577_v41 = vpop.f32.mrb[13].mxu0  ;;  %v802_v36 = vadd.f32 %v5714_v18, %v757_v6 }
 0x45d   : > { %v3637_v14 = vadd.f32 %v3577_v41, %v786_v35  ;;  %v3579_v5 = vpop.f32.mrb[14].mxu0  ;;  %v801_v35 = vadd.f32 %v5710_v53, %v756_v28 }
 0x45e   : > { %3668 = vst [vmem:[%s5726_s30 + $0x60] sm:$0xff] %v3636_v12  ;;  %v3638_v19 = vadd.f32 %v3579_v5, %v787_v22  ;;  %v3581_v45 = vpop.f32.mrb[15].mxu0  ;;  %v759_v22 = vld [vmem:[%s4979_s10 + $0xf8] sm:$0xff] }
 0x45f   : > { %3669 = vst [vmem:[%s5726_s30 + $0x68] sm:$0xff] %v3637_v14  ;;  %v3639_v0 = vadd.f32 %v3581_v45, %v788_v34  ;;  %v803_v34 = vadd.f32 %v5710_v53, %v758_v17  ;;  %v804_v41 = vadd.f32 %v5714_v18, %v759_v22 }
 0x460   : > { %3670 = vst [vmem:[%s5726_s30 + $0x70] sm:$0xff] %v3638_v19 }
 0x461   : > { %3671 = vst [vmem:[%s5726_s30 + $0x78] sm:$0xff] %v3639_v0 }
 0x463   : > { %v3585_v44 = vpop.f32.mrb[16].mxu0 }
 0x464   : > { %v3640_v52 = vadd.f32 %v3585_v44, %v789_v47  ;;  %v3587_v21 = vpop.f32.mrb[17].mxu0 }
 0x465   : > { %v3641_v25 = vadd.f32 %v3587_v21, %v790_v15  ;;  %v3589_v11 = vpop.f32.mrb[18].mxu0 }
 0x466   : > { %3672 = vst [vmem:[%s5726_s30 + $0x80] sm:$0xff] %v3640_v52  ;;  %v3642_v48 = vadd.f32 %v3589_v11, %v791_v31  ;;  %v3591_v8 = vpop.f32.mrb[19].mxu0 }
 0x467   : > { %3673 = vst [vmem:[%s5726_s30 + $0x88] sm:$0xff] %v3641_v25  ;;  %v3643_v57 = vadd.f32 %v3591_v8, %v792_v49 }
 0x468   : > { %3674 = vst [vmem:[%s5726_s30 + $0x90] sm:$0xff] %v3642_v48 }
 0x469   : > { %3675 = vst [vmem:[%s5726_s30 + $0x98] sm:$0xff] %v3643_v57 }
 0x46b   : > { %v3595_v55 = vpop.f32.mrb[20].mxu0 }
 0x46c   : > { %v3644_v30 = vadd.f32 %v3595_v55, %v793_v38  ;;  %v3597_v9 = vpop.f32.mrb[21].mxu0 }
 0x46d   : > { %v3645_v61 = vadd.f32 %v3597_v9, %v794_v43  ;;  %v3599_v58 = vpop.f32.mrb[22].mxu0 }
 0x46e   : > { %3676 = vst [vmem:[%s5726_s30 + $0xa0] sm:$0xff] %v3644_v30  ;;  %v3646_v62 = vadd.f32 %v3599_v58, %v795_v56  ;;  %v3601_v29 = vpop.f32.mrb[23].mxu0 }
 0x46f   : > { %3677 = vst [vmem:[%s5726_s30 + $0xa8] sm:$0xff] %v3645_v61  ;;  %v3647_v13 = vadd.f32 %v3601_v29, %v796_v51 }
 0x470   : > { %3678 = vst [vmem:[%s5726_s30 + $0xb0] sm:$0xff] %v3646_v62 }
 0x471   : > { %3679 = vst [vmem:[%s5726_s30 + $0xb8] sm:$0xff] %v3647_v13 }
 0x473   : > { %v3605_v2 = vpop.f32.mrb[24].mxu0 }
 0x474   : > { %v3648_v46 = vadd.f32 %v3605_v2, %v797_v59  ;;  %v3607_v16 = vpop.f32.mrb[25].mxu0 }
 0x475   : > { %v3649_v42 = vadd.f32 %v3607_v16, %v798_v33  ;;  %v3609_v23 = vpop.f32.mrb[26].mxu0 }
 0x476   : > { %3680 = vst [vmem:[%s5726_s30 + $0xc0] sm:$0xff] %v3648_v46  ;;  %v3650_v4 = vadd.f32 %v3609_v23, %v799_v50  ;;  %v3611_v37 = vpop.f32.mrb[27].mxu0 }
 0x477   : > { %3681 = vst [vmem:[%s5726_s30 + $0xc8] sm:$0xff] %v3649_v42  ;;  %v3651_v40 = vadd.f32 %v3611_v37, %v800_v63 }
 0x478   : > { %3682 = vst [vmem:[%s5726_s30 + $0xd0] sm:$0xff] %v3650_v4 }
 0x479   : > { %3683 = vst [vmem:[%s5726_s30 + $0xd8] sm:$0xff] %v3651_v40 }
 0x47b   : > { %v3615_v12 = vpop.f32.mrb[28].mxu0 }
 0x47c   : > { %v3652_v14 = vadd.f32 %v3615_v12, %v801_v35  ;;  %v3617_v5 = vpop.f32.mrb[29].mxu0 }
 0x47d   : > { %v3653_v1 = vadd.f32 %v3617_v5, %v802_v36  ;;  %v3619_v19 = vpop.f32.mrb[30].mxu0 }
 0x47e   : > { %3684 = vst [vmem:[%s5726_s30 + $0xe0] sm:$0xff] %v3652_v14  ;;  %v3654_v45 = vadd.f32 %v3619_v19, %v803_v34  ;;  %v3621_v39 = vpop.f32.mrb[31].mxu0 }
 0x47f   : > { %3685 = vst [vmem:[%s5726_s30 + $0xe8] sm:$0xff] %v3653_v1  ;;  %v3655_v53 = vadd.f32 %v3621_v39, %v804_v41 }
 0x480   : > { %3686 = vst [vmem:[%s5726_s30 + $0xf0] sm:$0xff] %v3654_v45 }
 0x481   : > { %3687 = vst [vmem:[%s5726_s30 + $0xf8] sm:$0xff] %v3655_v53 }
 0x482   : > { %4647 = shalt.err (!%p4644_p5)
}
 0x483   : > { %s4648_s25 = scalar_lea.hbm %s5817_s7, 4096  ;;  %s4652_s26 = scalar_lea.hbm %s5876_s5, 8192 }
 0x484   : > { %p4649_p10 = scmp.ne.s32.totalorder %s5817_s7, %s4648_s25  ;;  %p4653_p3 = scmp.lt.u32.totalorder %s5817_s7, %s5876_s5 }
 0x485   : > { %p4654_p7 = scmp.lt.u32.totalorder %s4652_s26, %s4648_s25  ;;  %p4656_p12 = scmp.lt.u32.totalorder %s4648_s25, %s5817_s7 }
 0x486   : > { %p4650_p13 = pnand %p4649_p10, %p4915_p2 }
 0x487   : > { %p4655_p11 = por %p4654_p7, %p4653_p3 }
 0x488   : > { %p4651_p9 = pneg %p4650_p13 }
 0x489   : > { %p4657_p1 = por %p4656_p12, %p4655_p11 }
 0x48b   : > { %p4658_p4 = pnand %p4657_p1, %p4651_p9 }
 0x48d   : > { %4661 = shalt.err (!%p4658_p4)
}
 0x48e   : > { %s4739_s27 = smov 256   ;;  %s4740_s1 = smov 16  }
 0x48f   : > { %4206 = dma.vmem_to_hbm [thread:$0]  (%p4915_p2), %s5819_s9, 4096, %s5817_s7, %s3689_s21, %s4739_s27, %s4739_s27, %s4740_s1  }
 0x490 PF: > { %s3718_s24 = sand.u32 1, %s4704_s18   ;;  %p5896_p6 = scmp.ne.s32.totalorder %s5885_s29, 0 }
 0x491   : > { %p5897_p8 = scmp.ge.s32.totalorder %s4724_s23, 2  ;;  %s3719_s14 = scalar_lea.sflag [#allocation5], %s3718_s24 }
 0x493   : > { %p4223_p0 = pnand %p5897_p8, %p5896_p6 }
 0x495   : > { %4699 = dma.done.wait (!%p4223_p0), %s3719_s14, 4096  }
 0x496   : > { %4701 = vsyncadd (!%p4223_p0), %s3719_s14, 4294963200  ;;  %s23_s23 = sadd.s32 1, %s4724_s23   ;;  %s5898_s18 = smov %s4708_s19 }
 0x497   : > { %p20_p5 = scmp.ge.s32.totalorder %s23_s23, 4   ;;  %s5899_s19 = smov %s4712_s20 }
 0x498   : > { %s5900_s20 = smov %s4927_s6  ;;  %s5901_s21 = smov %s4720_s22 }
 0x499   : > { %s5902_s22 = smov %s5904_s15  ;;  %22 = sbr.rel (!%p20_p5) target bundleno = 10 (0xa), region = 102 }
 0x4a0   :  { %3724 = vsyncpa [#allocation4], 1 }
 0x4a1   :  { %3726 = vsyncpa [#allocation4 + $0x1], 1 }
 0x4a2   :  { %3727 = vsyncpa [#allocation7], 1 }
 0x4a3   :  { %3728 = vsyncpa [#allocation10], 1 }
 0x4a4   :  { %3729 = vsyncpa [#allocation5], 1 }
 0x4a5   :  { %3731 = vsyncpa [#allocation5 + $0x1], 1 }

</bundles_post_ra>
